<compile_context>
chip_gen: v6e
topology: v6e:2x2x1
jax: 0.10.0
libtpu: 0.0.40
codegen_flags: <defaults>
</compile_context>

<pallas_src>
import jax
import jax.numpy as jnp
from jax.experimental import pallas as pl
from jax.experimental.pallas import tpu as pltpu

IMAGE_SIZE = 784
H_DIM = 400
Z_DIM = 20

H_PAD = 512       # hidden dim padded 400 -> 512 (lane-dense, multiple of 128)
MV_PAD = 128      # fused [mu | log_var] projection width padded to 128
TILE_B_MAX = 512  # max batch rows per grid step


# --------------------------------------------------------------------------- #
# Kernel
# --------------------------------------------------------------------------- #
def vae_kernel(x_ref, eps_ref,
               w1_ref, b1_ref, w23_ref, b23_ref,
               w4_ref, b4_ref, w5_ref, b5_ref,
               xr_ref, mv_ref):
    # Encoder: h = relu(x @ W1 + b1).  bf16 operands on the MXU, f32 accumulate.
    xb = x_ref[...].astype(jnp.bfloat16)                       # no-op for bf16 x
    h = jnp.dot(xb, w1_ref[...], preferred_element_type=jnp.float32) + b1_ref[...]
    h = jnp.maximum(h, 0.0).astype(jnp.bfloat16)               # (TB, 512) bf16

    # Fused mu / log_var projection: one (TB,512) x (512,128) matmul.
    mv = jnp.dot(h, w23_ref[...],
                 preferred_element_type=jnp.float32) + b23_ref[...]   # (TB, 128)
    mu = mv[:, :Z_DIM]                                          # (TB, 20)
    log_var = mv[:, Z_DIM:2 * Z_DIM]                            # (TB, 20)

    # Reparameterize: z = mu + eps * exp(log_var / 2)
    z = mu + eps_ref[...] * jnp.exp(log_var * 0.5)              # (TB, 20) f32

    # Decoder: x_reconst = sigmoid(fc5(relu(fc4(z))))
    h2 = jnp.dot(z.astype(jnp.bfloat16), w4_ref[...],
                 preferred_element_type=jnp.float32) + b4_ref[...]
    h2 = jnp.maximum(h2, 0.0).astype(jnp.bfloat16)              # (TB, 512) bf16
    logits = jnp.dot(h2, w5_ref[...],
                     preferred_element_type=jnp.float32) + b5_ref[...]  # (TB, 784)

    xr_ref[...] = jax.nn.sigmoid(logits).astype(xr_ref.dtype)
    mv_ref[...] = mv[:, :2 * Z_DIM]                             # contiguous [mu|lv]


# --------------------------------------------------------------------------- #
# Wrapper
# --------------------------------------------------------------------------- #
def _pick_tile_b(batch, max_tile=TILE_B_MAX):
    """Biggest batch tile <= max_tile that keeps >= 2 grid steps (v7x megacore),
    rounded down to a multiple of 8 (sublane granularity)."""
    half = (batch // 2) // 8 * 8
    return max(8, min(max_tile, half))


def vae_forward(x, eps, pk, *, tile_b=None):
    """x: (B, 784) (bf16 preferred), eps: (B, 20) f32, pk: packed params."""
    B = x.shape[0]
    if tile_b is None:
        tile_b = _pick_tile_b(B)
    grid = (pl.cdiv(B, tile_b),)          # ragged last block handled by Pallas

    batched = lambda i: (i, 0)            # tile over batch
    resident = lambda i: (0, 0)           # same block every step -> VMEM-resident

    in_specs = [
        pl.BlockSpec((tile_b, IMAGE_SIZE), batched),    # x
        pl.BlockSpec((tile_b, Z_DIM), batched),         # eps
        pl.BlockSpec((IMAGE_SIZE, H_PAD), resident),    # w1 (bf16)
        pl.BlockSpec((1, H_PAD), resident),             # b1
        pl.BlockSpec((H_PAD, MV_PAD), resident),        # w23 (bf16, fused mu|lv)
        pl.BlockSpec((1, MV_PAD), resident),            # b23
        pl.BlockSpec((Z_DIM, H_PAD), resident),         # w4 (bf16)
        pl.BlockSpec((1, H_PAD), resident),             # b4
        pl.BlockSpec((H_PAD, IMAGE_SIZE), resident),    # w5 (bf16)
        pl.BlockSpec((1, IMAGE_SIZE), resident),        # b5
    ]
    out_specs = (
        pl.BlockSpec((tile_b, IMAGE_SIZE), batched),    # x_reconst (same dtype as x)
        pl.BlockSpec((tile_b, 2 * Z_DIM), batched),     # fused [mu | log_var], f32
    )
    out_shape = (
        jax.ShapeDtypeStruct((B, IMAGE_SIZE), x.dtype),
        jax.ShapeDtypeStruct((B, 2 * Z_DIM), jnp.float32),
    )

    matmul_macs = (IMAGE_SIZE * H_PAD + H_PAD * MV_PAD
                   + Z_DIM * H_PAD + H_PAD * IMAGE_SIZE)
    weight_bytes = 2 * matmul_macs                        # bf16 weights
    xs = jnp.dtype(x.dtype).itemsize
    io_bytes = (xs * B * IMAGE_SIZE                       # x in
                + 4 * B * Z_DIM                           # eps in
                + xs * B * IMAGE_SIZE                     # x_reconst out
                + 4 * B * 2 * Z_DIM)                      # mu|log_var out
    cost = pl.CostEstimate(
        flops=2 * B * matmul_macs,
        transcendentals=B * (Z_DIM + IMAGE_SIZE),         # exp + sigmoid
        bytes_accessed=weight_bytes + io_bytes,
    )

    xr, mv = pl.pallas_call(
        vae_kernel,
        out_shape=out_shape,
        grid=grid,
        in_specs=in_specs,
        out_specs=out_specs,
        compiler_params=pltpu.CompilerParams(
            dimension_semantics=("parallel",),            # both TCs on v7x
            vmem_limit_bytes=32 << 20,
        ),
        cost_estimate=cost,
    )(x, eps, pk["w1"], pk["b1"], pk["w23"], pk["b23"],
      pk["w4"], pk["b4"], pk["w5"], pk["b5"])

    mu = mv[:, :Z_DIM]
    log_var = mv[:, Z_DIM:2 * Z_DIM]
    return xr, mu, log_var


# --------------------------------------------------------------------------- #
# Parameter init / packing
# --------------------------------------------------------------------------- #
def init_params(key):
    """PyTorch-Linear-like init (uniform +/- 1/sqrt(fan_in)), stored as (in, out)."""
    def linear(key, fan_in, fan_out):
        kw, kb = jax.random.split(key)
        bound = 1.0 / jnp.sqrt(fan_in)
        w = jax.random.uniform(kw, (fan_in, fan_out), jnp.float32, -bound, bound)
        b = jax.random.uniform(kb, (1, fan_out), jnp.float32, -bound, bound)
        return w, b

    keys = jax.random.split(key, 5)
    p = {}
    p["w1"], p["b1"] = linear(keys[0], IMAGE_SIZE, H_DIM)
    p["w2"], p["b2"] = linear(keys[1], H_DIM, Z_DIM)
    p["w3"], p["b3"] = linear(keys[2], H_DIM, Z_DIM)
    p["w4"], p["b4"] = linear(keys[3], Z_DIM, H_DIM)
    p["w5"], p["b5"] = linear(keys[4], H_DIM, IMAGE_SIZE)
    return p


def pack_params(p):
    """Zero-pad H_DIM -> H_PAD, fuse fc2|fc3, cast weights to bf16 (biases f32)."""
    w1 = jnp.zeros((IMAGE_SIZE, H_PAD), jnp.float32).at[:, :H_DIM].set(p["w1"])
    b1 = jnp.zeros((1, H_PAD), jnp.float32).at[:, :H_DIM].set(p["b1"])

    w23 = jnp.zeros((H_PAD, MV_PAD), jnp.float32)
    w23 = w23.at[:H_DIM, :Z_DIM].set(p["w2"]).at[:H_DIM, Z_DIM:2 * Z_DIM].set(p["w3"])
    b23 = jnp.zeros((1, MV_PAD), jnp.float32)
    b23 = b23.at[:, :Z_DIM].set(p["b2"]).at[:, Z_DIM:2 * Z_DIM].set(p["b3"])

    w4 = jnp.zeros((Z_DIM, H_PAD), jnp.float32).at[:, :H_DIM].set(p["w4"])
    b4 = jnp.zeros((1, H_PAD), jnp.float32).at[:, :H_DIM].set(p["b4"])

    w5 = jnp.zeros((H_PAD, IMAGE_SIZE), jnp.float32).at[:H_DIM, :].set(p["w5"])
    b5 = p["b5"]

    bf = lambda a: a.astype(jnp.bfloat16)
    return {"w1": bf(w1), "b1": b1, "w23": bf(w23), "b23": b23,
            "w4": bf(w4), "b4": b4, "w5": bf(w5), "b5": b5}


# --------------------------------------------------------------------------- #
# References
# --------------------------------------------------------------------------- #
def vae_forward_ref_f32(x, eps, p):
    """Pure-f32 JAX reference with the original module semantics."""
    h = jnp.maximum(x @ p["w1"] + p["b1"], 0.0)
    mu = h @ p["w2"] + p["b2"]
    log_var = h @ p["w3"] + p["b3"]
    z = mu + eps * jnp.exp(log_var * 0.5)
    h2 = jnp.maximum(z @ p["w4"] + p["b4"], 0.0)
    xr = jax.nn.sigmoid(h2 @ p["w5"] + p["b5"])
    return xr, mu, log_var


def vae_forward_ref_bf16(x, eps, pk):
    """Reference that mimics the kernel's bf16-operand / f32-accumulate matmuls."""
    f32 = lambda a: a.astype(jnp.float32)
    P = jax.lax.Precision.HIGHEST
    xb = f32(x.astype(jnp.bfloat16))
    h = jnp.maximum(jnp.dot(xb, f32(pk["w1"]), precision=P) + pk["b1"], 0.0)
    hb = f32(h.astype(jnp.bfloat16))
    mv = jnp.dot(hb, f32(pk["w23"]), precision=P) + pk["b23"]
    mu = mv[:, :Z_DIM]
    log_var = mv[:, Z_DIM:2 * Z_DIM]
    z = mu + eps * jnp.exp(log_var * 0.5)
    h2 = jnp.maximum(jnp.dot(f32(z.astype(jnp.bfloat16)), f32(pk["w4"]), precision=P)
                     + pk["b4"], 0.0)
    h2b = f32(h2.astype(jnp.bfloat16))
    xr = jax.nn.sigmoid(jnp.dot(h2b, f32(pk["w5"]), precision=P) + pk["b5"])
    return xr, mu, log_var


# --------------------------------------------------------------------------- #
# Demo / self-test
# --------------------------------------------------------------------------- #
if __name__ == "__main__":
    key = jax.random.PRNGKey(0)
    k_param, k_x, k_eps = jax.random.split(key, 3)

    # B not a multiple of the tile -> exercises the multi-step grid AND the
    # ragged (masked) last block with no wrapper-side pad/slice.
    B = 200
    params = init_params(k_param)
    packed = pack_params(params)
    # Produce x directly in bf16 (dtype change at the producer, not a cast op).
    x = jax.random.uniform(k_x, (B, IMAGE_SIZE), jnp.bfloat16)  # MNIST-like pixels
    eps = jax.random.normal(k_eps, (B, Z_DIM), jnp.float32)     # torch.randn_like(std)

    x_reconst, mu, log_var = vae_forward(x, eps, packed)
    jax.block_until_ready((x_reconst, mu, log_var))

    xr32 = x_reconst.astype(jnp.float32)

    # Tight check vs a reference that mimics the kernel's bf16 matmul operands
    # (x_reconst additionally carries its own bf16 output rounding).
    xr_b, mu_b, lv_b = vae_forward_ref_bf16(x, eps, packed)
    assert jnp.allclose(xr32, xr_b, atol=1e-2, rtol=1e-2)
    assert jnp.allclose(mu, mu_b, atol=5e-3, rtol=5e-3)
    assert jnp.allclose(log_var, lv_b, atol=5e-3, rtol=5e-3)

    # Loose check vs the full-f32 module semantics (bf16 weight quantization noise).
    xr_f, mu_f, lv_f = vae_forward_ref_f32(x.astype(jnp.float32), eps, params)
    assert jnp.allclose(xr32, xr_f, atol=3e-2, rtol=3e-2)
    assert jnp.allclose(mu, mu_f, atol=3e-2, rtol=3e-2)
    assert jnp.allclose(log_var, lv_f, atol=3e-2, rtol=3e-2)

    print("KERNEL_OK")
</pallas_src>

<mosaic_0001>
module attributes {stable_mosaic.version = 11 : i64} {
  func.func @vae_kernel(%arg0: i32, %arg1: memref<96x784xbf16, #tpu.memory_space<vmem>>, %arg2: memref<96x20xf32, #tpu.memory_space<vmem>>, %arg3: memref<784x512xbf16, #tpu.memory_space<vmem>>, %arg4: memref<1x512xf32, #tpu.memory_space<vmem>>, %arg5: memref<512x128xbf16, #tpu.memory_space<vmem>>, %arg6: memref<1x128xf32, #tpu.memory_space<vmem>>, %arg7: memref<20x512xbf16, #tpu.memory_space<vmem>>, %arg8: memref<1x512xf32, #tpu.memory_space<vmem>>, %arg9: memref<512x784xbf16, #tpu.memory_space<vmem>>, %arg10: memref<1x784xf32, #tpu.memory_space<vmem>>, %arg11: memref<96x784xbf16, #tpu.memory_space<vmem>>, %arg12: memref<96x40xf32, #tpu.memory_space<vmem>>) attributes {dimension_semantics = [#tpu.dimension_semantics<parallel>], iteration_bounds = array<i64: 3>, scalar_prefetch = 0 : i64, scratch_operands = 0 : i64, tpu.core_type = #tpu.core_type<tc>, window_params = [{transform_indices = @transform_0, window_bounds = array<i64: 96, 784>}, {transform_indices = @transform_1, window_bounds = array<i64: 96, 20>}, {pipeline_mode = #tpu.pipeline_mode<synchronous>, transform_indices = @transform_2, window_bounds = array<i64: 784, 512>}, {pipeline_mode = #tpu.pipeline_mode<synchronous>, transform_indices = @transform_3, window_bounds = array<i64: 1, 512>}, {pipeline_mode = #tpu.pipeline_mode<synchronous>, transform_indices = @transform_4, window_bounds = array<i64: 512, 128>}, {pipeline_mode = #tpu.pipeline_mode<synchronous>, transform_indices = @transform_5, window_bounds = array<i64: 1, 128>}, {pipeline_mode = #tpu.pipeline_mode<synchronous>, transform_indices = @transform_6, window_bounds = array<i64: 20, 512>}, {pipeline_mode = #tpu.pipeline_mode<synchronous>, transform_indices = @transform_7, window_bounds = array<i64: 1, 512>}, {pipeline_mode = #tpu.pipeline_mode<synchronous>, transform_indices = @transform_8, window_bounds = array<i64: 512, 784>}, {pipeline_mode = #tpu.pipeline_mode<synchronous>, transform_indices = @transform_9, window_bounds = array<i64: 1, 784>}, {transform_indices = @transform_10, window_bounds = array<i64: 96, 784>}, {transform_indices = @transform_11, window_bounds = array<i64: 96, 40>}]} {
    %c0 = arith.constant 0 : index
    %c0_0 = arith.constant 0 : index
    %0 = vector.load %arg1[%c0, %c0_0] : memref<96x784xbf16, #tpu.memory_space<vmem>>, vector<96x784xbf16>
    %c0_1 = arith.constant 0 : index
    %c0_2 = arith.constant 0 : index
    %1 = vector.load %arg3[%c0_1, %c0_2] : memref<784x512xbf16, #tpu.memory_space<vmem>>, vector<784x512xbf16>
    %cst = arith.constant dense<0.000000e+00> : vector<96x512xf32>
    %2 = tpu.matmul %0, %1, %cst {dimension_numbers = #tpu.dot_dimension_numbers<[1], [0], [0], [1], [0, 0, 1, 1], [], []>} : vector<96x784xbf16>, vector<784x512xbf16>, vector<96x512xf32> -> vector<96x512xf32>
    %c0_3 = arith.constant 0 : index
    %c0_4 = arith.constant 0 : index
    %3 = vector.load %arg4[%c0_3, %c0_4] : memref<1x512xf32, #tpu.memory_space<vmem>>, vector<1x512xf32>
    %4 = vector.broadcast %3 : vector<1x512xf32> to vector<96x512xf32>
    %5 = arith.addf %2, %4 : vector<96x512xf32>
    %cst_5 = arith.constant 0.000000e+00 : f32
    %6 = vector.broadcast %cst_5 : f32 to vector<96x512xf32>
    %7 = arith.maximumf %5, %6 : vector<96x512xf32>
    %8 = arith.truncf %7 : vector<96x512xf32> to vector<96x512xbf16>
    %c0_6 = arith.constant 0 : index
    %c0_7 = arith.constant 0 : index
    %9 = vector.load %arg5[%c0_6, %c0_7] : memref<512x128xbf16, #tpu.memory_space<vmem>>, vector<512x128xbf16>
    %cst_8 = arith.constant dense<0.000000e+00> : vector<96x128xf32>
    %10 = tpu.matmul %8, %9, %cst_8 {dimension_numbers = #tpu.dot_dimension_numbers<[1], [0], [0], [1], [0, 0, 1, 1], [], []>} : vector<96x512xbf16>, vector<512x128xbf16>, vector<96x128xf32> -> vector<96x128xf32>
    %c0_9 = arith.constant 0 : index
    %c0_10 = arith.constant 0 : index
    %11 = vector.load %arg6[%c0_9, %c0_10] : memref<1x128xf32, #tpu.memory_space<vmem>>, vector<1x128xf32>
    %12 = vector.broadcast %11 : vector<1x128xf32> to vector<96x128xf32>
    %13 = arith.addf %10, %12 : vector<96x128xf32>
    %14 = vector.extract_strided_slice %13 {offsets = [0, 0], sizes = [96, 20], strides = [1, 1]} : vector<96x128xf32> to vector<96x20xf32>
    %15 = vector.extract_strided_slice %13 {offsets = [0, 20], sizes = [96, 20], strides = [1, 1]} : vector<96x128xf32> to vector<96x20xf32>
    %c0_11 = arith.constant 0 : index
    %c0_12 = arith.constant 0 : index
    %16 = vector.load %arg2[%c0_11, %c0_12] : memref<96x20xf32, #tpu.memory_space<vmem>>, vector<96x20xf32>
    %cst_13 = arith.constant 5.000000e-01 : f32
    %17 = vector.broadcast %cst_13 : f32 to vector<96x20xf32>
    %18 = arith.mulf %15, %17 : vector<96x20xf32>
    %19 = math.exp %18 : vector<96x20xf32>
    %20 = arith.mulf %16, %19 : vector<96x20xf32>
    %21 = arith.addf %14, %20 : vector<96x20xf32>
    %22 = arith.truncf %21 : vector<96x20xf32> to vector<96x20xbf16>
    %c0_14 = arith.constant 0 : index
    %c0_15 = arith.constant 0 : index
    %23 = vector.load %arg7[%c0_14, %c0_15] : memref<20x512xbf16, #tpu.memory_space<vmem>>, vector<20x512xbf16>
    %cst_16 = arith.constant dense<0.000000e+00> : vector<96x512xf32>
    %24 = tpu.matmul %22, %23, %cst_16 {dimension_numbers = #tpu.dot_dimension_numbers<[1], [0], [0], [1], [0, 0, 1, 1], [], []>} : vector<96x20xbf16>, vector<20x512xbf16>, vector<96x512xf32> -> vector<96x512xf32>
    %c0_17 = arith.constant 0 : index
    %c0_18 = arith.constant 0 : index
    %25 = vector.load %arg8[%c0_17, %c0_18] : memref<1x512xf32, #tpu.memory_space<vmem>>, vector<1x512xf32>
    %26 = vector.broadcast %25 : vector<1x512xf32> to vector<96x512xf32>
    %27 = arith.addf %24, %26 : vector<96x512xf32>
    %cst_19 = arith.constant 0.000000e+00 : f32
    %28 = vector.broadcast %cst_19 : f32 to vector<96x512xf32>
    %29 = arith.maximumf %27, %28 : vector<96x512xf32>
    %30 = arith.truncf %29 : vector<96x512xf32> to vector<96x512xbf16>
    %c0_20 = arith.constant 0 : index
    %c0_21 = arith.constant 0 : index
    %31 = vector.load %arg9[%c0_20, %c0_21] : memref<512x784xbf16, #tpu.memory_space<vmem>>, vector<512x784xbf16>
    %cst_22 = arith.constant dense<0.000000e+00> : vector<96x784xf32>
    %32 = tpu.matmul %30, %31, %cst_22 {dimension_numbers = #tpu.dot_dimension_numbers<[1], [0], [0], [1], [0, 0, 1, 1], [], []>} : vector<96x512xbf16>, vector<512x784xbf16>, vector<96x784xf32> -> vector<96x784xf32>
    %c0_23 = arith.constant 0 : index
    %c0_24 = arith.constant 0 : index
    %33 = vector.load %arg10[%c0_23, %c0_24] : memref<1x784xf32, #tpu.memory_space<vmem>>, vector<1x784xf32>
    %34 = vector.broadcast %33 : vector<1x784xf32> to vector<96x784xf32>
    %35 = arith.addf %32, %34 : vector<96x784xf32>
    %36 = arith.negf %35 : vector<96x784xf32>
    %37 = math.exp %36 : vector<96x784xf32>
    %cst_25 = arith.constant 1.000000e+00 : f32
    %38 = vector.broadcast %cst_25 : f32 to vector<96x784xf32>
    %39 = arith.addf %38, %37 : vector<96x784xf32>
    %40 = arith.divf %38, %39 : vector<96x784xf32>
    %41 = arith.truncf %40 : vector<96x784xf32> to vector<96x784xbf16>
    %c0_26 = arith.constant 0 : index
    %c0_27 = arith.constant 0 : index
    %42 = vector.load %arg11[%c0_26, %c0_27] : memref<96x784xbf16, #tpu.memory_space<vmem>>, vector<96x784xbf16>
    tpu.vector_store %arg11[%c0_26, %c0_27], %41 {strides = array<i32>} : memref<96x784xbf16, #tpu.memory_space<vmem>>, vector<96x784xbf16>,
    %43 = vector.extract_strided_slice %13 {offsets = [0, 0], sizes = [96, 40], strides = [1, 1]} : vector<96x128xf32> to vector<96x40xf32>
    %c0_28 = arith.constant 0 : index
    %c0_29 = arith.constant 0 : index
    %44 = vector.load %arg12[%c0_28, %c0_29] : memref<96x40xf32, #tpu.memory_space<vmem>>, vector<96x40xf32>
    tpu.vector_store %arg12[%c0_28, %c0_29], %43 {strides = array<i32>} : memref<96x40xf32, #tpu.memory_space<vmem>>, vector<96x40xf32>,
    return
  }
  func.func @transform_0(%arg0: i32) -> (i32, i32) {
    %c0_i32 = arith.constant 0 : i32
    %c0_i32_0 = arith.constant 0 : i32
    return %arg0, %c0_i32 : i32, i32
  }
  func.func @transform_1(%arg0: i32) -> (i32, i32) {
    %c0_i32 = arith.constant 0 : i32
    %c0_i32_0 = arith.constant 0 : i32
    return %arg0, %c0_i32 : i32, i32
  }
  func.func @transform_2(%arg0: i32) -> (i32, i32) {
    %c0_i32 = arith.constant 0 : i32
    %c0_i32_0 = arith.constant 0 : i32
    %c0_i32_1 = arith.constant 0 : i32
    return %c0_i32, %c0_i32_0 : i32, i32
  }
  func.func @transform_3(%arg0: i32) -> (i32, i32) {
    %c0_i32 = arith.constant 0 : i32
    %c0_i32_0 = arith.constant 0 : i32
    %c0_i32_1 = arith.constant 0 : i32
    return %c0_i32, %c0_i32_0 : i32, i32
  }
  func.func @transform_4(%arg0: i32) -> (i32, i32) {
    %c0_i32 = arith.constant 0 : i32
    %c0_i32_0 = arith.constant 0 : i32
    %c0_i32_1 = arith.constant 0 : i32
    return %c0_i32, %c0_i32_0 : i32, i32
  }
  func.func @transform_5(%arg0: i32) -> (i32, i32) {
    %c0_i32 = arith.constant 0 : i32
    %c0_i32_0 = arith.constant 0 : i32
    %c0_i32_1 = arith.constant 0 : i32
    return %c0_i32, %c0_i32_0 : i32, i32
  }
  func.func @transform_6(%arg0: i32) -> (i32, i32) {
    %c0_i32 = arith.constant 0 : i32
    %c0_i32_0 = arith.constant 0 : i32
    %c0_i32_1 = arith.constant 0 : i32
    return %c0_i32, %c0_i32_0 : i32, i32
  }
  func.func @transform_7(%arg0: i32) -> (i32, i32) {
    %c0_i32 = arith.constant 0 : i32
    %c0_i32_0 = arith.constant 0 : i32
    %c0_i32_1 = arith.constant 0 : i32
    return %c0_i32, %c0_i32_0 : i32, i32
  }
  func.func @transform_8(%arg0: i32) -> (i32, i32) {
    %c0_i32 = arith.constant 0 : i32
    %c0_i32_0 = arith.constant 0 : i32
    %c0_i32_1 = arith.constant 0 : i32
    return %c0_i32, %c0_i32_0 : i32, i32
  }
  func.func @transform_9(%arg0: i32) -> (i32, i32) {
    %c0_i32 = arith.constant 0 : i32
    %c0_i32_0 = arith.constant 0 : i32
    %c0_i32_1 = arith.constant 0 : i32
    return %c0_i32, %c0_i32_0 : i32, i32
  }
  func.func @transform_10(%arg0: i32) -> (i32, i32) {
    %c0_i32 = arith.constant 0 : i32
    %c0_i32_0 = arith.constant 0 : i32
    return %arg0, %c0_i32 : i32, i32
  }
  func.func @transform_11(%arg0: i32) -> (i32, i32) {
    %c0_i32 = arith.constant 0 : i32
    %c0_i32_0 = arith.constant 0 : i32
    return %arg0, %c0_i32 : i32, i32
  }
}

</mosaic_0001>

<bundles_post_ra>
// kernel: tpu_custom_call.1
= control target key start
LH: loop header
LB: loop body
LE: loop exit
PB: predicated region body
PF: predicated region fallthrough
CT: control target
= control target key end

     0   :  { %s11970_s0 = inlined_call_operand.vmem [shape: bf16[200,784], index: 0, kind: input, shape index: {}]   ;;  %s11971_s1 = inlined_call_operand.vmem [shape: f32[200,20], index: 1, kind: input, shape index: {}]   ;;  %s11972_s2 = inlined_call_operand.vmem [shape: bf16[784,512], index: 2, kind: input, shape index: {}]   ;;  %s11973_s3 = inlined_call_operand.vmem [shape: f32[1,512], index: 3, kind: input, shape index: {}]   ;;  %s11974_s4 = inlined_call_operand.vmem [shape: bf16[512,128], index: 4, kind: input, shape index: {}]   ;;  %s11975_s5 = inlined_call_operand.vmem [shape: f32[1,128], index: 5, kind: input, shape index: {}]   ;;  %s11976_s6 = inlined_call_operand.vmem [shape: bf16[20,512], index: 6, kind: input, shape index: {}]   ;;  %s11977_s7 = inlined_call_operand.vmem [shape: f32[1,512], index: 7, kind: input, shape index: {}]   ;;  %s11978_s8 = inlined_call_operand.vmem [shape: bf16[512,784], index: 8, kind: input, shape index: {}]   ;;  %s11979_s9 = inlined_call_operand.vmem [shape: f32[1,784], index: 9, kind: input, shape index: {}]   ;;  %s11980_s10 = inlined_call_operand.hbm [shape: bf16[200,784], index: 10, kind: output, shape index: {0}]   ;;  %s11981_s11 = inlined_call_operand.vmem [shape: f32[200,40], index: 11, kind: output, shape index: {1}]  }
   0x1   :  { %12002 = sst [smem:[#allocation23_spill]] %s11970_s0 }
   0x2   :  { %17 = vsyncpa [#allocation3], 0 }
   0x3   :  { %19 = vsyncpa [#allocation3 + $0x1], 0  ;;  %s9352_s17 = smov 0   ;;  %s9354_s18 = smov 0  }
   0x4   :  { %s9356_s19 = smov 0   ;;  %s9358_s20 = smov 0  }
   0x5 LB: > { %12003 = sst [smem:[#allocation6_spill]] %s9249_s19  ;;  %s9373_s21 = sadd.s32 4294967295, %s9253_s20   ;;  %s9253_s20 = sphi %s9358_s20, %s12058_s20   ;;  %s9249_s19 = sphi %s9356_s19, %s12060_s19   ;;  %s9245_s18 = sphi %s9354_s18, %s12062_s18   ;;  %s9241_s17 = sphi %s9352_s17, %s12061_s17  }
   0x6   : > { %s6996_s22 = sadd.s32 4294967294, %s9253_s20   ;;  %s9377_s23 = sadd.s32 1, %s9253_s20  }
   0x7   : > { %12004 = sst [smem:[#allocation7_spill]] %s9377_s23  ;;  %s252_s24 = sadd.s32 1, %s9249_s19 }
   0x8   : > { %s249_s25 = ssub.s32 %s9253_s20, %s9377_s23  ;;  %p262_p0 = scmp.ne.s32.totalorder %s9249_s19, %s9245_s18 }
   0x9   : > { %p250_p1 = scmp.eq.s32.totalorder %s249_s25, 0  ;;  %p263_p2 = scmp.eq.s32.totalorder %s9373_s21, 2 }
   0xa   : > { %p268_p3 = scmp.ne.s32.totalorder %s9245_s18, %s9241_s17  ;;  %p269_p4 = scmp.eq.s32.totalorder %s6996_s22, 2 }
   0xb   : > { %s9388_s26 = scalar_select %p250_p1, %s9249_s19, %s252_s24  }
   0xc   : > { %p9390_p5 = por %p263_p2, %p262_p0  ;;  %p9394_p6 = por %p269_p4, %p268_p3 }
   0xd   : > { %12005 = sst [smem:[#allocation8_spill]] %s9388_s26  ;;  %p6999_p7 = scmp.ge.s32.totalorder %s9253_s20, 1 }
   0xe   : > { %s12007_s28 = scalar_select %p9394_p6, 1, 0 }
   0xf   : > { %p374_p8 = scmp.lt.s32.totalorder %s9253_s20, 4 }
  0x10   : > { %12008 = sst [smem:[#allocation9_spill]] %s12007_s28 }
  0x11   : > { %p375_p9 = pnand %p6999_p7, %p374_p8 }
  0x13   : > { %378 = sbr.rel (%p375_p9) target bundleno = 1566 (0x61e), region = 60 }
  0x18   : > { %v8049_v0 = vld [vmem:[%s11972_s2 + $0xe4] ss:$16 sps:$4 sm:$0xff]   ;;  %v8053_v2 = vld [vmem:[%s11972_s2 + $0xe0] ss:$16 sps:$4 sm:$0xff]   ;;  %s9488_s24 = smul.u32 12, %s9373_s21  ;;  %s12009_s0 = sld [smem:[#allocation23_spill]] }
  0x19   : > { %v8051_v1 = vld [vmem:[%s11972_s2 + $0x2e4] ss:$16 sps:$4 sm:$0xff]   ;;  %1951 = vmatprep.subr.bf16.mxu0 %v8049_v0  ;;  %v8054_v3 = vld [vmem:[%s11972_s2 + $0x2e0] ss:$16 sps:$4 sm:$0xff]   ;;  %vm1932_vm0 = vcmask 130048   ;;  %s10615_s22 = sand.u32 1, %s9245_s18  }
  0x1a   : > { %2044 = vmatprep.subr.bf16.mxu1 %v8051_v1  ;;  %v8055_v4 = vld [vmem:[%s11972_s2 + $0xc4] ss:$16 sps:$4 sm:$0xff]   ;;  %1952 = vmatpush1.bf16.msra.mxu0 %v8053_v2  ;;  %v8059_v6 = vld [vmem:[%s11972_s2 + $0xc0] ss:$16 sps:$4 sm:$0xff]   ;;  %p439_p10 = scmp.lt.s32.totalorder %s9488_s24, 24  ;;  %vm3395_vm1 = vcmask 1041408  }
  0x1b   : > { %2045 = vmatpush1.bf16.msra.mxu1 %v8054_v3  ;;  %v8057_v5 = vld [vmem:[%s11972_s2 + $0x2c4] ss:$16 sps:$4 sm:$0xff]   ;;  %1953 = vmatprep.subr.bf16.mxu0 %v8055_v4  ;;  %v8060_v7 = vld [vmem:[%s11972_s2 + $0x2c0] ss:$16 sps:$4 sm:$0xff]   ;;  %s7938_s26 = smul.u32 96, %s10615_s22  ;;  %vm6648_vm2 = vcmask 326656  }
  0x1c   : > { %2046 = vmatprep.subr.bf16.mxu1 %v8057_v5  ;;  %v8061_v8 = vld [vmem:[%s11972_s2 + $0xa4] ss:$16 sps:$4 sm:$0xff]   ;;  %v8065_v10 = vld [vmem:[%s11972_s2 + $0xa0] ss:$16 sps:$4 sm:$0xff]   ;;  %s9516_s15 = scalar_select %p439_p10, %s9488_s24, 24  ;;  %vm3376_vm3 = vcmask 162816  }
  0x1d   : > { %v8063_v9 = vld [vmem:[%s11972_s2 + $0x2a4] ss:$16 sps:$4 sm:$0xff]   ;;  %v8066_v11 = vld [vmem:[%s11972_s2 + $0x2a0] ss:$16 sps:$4 sm:$0xff]   ;;  %s10648_s30 = scalar_lea.vmem [#allocation4], %s7938_s26   ;;  %s7937_s12 = smul.u32 336, %s10615_s22 }
  0x1e   : > { %1954 = vmatpush1.bf16.msra.mxu0 %v8059_v6  ;;  %v8067_v12 = vld [vmem:[%s11972_s2 + $0x84] ss:$16 sps:$4 sm:$0xff]   ;;  %v8071_v14 = vld [vmem:[%s11972_s2 + $0x80] ss:$16 sps:$4 sm:$0xff]   ;;  %s7939_s14 = smul.u32 28, %s9516_s15  ;;  %s7001_s23 = sshll.u32 %s9516_s15, 3 }
  0x1f   : > { %2047 = vmatpush1.bf16.msra.mxu1 %v8060_v7  ;;  %1955 = vmatprep.subr.bf16.mxu0 %v8061_v8  ;;  %v8069_v13 = vld [vmem:[%s11972_s2 + $0x284] ss:$16 sps:$4 sm:$0xff]   ;;  %v8072_v15 = vld [vmem:[%s11972_s2 + $0x280] ss:$16 sps:$4 sm:$0xff]   ;;  %s10752_s29 = scalar_lea.vmem %s11971_s1, %s7001_s23  ;;  %s11709_s13 = scalar_lea.vmem [#allocation2], %s7937_s12  ;;  %vm6602_vm4 = vcmask 125952  }
  0x20   : > { %2048 = vmatprep.subr.bf16.mxu1 %v8063_v9  ;;  %v8073_v16 = vld [vmem:[%s11972_s2 + $0x64] ss:$16 sps:$4 sm:$0xff]   ;;  %v8077_v18 = vld [vmem:[%s11972_s2 + $0x60] ss:$16 sps:$4 sm:$0xff]   ;;  %s9546_s28 = scalar_lea.vmem %s12009_s0, %s7939_s14  ;;  %s9288_s14 = smov 108  }
  0x21   : > { %v8075_v17 = vld [vmem:[%s11972_s2 + $0x264] ss:$16 sps:$4 sm:$0xff]   ;;  %v8078_v19 = vld [vmem:[%s11972_s2 + $0x260] ss:$16 sps:$4 sm:$0xff]   ;;  %v8150_v51 = vld [vmem:[%s9546_s28 + $0xc] ss:$28 sps:$4 sm:$0xff]  }
  0x22   : > { %1956 = vmatpush1.bf16.msra.mxu0 %v8065_v10  ;;  %v8079_v20 = vld [vmem:[%s11972_s2 + $0x44] ss:$16 sps:$4 sm:$0xff]   ;;  %v8083_v22 = vld [vmem:[%s11972_s2 + $0x40] ss:$16 sps:$4 sm:$0xff]   ;;  %2076 = vmatprep.mubr.bf16.mxu1 %v8150_v51  ;;  %v9630_v9 = vld [vmem:[%s9546_s28 + $0x3c] ss:$28 sps:$4 sm:$0xff]  }
  0x23   : > { %2049 = vmatpush1.bf16.msra.mxu1 %v8066_v11  ;;  %1957 = vmatprep.subr.bf16.mxu0 %v8067_v12  ;;  %v8081_v21 = vld [vmem:[%s11972_s2 + $0x244] ss:$16 sps:$4 sm:$0xff]   ;;  %v8084_v23 = vld [vmem:[%s11972_s2 + $0x240] ss:$16 sps:$4 sm:$0xff]   ;;  %s12001_s23 = scalar_lea.sflag [#allocation3], %s10615_s22  ;;  %s6674_s25 = ssub.s32 (%p9390_p5), 25, %s9488_s24 }
  0x24   : > { %2050 = vmatprep.subr.bf16.mxu1 %v8069_v13  ;;  %v8085_v24 = vld [vmem:[%s11972_s2 + $0x24] ss:$16 sps:$4 sm:$0xff]   ;;  %v8089_v26 = vld [vmem:[%s11972_s2 + $0x20] ss:$16 sps:$4 sm:$0xff]   ;;  %p6675_p11 = scmp.lt.s32.totalorder (%p9390_p5), %s6674_s25, 12 }
  0x25   : > { %v8087_v25 = vld [vmem:[%s11972_s2 + $0x224] ss:$16 sps:$4 sm:$0xff]   ;;  %v8090_v27 = vld [vmem:[%s11972_s2 + $0x220] ss:$16 sps:$4 sm:$0xff]  }
  0x26   : > { %1958 = vmatpush1.bf16.msra.mxu0 %v8071_v14  ;;  %v8091_v28 = vld [vmem:[%s11972_s2 + $0x4] ss:$16 sps:$4 sm:$0xff]   ;;  %v8095_v30 = vld [vmem:[%s11972_s2] ss:$16 sps:$4 sm:$0xff]  }
  0x27   : > { %2051 = vmatpush1.bf16.msra.mxu1 %v8072_v15  ;;  %1959 = vmatprep.subr.bf16.mxu0 %v8073_v16  ;;  %v8093_v29 = vld [vmem:[%s11972_s2 + $0x204] ss:$16 sps:$4 sm:$0xff]   ;;  %v8096_v31 = vld [vmem:[%s11972_s2 + $0x200] ss:$16 sps:$4 sm:$0xff]  }
  0x28   : > { %2052 = vmatprep.subr.bf16.mxu1 %v8075_v17  ;;  %v8097_v32 = vld [vmem:[%s11972_s2 + $0x1e4] ss:$16 sps:$4 sm:$0xff]   ;;  %v8101_v34 = vld [vmem:[%s11972_s2 + $0x1e0] ss:$16 sps:$4 sm:$0xff]  }
  0x29   : > { %v8099_v33 = vld [vmem:[%s11972_s2 + $0x3e4] ss:$16 sps:$4 sm:$0xff]   ;;  %v8102_v35 = vld [vmem:[%s11972_s2 + $0x3e0] ss:$16 sps:$4 sm:$0xff]  }
  0x2a   : > { %1960 = vmatpush1.bf16.msra.mxu0 %v8077_v18  ;;  %v8103_v36 = vld [vmem:[%s11972_s2 + $0x1c4] ss:$16 sps:$4 sm:$0xff]   ;;  %v8107_v38 = vld [vmem:[%s11972_s2 + $0x1c0] ss:$16 sps:$4 sm:$0xff]   ;;  %v8174_v18 = vld [vmem:[%s9546_s28 + $0x7c] ss:$28 sps:$4 sm:$0xff]  }
  0x2b   : > { %2053 = vmatpush1.bf16.msra.mxu1 %v8078_v19  ;;  %1961 = vmatprep.subr.bf16.mxu0 %v8079_v20  ;;  %v8105_v37 = vld [vmem:[%s11972_s2 + $0x3c4] ss:$16 sps:$4 sm:$0xff]   ;;  %v8108_v39 = vld [vmem:[%s11972_s2 + $0x3c0] ss:$16 sps:$4 sm:$0xff]  }
  0x2c   : > { %2054 = vmatprep.subr.bf16.mxu1 %v8081_v21  ;;  %v8109_v40 = vld [vmem:[%s11972_s2 + $0x1a4] ss:$16 sps:$4 sm:$0xff]   ;;  %v8113_v42 = vld [vmem:[%s11972_s2 + $0x1a0] ss:$16 sps:$4 sm:$0xff]   ;;  %v8222_v21 = vld [vmem:[%s11972_s2 + $0xec] ss:$16 sps:$4 sm:$0xff]  }
  0x2d   : > { %v8111_v41 = vld [vmem:[%s11972_s2 + $0x3a4] ss:$16 sps:$4 sm:$0xff]   ;;  %v8114_v43 = vld [vmem:[%s11972_s2 + $0x3a0] ss:$16 sps:$4 sm:$0xff]  }
  0x2e   : > { %1962 = vmatpush1.bf16.msra.mxu0 %v8083_v22  ;;  %v8115_v44 = vld [vmem:[%s11972_s2 + $0x184] ss:$16 sps:$4 sm:$0xff]   ;;  %v8119_v46 = vld [vmem:[%s11972_s2 + $0x180] ss:$16 sps:$4 sm:$0xff]  }
  0x2f   : > { %2055 = vmatpush1.bf16.msra.mxu1 %v8084_v23  ;;  %1963 = vmatprep.subr.bf16.mxu0 %v8085_v24  ;;  %v8117_v45 = vld [vmem:[%s11972_s2 + $0x384] ss:$16 sps:$4 sm:$0xff]   ;;  %v8120_v47 = vld [vmem:[%s11972_s2 + $0x380] ss:$16 sps:$4 sm:$0xff]  }
  0x30   : > { %2056 = vmatprep.subr.bf16.mxu1 %v8087_v25  ;;  %v8121_v48 = vld [vmem:[%s11972_s2 + $0x164] ss:$16 sps:$4 sm:$0xff]   ;;  %v8125_v52 = vld [vmem:[%s11972_s2 + $0x160] ss:$16 sps:$4 sm:$0xff]  }
  0x31   : > { %v9561_v49 = vld [vmem:[%s9546_s28 + $0x4] ss:$28 sps:$4 sm:$0xff]   ;;  %v9642_v13 = vld [vmem:[%s9546_s28 + $0x38] ss:$28 sps:$4 sm:$0xff]   ;;  %v9667_v22 = vld [vmem:[%s9546_s28 + $0x70] ss:$28 sps:$4 sm:$0xff]  }
  0x32   : > { %1964 = vmatpush1.bf16.msra.mxu0 %v8089_v26  ;;  %v8123_v50 = vld [vmem:[%s11972_s2 + $0x364] ss:$16 sps:$4 sm:$0xff]   ;;  %1983 = vmatprep.mubr.bf16.mxu0 %v9561_v49  ;;  %v8126_v53 = vld [vmem:[%s11972_s2 + $0x360] ss:$16 sps:$4 sm:$0xff]   ;;  %v9677_v26 = vld [vmem:[%s9546_s28 + $0xac] ss:$28 sps:$4 sm:$0xff]  }
  0x33   : > { %2057 = vmatpush1.bf16.msra.mxu1 %v8090_v27  ;;  %1965 = vmatprep.subr.bf16.mxu0 %v8091_v28  ;;  %v8127_v54 = vld [vmem:[%s11972_s2 + $0x144] ss:$16 sps:$4 sm:$0xff]   ;;  %v8131_v56 = vld [vmem:[%s11972_s2 + $0x140] ss:$16 sps:$4 sm:$0xff]  }
  0x34   : > { %2058 = vmatprep.subr.bf16.mxu1 %v8093_v29  ;;  %v8129_v55 = vld [vmem:[%s11972_s2 + $0x344] ss:$16 sps:$4 sm:$0xff]   ;;  %v8132_v57 = vld [vmem:[%s11972_s2 + $0x340] ss:$16 sps:$4 sm:$0xff]  }
  0x35   : > { %v8133_v58 = vld [vmem:[%s11972_s2 + $0x124] ss:$16 sps:$4 sm:$0xff]   ;;  %v8137_v60 = vld [vmem:[%s11972_s2 + $0x120] ss:$16 sps:$4 sm:$0xff]  }
  0x36   : > { %1966 = vmatpush1.bf16.msra.mxu0 %v8095_v30  ;;  %v8135_v59 = vld [vmem:[%s11972_s2 + $0x324] ss:$16 sps:$4 sm:$0xff]   ;;  %v8138_v61 = vld [vmem:[%s11972_s2 + $0x320] ss:$16 sps:$4 sm:$0xff]  }
  0x37   : > { %2059 = vmatpush1.bf16.msra.mxu1 %v8096_v31  ;;  %1967 = vmatprep.subr.bf16.mxu0 %v8097_v32  ;;  %v8139_v62 = vld [vmem:[%s11972_s2 + $0x104] ss:$16 sps:$4 sm:$0xff]   ;;  %v8143_v0 = vld [vmem:[%s11972_s2 + $0x100] ss:$16 sps:$4 sm:$0xff]  }
  0x38   : > { %2060 = vmatprep.subr.bf16.mxu1 %v8099_v33  ;;  %v8141_v63 = vld [vmem:[%s11972_s2 + $0x304] ss:$16 sps:$4 sm:$0xff]   ;;  %v8144_v1 = vld [vmem:[%s11972_s2 + $0x300] ss:$16 sps:$4 sm:$0xff]  }
  0x39   : > { %v8153_v2 = vld [vmem:[%s11972_s2 + $0x4e4] ss:$16 sps:$4 sm:$0xff]   ;;  %v9617_v4 = vld [vmem:[%s9546_s28] ss:$28 sps:$4 sm:$0xff]   ;;  %v8189_v31 = vld [vmem:[%s9546_s28 + $0xb0] ss:$28 sps:$4 sm:$0xff]  }
  0x3a   : > { %1968 = vmatpush2.bf16.msra.mxu0 %v8101_v34  ;;  %v8156_v3 = vld [vmem:[%s11972_s2 + $0x604] ss:$16 sps:$4 sm:$0xff]   ;;  %v8151_v6 = vld [vmem:[%s11972_s2 + $0x4e0] ss:$16 sps:$4 sm:$0xff]  }
  0x3b   : > { %2061 = vmatpush2.bf16.msra.mxu1 %v8102_v35  ;;  %1969 = vmatprep.subr.bf16.mxu0 %v8103_v36  ;;  %v8148_v5 = vld [vmem:[%s9546_s28 + $0x8] ss:$28 sps:$4 sm:$0xff]   ;;  %v8154_v7 = vld [vmem:[%s11972_s2 + $0x600] ss:$16 sps:$4 sm:$0xff]   ;;  %v8177_v23 = vld [vmem:[%s9546_s28 + $0x78] ss:$28 sps:$4 sm:$0xff]  }
  0x3c   : > { %2062 = vmatprep.subr.bf16.mxu1 %v8105_v37  ;;  %v8159_v8 = vld [vmem:[%s11972_s2 + $0x4c4] ss:$16 sps:$4 sm:$0xff]   ;;  %v8157_v11 = vld [vmem:[%s11972_s2 + $0x4c0] ss:$16 sps:$4 sm:$0xff]   ;;  %v8198_v35 = vld [vmem:[%s9546_s28 + $0xec] ss:$28 sps:$4 sm:$0xff]  }
  0x3d   : > { %v8162_v10 = vld [vmem:[%s9546_s28 + $0x44] ss:$28 sps:$4 sm:$0xff]   ;;  %v9652_v17 = vld [vmem:[%s9546_s28 + $0x74] ss:$28 sps:$4 sm:$0xff]  }
  0x3e   : > { %1970 = vmatpush2.bf16.msra.mxu0 %v8107_v38  ;;  %v8168_v12 = vld [vmem:[%s11972_s2 + $0x4a4] ss:$16 sps:$4 sm:$0xff]   ;;  %v8165_v14 = vld [vmem:[%s9546_s28 + $0x40] ss:$28 sps:$4 sm:$0xff]  }
  0x3f   : > { %2063 = vmatpush2.bf16.msra.mxu1 %v8108_v39  ;;  %1971 = vmatprep.subr.bf16.mxu0 %v8109_v40  ;;  %v8166_v15 = vld [vmem:[%s11972_s2 + $0x4a0] ss:$16 sps:$4 sm:$0xff]   ;;  %v8171_v16 = vld [vmem:[%s11972_s2 + $0x484] ss:$16 sps:$4 sm:$0xff]  }
  0x40   : > { %2064 = vmatprep.subr.bf16.mxu1 %v8111_v41  ;;  %v8169_v19 = vld [vmem:[%s11972_s2 + $0x480] ss:$16 sps:$4 sm:$0xff]   ;;  %v8180_v20 = vld [vmem:[%s11972_s2 + $0x464] ss:$16 sps:$4 sm:$0xff]   ;;  %v9718_v41 = vld [vmem:[%s9546_s28 + $0x11c] ss:$28 sps:$4 sm:$0xff]  }
  0x41   : > { %v8178_v24 = vld [vmem:[%s11972_s2 + $0x460] ss:$16 sps:$4 sm:$0xff]   ;;  %v8183_v25 = vld [vmem:[%s11972_s2 + $0x444] ss:$16 sps:$4 sm:$0xff]  }
  0x42   : > { %1972 = vmatpush2.bf16.msra.mxu0 %v8113_v42  ;;  %v8186_v27 = vld [vmem:[%s9546_s28 + $0xb4] ss:$28 sps:$4 sm:$0xff]   ;;  %v9689_v30 = vld [vmem:[%s9546_s28 + $0xa8] ss:$28 sps:$4 sm:$0xff]   ;;  %v9708_v37 = vld [vmem:[%s9546_s28 + $0xe0] ss:$28 sps:$4 sm:$0xff]  }
  0x43   : > { %2065 = vmatpush2.bf16.msra.mxu1 %v8114_v43  ;;  %1973 = vmatprep.subr.bf16.mxu0 %v8115_v44  ;;  %v8181_v28 = vld [vmem:[%s11972_s2 + $0x440] ss:$16 sps:$4 sm:$0xff]   ;;  %v8192_v29 = vld [vmem:[%s11972_s2 + $0x424] ss:$16 sps:$4 sm:$0xff]  }
  0x44   : > { %2066 = vmatprep.subr.bf16.mxu1 %v8117_v45  ;;  %v8190_v32 = vld [vmem:[%s11972_s2 + $0x420] ss:$16 sps:$4 sm:$0xff]   ;;  %v8195_v33 = vld [vmem:[%s11972_s2 + $0x404] ss:$16 sps:$4 sm:$0xff]  }
  0x45   : > { %v9699_v34 = vld [vmem:[%s9546_s28 + $0xe4] ss:$28 sps:$4 sm:$0xff]   ;;  %v8247_v51 = vld [vmem:[%s9546_s28 + $0x14] ss:$28 sps:$4 sm:$0xff]  }
  0x46   : > { %1974 = vmatpush2.bf16.msra.mxu0 %v8119_v46  ;;  %v8193_v36 = vld [vmem:[%s11972_s2 + $0x400] ss:$16 sps:$4 sm:$0xff]   ;;  %v8204_v38 = vld [vmem:[%s11972_s2 + $0x5e4] ss:$16 sps:$4 sm:$0xff]  }
  0x47   : > { %2067 = vmatpush2.bf16.msra.mxu1 %v8120_v47  ;;  %1975 = vmatprep.subr.bf16.mxu0 %v8121_v48  ;;  %v8201_v39 = vld [vmem:[%s9546_s28 + $0xe8] ss:$28 sps:$4 sm:$0xff]   ;;  %v8202_v40 = vld [vmem:[%s11972_s2 + $0x5e0] ss:$16 sps:$4 sm:$0xff]   ;;  %v8212_v46 = vld [vmem:[%s9546_s28 + $0x118] ss:$28 sps:$4 sm:$0xff]  }
  0x48   : > { %2068 = vmatprep.subr.bf16.mxu1 %v8123_v50  ;;  %v8207_v42 = vld [vmem:[%s11972_s2 + $0x5c4] ss:$16 sps:$4 sm:$0xff]   ;;  %v8205_v44 = vld [vmem:[%s11972_s2 + $0x5c0] ss:$16 sps:$4 sm:$0xff]  }
  0x49   : > { %v8210_v43 = vld [vmem:[%s9546_s28 + $0x124] ss:$28 sps:$4 sm:$0xff]  }
  0x4a   : > { %1976 = vmatpush2.bf16.msra.mxu0 %v8125_v52  ;;  %v8216_v45 = vld [vmem:[%s11972_s2 + $0x5a4] ss:$16 sps:$4 sm:$0xff]   ;;  %v8213_v47 = vld [vmem:[%s9546_s28 + $0x120] ss:$28 sps:$4 sm:$0xff]  }
  0x4b   : > { %2069 = vmatpush2.bf16.msra.mxu1 %v8126_v53  ;;  %1977 = vmatprep.subr.bf16.mxu0 %v8127_v54  ;;  %v8214_v48 = vld [vmem:[%s11972_s2 + $0x5a0] ss:$16 sps:$4 sm:$0xff]   ;;  %v8219_v50 = vld [vmem:[%s11972_s2 + $0x584] ss:$16 sps:$4 sm:$0xff]   ;;  %v11986_v53 = vmov 0  }
  0x4c   : > { %2070 = vmatprep.subr.bf16.mxu1 %v8129_v55  ;;  %v8217_v52 = vld [vmem:[%s11972_s2 + $0x580] ss:$16 sps:$4 sm:$0xff]   ;;  %v8225_v54 = vld [vmem:[%s11972_s2 + $0x564] ss:$16 sps:$4 sm:$0xff]   ;;  %v8220_v55 = vld [vmem:[%s11972_s2 + $0xe8] ss:$16 sps:$4 sm:$0xff]  }
  0x4e   : > { %1978 = vmatpush2.bf16.msra.mxu0 %v8131_v56  ;;  %v8226_v56 = vld [vmem:[%s9546_s28 + $0x18] ss:$28 sps:$4 sm:$0xff]  }
  0x4f   : > { %2071 = vmatpush2.bf16.msra.mxu1 %v8132_v57  ;;  %1979 = vmatprep.subr.bf16.mxu0 %v8133_v58  ;;  %v8223_v57 = vld [vmem:[%s11972_s2 + $0x560] ss:$16 sps:$4 sm:$0xff]   ;;  %v8229_v58 = vld [vmem:[%s11972_s2 + $0xcc] ss:$16 sps:$4 sm:$0xff]  }
  0x50   : > { %2072 = vmatprep.subr.bf16.mxu1 %v8135_v59  ;;  %v8232_v59 = vld [vmem:[%s11972_s2 + $0x544] ss:$16 sps:$4 sm:$0xff]  }
  0x52   : > { %1980 = vmatpush2.bf16.msra.mxu0 %v8137_v60  ;;  %v8227_v60 = vld [vmem:[%s11972_s2 + $0xc8] ss:$16 sps:$4 sm:$0xff]  }
  0x53   : > { %2073 = vmatpush2.bf16.msra.mxu1 %v8138_v61  ;;  %1981 = vmatprep.subr.bf16.mxu0 %v8139_v62  ;;  %v8230_v61 = vld [vmem:[%s11972_s2 + $0x540] ss:$16 sps:$4 sm:$0xff]   ;;  %v8235_v62 = vld [vmem:[%s11972_s2 + $0xac] ss:$16 sps:$4 sm:$0xff]  }
  0x54   : > { %2074 = vmatprep.subr.bf16.mxu1 %v8141_v63  ;;  %v8238_v63 = vld [vmem:[%s11972_s2 + $0x524] ss:$16 sps:$4 sm:$0xff]  }
  0x56   : > { %1982 = vmatpush2.bf16.msra.mxu0 %v8143_v0  ;;  %v8254_v0 = vld [vmem:[%s9546_s28 + $0x50] ss:$28 sps:$4 sm:$0xff]  }
  0x57   : > { %2075 = vmatpush2.bf16.msra.mxu1 %v8144_v1  ;;  %2137 = vmatprep.subr.bf16.mxu0 %v8153_v2  ;;  %v8233_v1 = vld [vmem:[%s11972_s2 + $0xa8] ss:$16 sps:$4 sm:$0xff]   ;;  %v8236_v2 = vld [vmem:[%s11972_s2 + $0x520] ss:$16 sps:$4 sm:$0xff]  }
  0x58   : > { %2244 = vmatprep.subr.bf16.mxu1 %v8156_v3  ;;  %v8241_v3 = vld [vmem:[%s11972_s2 + $0x8c] ss:$16 sps:$4 sm:$0xff]  }
  0x59   : > { %1984 = vmatmul.mubr.bf16.vlgmr.msra.gmra.mxu0 %v9617_v4 }
  0x5a   : > { %2077 = vmatmul.mubr.bf16.vlgmr.msra.gmra.mxu1 %v8148_v5  ;;  %2138 = vmatpush1.bf16.msra.mxu0 %v8151_v6  ;;  %v8244_v5 = vld [vmem:[%s11972_s2 + $0x504] ss:$16 sps:$4 sm:$0xff]   ;;  %v8239_v6 = vld [vmem:[%s11972_s2 + $0x88] ss:$16 sps:$4 sm:$0xff]  }
  0x5b   : > { %2245 = vmatpush1.bf16.msra.mxu1 %v8154_v7  ;;  %2139 = vmatprep.subr.bf16.mxu0 %v8159_v8  ;;  %v8242_v7 = vld [vmem:[%s11972_s2 + $0x500] ss:$16 sps:$4 sm:$0xff]   ;;  %v8250_v8 = vld [vmem:[%s11972_s2 + $0x6c] ss:$16 sps:$4 sm:$0xff]  }
  0x5c   : > { %1993 = vmatprep.mubr.bf16.mxu0 %v9630_v9  ;;  %2086 = vmatprep.mubr.bf16.mxu1 %v8162_v10  ;;  %v8253_v10 = vld [vmem:[%s11972_s2 + $0x2ec] ss:$16 sps:$4 sm:$0xff]  }
  0x5d   : > { %2323 = vmatprep.subr.bf16.mxu1 %v8222_v21  ;;  %v8258_v21 = vld [vmem:[%s11972_s2 + $0x2c8] ss:$16 sps:$4 sm:$0xff]  }
  0x5e   : > { %2140 = vmatpush1.bf16.msra.mxu0 %v8157_v11  ;;  %v8245_v11 = vld [vmem:[%s9546_s28 + $0x10] ss:$28 sps:$4 sm:$0xff]  }
  0x5f   : > { %2141 = vmatprep.subr.bf16.mxu0 %v8168_v12  ;;  %v8270_v12 = vld [vmem:[%s9546_s28 + $0x88] ss:$28 sps:$4 sm:$0xff]  }
  0x61   : > { %1994 = vmatmul.mubr.bf16.gmra.mxu0 %v9642_v13 }
  0x62   : > { %2087 = vmatmul.mubr.bf16.gmra.mxu1 %v8165_v14  ;;  %2142 = vmatpush1.bf16.msra.mxu0 %v8166_v15  ;;  %v8248_v14 = vld [vmem:[%s11972_s2 + $0x68] ss:$16 sps:$4 sm:$0xff]  }
  0x63   : > { %2003 = vmatprep.mubr.bf16.mxu0 %v9652_v17  ;;  %2143 = vmatprep.subr.bf16.mxu0 %v8171_v16  ;;  %v8251_v15 = vld [vmem:[%s11972_s2 + $0x2e8] ss:$16 sps:$4 sm:$0xff]   ;;  %v8257_v16 = vld [vmem:[%s11972_s2 + $0x4c] ss:$16 sps:$4 sm:$0xff]  }
  0x64   : > { %2096 = vmatprep.mubr.bf16.mxu1 %v8174_v18  ;;  %v8260_v18 = vld [vmem:[%s11972_s2 + $0x2cc] ss:$16 sps:$4 sm:$0xff]  }
  0x66   : > { %2144 = vmatpush1.bf16.msra.mxu0 %v8169_v19  ;;  %v8261_v19 = vld [vmem:[%s9546_s28 + $0x4c] ss:$28 sps:$4 sm:$0xff]  }
  0x67   : > { %2145 = vmatprep.subr.bf16.mxu0 %v8180_v20  ;;  %v8255_v20 = vld [vmem:[%s11972_s2 + $0x48] ss:$16 sps:$4 sm:$0xff]  }
  0x69   : > { %2004 = vmatmul.mubr.bf16.gmra.mxu0 %v9667_v22 }
  0x6a   : > { %2097 = vmatmul.mubr.bf16.gmra.mxu1 %v8177_v23  ;;  %2146 = vmatpush1.bf16.msra.mxu0 %v8178_v24  ;;  %v8265_v23 = vld [vmem:[%s11972_s2 + $0x2c] ss:$16 sps:$4 sm:$0xff]  }
  0x6b   : > { %2013 = vmatprep.mubr.bf16.mxu0 %v9677_v26  ;;  %2147 = vmatprep.subr.bf16.mxu0 %v8183_v25  ;;  %v8269_v24 = vld [vmem:[%s11972_s2 + $0x2ac] ss:$16 sps:$4 sm:$0xff]   ;;  %v8266_v25 = vld [vmem:[%s9546_s28 + $0x48] ss:$28 sps:$4 sm:$0xff]  }
  0x6c   : > { %2106 = vmatprep.mubr.bf16.mxu1 %v8186_v27  ;;  %v8286_v27 = vld [vmem:[%s9546_s28 + $0xc0] ss:$28 sps:$4 sm:$0xff]  }
  0x6e   : > { %2148 = vmatpush1.bf16.msra.mxu0 %v8181_v28  ;;  %v8263_v28 = vld [vmem:[%s11972_s2 + $0x28] ss:$16 sps:$4 sm:$0xff]  }
  0x6f   : > { %2149 = vmatprep.subr.bf16.mxu0 %v8192_v29  ;;  %v8267_v29 = vld [vmem:[%s11972_s2 + $0x2a8] ss:$16 sps:$4 sm:$0xff]  }
  0x71   : > { %2014 = vmatmul.mubr.bf16.gmra.mxu0 %v9689_v30 }
  0x72   : > { %2107 = vmatmul.mubr.bf16.gmra.mxu1 %v8189_v31  ;;  %2150 = vmatpush1.bf16.msra.mxu0 %v8190_v32  ;;  %v8273_v31 = vld [vmem:[%s11972_s2 + $0xc] ss:$16 sps:$4 sm:$0xff]  }
  0x73   : > { %2023 = vmatprep.mubr.bf16.mxu0 %v9699_v34  ;;  %2151 = vmatprep.subr.bf16.mxu0 %v8195_v33  ;;  %v8276_v32 = vld [vmem:[%s11972_s2 + $0x28c] ss:$16 sps:$4 sm:$0xff]   ;;  %v8277_v33 = vld [vmem:[%s9546_s28 + $0x84] ss:$28 sps:$4 sm:$0xff]  }
  0x74   : > { %2116 = vmatprep.mubr.bf16.mxu1 %v8198_v35  ;;  %v8271_v35 = vld [vmem:[%s11972_s2 + $0x8] ss:$16 sps:$4 sm:$0xff]  }
  0x76   : > { %2152 = vmatpush1.bf16.msra.mxu0 %v8193_v36  ;;  %v8274_v36 = vld [vmem:[%s11972_s2 + $0x288] ss:$16 sps:$4 sm:$0xff]  }
  0x77   : > { %2153 = vmatprep.subr.bf16.mxu0 %v8204_v38  ;;  %v8281_v38 = vld [vmem:[%s11972_s2 + $0x1ec] ss:$16 sps:$4 sm:$0xff]  }
  0x79   : > { %2024 = vmatmul.mubr.bf16.gmra.mxu0 %v9708_v37 }
  0x7a   : > { %2117 = vmatmul.mubr.bf16.gmra.mxu1 %v8201_v39  ;;  %2154 = vmatpush2.bf16.msra.mxu0 %v8202_v40  ;;  %v8285_v39 = vld [vmem:[%s11972_s2 + $0x26c] ss:$16 sps:$4 sm:$0xff]  }
  0x7b   : > { %2033 = vmatprep.mubr.bf16.mxu0 %v9718_v41  ;;  %2155 = vmatprep.subr.bf16.mxu0 %v8207_v42  ;;  %v8282_v40 = vld [vmem:[%s9546_s28 + $0x80] ss:$28 sps:$4 sm:$0xff]   ;;  %v8302_v42 = vld [vmem:[%s9546_s28 + $0xf8] ss:$28 sps:$4 sm:$0xff]  }
  0x7c   : > { %2126 = vmatprep.mubr.bf16.mxu1 %v8210_v43  ;;  %v8279_v43 = vld [vmem:[%s11972_s2 + $0x1e8] ss:$16 sps:$4 sm:$0xff]  }
  0x7e   : > { %2156 = vmatpush2.bf16.msra.mxu0 %v8205_v44  ;;  %v8283_v44 = vld [vmem:[%s11972_s2 + $0x268] ss:$16 sps:$4 sm:$0xff]  }
  0x7f   : > { %2157 = vmatprep.subr.bf16.mxu0 %v8216_v45  ;;  %v8289_v45 = vld [vmem:[%s11972_s2 + $0x1cc] ss:$16 sps:$4 sm:$0xff]  }
  0x81   : > { %2034 = vmatmul.mubr.bf16.gmra.mxu0 %v8212_v46  ;;  %v8292_v46 = vld [vmem:[%s11972_s2 + $0x24c] ss:$16 sps:$4 sm:$0xff]  }
  0x82   : > { %2127 = vmatmul.mubr.bf16.gmra.mxu1 %v8213_v47  ;;  %2158 = vmatpush2.bf16.msra.mxu0 %v8214_v48  ;;  %v8293_v47 = vld [vmem:[%s9546_s28 + $0xbc] ss:$28 sps:$4 sm:$0xff]  }
  0x83   : > { %2262 = vmatprep.mubr.bf16.mxu1 %v11986_v53  ;;  %2159 = vmatprep.subr.bf16.mxu0 %v8219_v50  ;;  %v8287_v48 = vld [vmem:[%s11972_s2 + $0x1c8] ss:$16 sps:$4 sm:$0xff]  }
  0x84   : > { %2169 = vmatprep.mubr.bf16.mxu0 %v8247_v51  ;;  %v8290_v50 = vld [vmem:[%s11972_s2 + $0x248] ss:$16 sps:$4 sm:$0xff]   ;;  %v8297_v51 = vld [vmem:[%s11972_s2 + $0x1ac] ss:$16 sps:$4 sm:$0xff]  }
  0x86   : > { %2160 = vmatpush2.bf16.msra.mxu0 %v8217_v52  ;;  %v8301_v52 = vld [vmem:[%s11972_s2 + $0x22c] ss:$16 sps:$4 sm:$0xff]  }
  0x87   : > { %2161 = vmatprep.subr.bf16.mxu0 %v8225_v54  ;;  %v8298_v54 = vld [vmem:[%s9546_s28 + $0xb8] ss:$28 sps:$4 sm:$0xff]  }
  0x8a   : > { %7240 = vmatmul.mubr.msk.bf16.vlgmr.msra.gmra.mxu1 %vm1932_vm0, %v8226_v56  ;;  %2162 = vmatpush2.bf16.msra.mxu0 %v8223_v57  ;;  %v8295_v56 = vld [vmem:[%s11972_s2 + $0x1a8] ss:$16 sps:$4 sm:$0xff]  }
  0x8b   : > { %2324 = vmatpush1.bf16.msra.mxu1 %v8220_v55  ;;  %2163 = vmatprep.subr.bf16.mxu0 %v8232_v59  ;;  %v8318_v55 = vld [vmem:[%s9546_s28 + $0x130] ss:$28 sps:$4 sm:$0xff]   ;;  %v8299_v57 = vld [vmem:[%s11972_s2 + $0x228] ss:$16 sps:$4 sm:$0xff]  }
  0x8c   : > { %2325 = vmatprep.subr.bf16.mxu1 %v8229_v58  ;;  %2272 = vmatprep.mubr.bf16.mxu1 %v11986_v53  ;;  %v8305_v58 = vld [vmem:[%s11972_s2 + $0x18c] ss:$16 sps:$4 sm:$0xff]  }
  0x8d   : > { %v8308_v59 = vld [vmem:[%s11972_s2 + $0x20c] ss:$16 sps:$4 sm:$0xff]  }
  0x8e   : > { %2164 = vmatpush2.bf16.msra.mxu0 %v8230_v61  ;;  %v8303_v61 = vld [vmem:[%s11972_s2 + $0x188] ss:$16 sps:$4 sm:$0xff]  }
  0x8f   : > { %2326 = vmatpush1.bf16.msra.mxu1 %v8227_v60  ;;  %2165 = vmatprep.subr.bf16.mxu0 %v8238_v63  ;;  %v8309_v60 = vld [vmem:[%s9546_s28 + $0xf4] ss:$28 sps:$4 sm:$0xff]   ;;  %v8313_v63 = vld [vmem:[%s11972_s2 + $0x16c] ss:$16 sps:$4 sm:$0xff]  }
  0x90   : > { %2327 = vmatprep.subr.bf16.mxu1 %v8235_v62  ;;  %v8306_v62 = vld [vmem:[%s11972_s2 + $0x208] ss:$16 sps:$4 sm:$0xff]  }
  0x92   : > { %7241 = vmatmul.mubr.msk.bf16.gmra.mxu1 %vm1932_vm0, %v8254_v0  ;;  %2166 = vmatpush2.bf16.msra.mxu0 %v8236_v2  ;;  %v8317_v0 = vld [vmem:[%s11972_s2 + $0x3ec] ss:$16 sps:$4 sm:$0xff]  }
  0x93   : > { %2328 = vmatpush1.bf16.msra.mxu1 %v8233_v1  ;;  %2167 = vmatprep.subr.bf16.mxu0 %v8244_v5  ;;  %v8311_v1 = vld [vmem:[%s11972_s2 + $0x168] ss:$16 sps:$4 sm:$0xff]   ;;  %v8314_v2 = vld [vmem:[%s9546_s28 + $0xf0] ss:$28 sps:$4 sm:$0xff]  }
  0x94   : > { %2329 = vmatprep.subr.bf16.mxu1 %v8241_v3  ;;  %2282 = vmatprep.mubr.bf16.mxu1 %v11986_v53  ;;  %v8315_v3 = vld [vmem:[%s11972_s2 + $0x3e8] ss:$16 sps:$4 sm:$0xff]   ;;  %v8321_v5 = vld [vmem:[%s11972_s2 + $0x14c] ss:$16 sps:$4 sm:$0xff]  }
  0x96   : > { %2168 = vmatpush2.bf16.msra.mxu0 %v8242_v7  ;;  %v8325_v7 = vld [vmem:[%s9546_s28 + $0x12c] ss:$28 sps:$4 sm:$0xff]  }
  0x97   : > { %2330 = vmatpush1.bf16.msra.mxu1 %v8239_v6  ;;  %2416 = vmatprep.subr.bf16.mxu0 %v8253_v10  ;;  %v8324_v6 = vld [vmem:[%s11972_s2 + $0x3cc] ss:$16 sps:$4 sm:$0xff]  }
  0x98   : > { %2331 = vmatprep.subr.bf16.mxu1 %v8250_v8  ;;  %v8322_v8 = vld [vmem:[%s11972_s2 + $0x3c8] ss:$16 sps:$4 sm:$0xff]   ;;  %v8329_v10 = vld [vmem:[%s11972_s2 + $0x12c] ss:$16 sps:$4 sm:$0xff]  }
  0x99   : > { %2170 = vmatmul.mubr.bf16.vlgmr.msra.gmra.mxu0 %v8245_v11  ;;  %v8333_v11 = vld [vmem:[%s11972_s2 + $0x3ac] ss:$16 sps:$4 sm:$0xff]  }
  0x9a   : > { %7242 = vmatmul.mubr.msk.bf16.gmra.mxu1 %vm1932_vm0, %v8270_v12  ;;  %2417 = vmatpush1.bf16.msra.mxu0 %v8251_v15  ;;  %v8330_v12 = vld [vmem:[%s9546_s28 + $0x128] ss:$28 sps:$4 sm:$0xff]  }
  0x9b   : > { %2332 = vmatpush1.bf16.msra.mxu1 %v8248_v14  ;;  %2418 = vmatprep.subr.bf16.mxu0 %v8260_v18  ;;  %v8327_v14 = vld [vmem:[%s11972_s2 + $0x128] ss:$16 sps:$4 sm:$0xff]   ;;  %v8339_v18 = vld [vmem:[%s11972_s2 + $0x38c] ss:$16 sps:$4 sm:$0xff]  }
  0x9c   : > { %2333 = vmatprep.subr.bf16.mxu1 %v8257_v16  ;;  %2179 = vmatprep.mubr.bf16.mxu0 %v8261_v19  ;;  %v8331_v15 = vld [vmem:[%s11972_s2 + $0x3a8] ss:$16 sps:$4 sm:$0xff]   ;;  %v8336_v16 = vld [vmem:[%s11972_s2 + $0x10c] ss:$16 sps:$4 sm:$0xff]  }
  0x9d   : > { %2292 = vmatprep.mubr.bf16.mxu1 %v11986_v53  ;;  %v8334_v19 = vld [vmem:[%s11972_s2 + $0x108] ss:$16 sps:$4 sm:$0xff]  }
  0x9e   : > { %2419 = vmatpush1.bf16.msra.mxu0 %v8258_v21  ;;  %v8342_v21 = vld [vmem:[%s11972_s2 + $0x4ec] ss:$16 sps:$4 sm:$0xff]  }
  0x9f   : > { %2334 = vmatpush1.bf16.msra.mxu1 %v8255_v20  ;;  %2420 = vmatprep.subr.bf16.mxu0 %v8269_v24  ;;  %v8337_v20 = vld [vmem:[%s11972_s2 + $0x388] ss:$16 sps:$4 sm:$0xff]  }
  0xa0   : > { %2335 = vmatprep.subr.bf16.mxu1 %v8265_v23  ;;  %v8345_v23 = vld [vmem:[%s11972_s2 + $0x36c] ss:$16 sps:$4 sm:$0xff]   ;;  %v8340_v24 = vld [vmem:[%s11972_s2 + $0x4e8] ss:$16 sps:$4 sm:$0xff]  }
  0xa1   : > { %2180 = vmatmul.mubr.bf16.gmra.mxu0 %v8266_v25  ;;  %v8343_v25 = vld [vmem:[%s11972_s2 + $0x368] ss:$16 sps:$4 sm:$0xff]  }
  0xa2   : > { %7243 = vmatmul.mubr.msk.bf16.gmra.mxu1 %vm1932_vm0, %v8286_v27  ;;  %2421 = vmatpush1.bf16.msra.mxu0 %v8267_v29  ;;  %v9125_v27 = vld [vmem:[%s9546_s28 + $0xc] ss:$28 sps:$4 sm:$0xff]  }
  0xa3   : > { %2336 = vmatpush1.bf16.msra.mxu1 %v8263_v28  ;;  %2422 = vmatprep.subr.bf16.mxu0 %v8276_v32  ;;  %v8348_v28 = vld [vmem:[%s11972_s2 + $0x4cc] ss:$16 sps:$4 sm:$0xff]   ;;  %v8349_v32 = vld [vmem:[%s11972_s2 + $0x348] ss:$16 sps:$4 sm:$0xff]  }
  0xa4   : > { %2337 = vmatprep.subr.bf16.mxu1 %v8273_v31  ;;  %2189 = vmatprep.mubr.bf16.mxu0 %v8277_v33  ;;  %v8351_v29 = vld [vmem:[%s11972_s2 + $0x34c] ss:$16 sps:$4 sm:$0xff]   ;;  %v8346_v31 = vld [vmem:[%s11972_s2 + $0x4c8] ss:$16 sps:$4 sm:$0xff]  }
  0xa5   : > { %2302 = vmatprep.mubr.bf16.mxu1 %v11986_v53  ;;  %v8354_v33 = vld [vmem:[%s11972_s2 + $0x4ac] ss:$16 sps:$4 sm:$0xff]  }
  0xa6   : > { %2423 = vmatpush1.bf16.msra.mxu0 %v8274_v36  ;;  %v8352_v36 = vld [vmem:[%s11972_s2 + $0x4a8] ss:$16 sps:$4 sm:$0xff]  }
  0xa7   : > { %2338 = vmatpush1.bf16.msra.mxu1 %v8271_v35  ;;  %2424 = vmatprep.subr.bf16.mxu0 %v8285_v39  ;;  %v8357_v35 = vld [vmem:[%s11972_s2 + $0x32c] ss:$16 sps:$4 sm:$0xff]  }
  0xa8   : > { %2339 = vmatprep.subr.bf16.mxu1 %v8281_v38  ;;  %v8360_v38 = vld [vmem:[%s11972_s2 + $0x48c] ss:$16 sps:$4 sm:$0xff]  }
  0xa9   : > { %2190 = vmatmul.mubr.bf16.gmra.mxu0 %v8282_v40  ;;  %v8363_v39 = vld [vmem:[%s11972_s2 + $0x30c] ss:$16 sps:$4 sm:$0xff]   ;;  %v8361_v40 = vld [vmem:[%s11972_s2 + $0x308] ss:$16 sps:$4 sm:$0xff]  }
  0xaa   : > { %7244 = vmatmul.mubr.msk.bf16.gmra.mxu1 %vm1932_vm0, %v8302_v42  ;;  %2425 = vmatpush1.bf16.msra.mxu0 %v8283_v44  ;;  %v8366_v42 = vld [vmem:[%s11972_s2 + $0x46c] ss:$16 sps:$4 sm:$0xff]   ;;  %v8364_v44 = vld [vmem:[%s11972_s2 + $0x468] ss:$16 sps:$4 sm:$0xff]  }
  0xab   : > { %2340 = vmatpush2.bf16.msra.mxu1 %v8279_v43  ;;  %2426 = vmatprep.subr.bf16.mxu0 %v8292_v46  ;;  %v8369_v43 = vld [vmem:[%s11972_s2 + $0x60c] ss:$16 sps:$4 sm:$0xff]   ;;  %v8370_v46 = vld [vmem:[%s11972_s2 + $0x448] ss:$16 sps:$4 sm:$0xff]  }
  0xac   : > { %2341 = vmatprep.subr.bf16.mxu1 %v8289_v45  ;;  %2199 = vmatprep.mubr.bf16.mxu0 %v8293_v47  ;;  %v8367_v45 = vld [vmem:[%s11972_s2 + $0x608] ss:$16 sps:$4 sm:$0xff]  }
  0xad   : > { %2312 = vmatprep.mubr.bf16.mxu1 %v11986_v53  ;;  %v8403_v47 = vld [vmem:[%s11974_s4 + $0x78] sm:$0xff]  }
  0xae   : > { %2427 = vmatpush1.bf16.msra.mxu0 %v8290_v50  ;;  %v9127_v50 = vld [vmem:[%s9546_s28 + $0x44] ss:$28 sps:$4 sm:$0xff]  }
  0xaf   : > { %2342 = vmatpush2.bf16.msra.mxu1 %v8287_v48  ;;  %2428 = vmatprep.subr.bf16.mxu0 %v8301_v52  ;;  %v9126_v48 = vld [vmem:[%s9546_s28 + $0x8] ss:$28 sps:$4 sm:$0xff]   ;;  %v8378_v52 = vld [vmem:[%s11972_s2 + $0x40c] ss:$16 sps:$4 sm:$0xff]  }
  0xb0   : > { %2343 = vmatprep.subr.bf16.mxu1 %v8297_v51  ;;  %v8373_v51 = vld [vmem:[%s11972_s2 + $0x428] ss:$16 sps:$4 sm:$0xff]  }
  0xb1   : > { %2200 = vmatmul.mubr.bf16.gmra.mxu0 %v8298_v54  ;;  %v9128_v54 = vld [vmem:[%s9546_s28 + $0x40] ss:$28 sps:$4 sm:$0xff]  }
  0xb2   : > { %7245 = vmatmul.mubr.msk.bf16.gmra.mxu1 %vm1932_vm0, %v8318_v55  ;;  %2429 = vmatpush1.bf16.msra.mxu0 %v8299_v57  ;;  %v8381_v55 = vld [vmem:[%s11972_s2 + $0x5ec] ss:$16 sps:$4 sm:$0xff]  }
  0xb3   : > { %2344 = vmatpush2.bf16.msra.mxu1 %v8295_v56  ;;  %2430 = vmatprep.subr.bf16.mxu0 %v8308_v59  ;;  %v8379_v56 = vld [vmem:[%s11972_s2 + $0x5e8] ss:$16 sps:$4 sm:$0xff]   ;;  %v8384_v57 = vld [vmem:[%s11972_s2 + $0x5cc] ss:$16 sps:$4 sm:$0xff]   ;;  %v9131_v59 = vld [vmem:[%s9546_s28 + $0xb4] ss:$28 sps:$4 sm:$0xff]  }
  0xb4   : > { %2345 = vmatprep.subr.bf16.mxu1 %v8305_v58  ;;  %2209 = vmatprep.mubr.bf16.mxu0 %v8309_v60  ;;  %v9130_v58 = vld [vmem:[%s9546_s28 + $0x78] ss:$28 sps:$4 sm:$0xff]  }
  0xb5   : > { %2355 = vmatprep.mubr.bf16.mxu1 %v9561_v49  ;;  %v8319_v49 = vld [vmem:[%s11972_s2 + $0x148] ss:$16 sps:$4 sm:$0xff]  }
  0xb6   : > { %2431 = vmatpush1.bf16.msra.mxu0 %v8306_v62  ;;  %v8385_v60 = vld [vmem:[%s11972_s2 + $0x5a8] ss:$16 sps:$4 sm:$0xff]   ;;  %v9132_v62 = vld [vmem:[%s9546_s28 + $0xb0] ss:$28 sps:$4 sm:$0xff]  }
  0xb7   : > { %2346 = vmatpush2.bf16.msra.mxu1 %v8303_v61  ;;  %2432 = vmatprep.subr.bf16.mxu0 %v8317_v0  ;;  %v8390_v61 = vld [vmem:[%s11972_s2 + $0x58c] ss:$16 sps:$4 sm:$0xff]  }
  0xb8   : > { %2347 = vmatprep.subr.bf16.mxu1 %v8313_v63  ;;  %v9133_v63 = vld [vmem:[%s9546_s28 + $0x118] ss:$28 sps:$4 sm:$0xff]   ;;  %v9134_v0 = vld [vmem:[%s9546_s28 + $0xec] ss:$28 sps:$4 sm:$0xff]  }
  0xb9   : > { %2210 = vmatmul.mubr.bf16.gmra.mxu0 %v8314_v2  ;;  %v8391_v2 = vld [vmem:[%s11972_s2 + $0x568] ss:$16 sps:$4 sm:$0xff]  }
  0xba   : > { %2433 = vmatpush2.bf16.msra.mxu0 %v8315_v3  ;;  %2219 = vmatprep.mubr.bf16.mxu0 %v8325_v7  ;;  %v8396_v3 = vld [vmem:[%s11972_s2 + $0x54c] ss:$16 sps:$4 sm:$0xff]  }
  0xbb   : > { %2348 = vmatpush2.bf16.msra.mxu1 %v8311_v1  ;;  %2434 = vmatprep.subr.bf16.mxu0 %v8324_v6  ;;  %v9135_v1 = vld [vmem:[%s9546_s28 + $0x14] ss:$28 sps:$4 sm:$0xff]   ;;  %v9136_v6 = vld [vmem:[%s9546_s28 + $0xe8] ss:$28 sps:$4 sm:$0xff]   ;;  %v8399_v7 = vld [vmem:[%s11972_s2 + $0x52c] ss:$16 sps:$4 sm:$0xff]  }
  0xbc   : > { %2349 = vmatprep.subr.bf16.mxu1 %v8321_v5  ;;  %v8394_v5 = vld [vmem:[%s11972_s2 + $0x548] ss:$16 sps:$4 sm:$0xff]  }
  0xbe   : > { %2435 = vmatpush2.bf16.msra.mxu0 %v8322_v8  ;;  %v8397_v8 = vld [vmem:[%s11972_s2 + $0x528] ss:$16 sps:$4 sm:$0xff]  }
  0xbf   : > { %2350 = vmatpush2.bf16.msra.mxu1 %v8319_v49  ;;  %2436 = vmatprep.subr.bf16.mxu0 %v8333_v11  ;;  %v9137_v49 = vld [vmem:[%s9546_s28 + $0x124] ss:$28 sps:$4 sm:$0xff]   ;;  %v8400_v11 = vld [vmem:[%s11972_s2 + $0x508] ss:$16 sps:$4 sm:$0xff]  }
  0xc0   : > { %2351 = vmatprep.subr.bf16.mxu1 %v8329_v10  ;;  %v8402_v10 = vld [vmem:[%s11972_s2 + $0x50c] ss:$16 sps:$4 sm:$0xff]  }
  0xc1   : > { %2220 = vmatmul.mubr.bf16.gmra.mxu0 %v8330_v12  ;;  %v9138_v12 = vld [vmem:[%s9546_s28 + $0x120] ss:$28 sps:$4 sm:$0xff]  }
  0xc2   : > { %2437 = vmatpush2.bf16.msra.mxu0 %v8331_v15  ;;  %2448 = vmatprep.mubr.bf16.mxu0 %v9125_v27  ;;  %v8405_v15 = vld [vmem:[%s11974_s4 + $0x70] sm:$0xff]  }
  0xc3   : > { %2352 = vmatpush2.bf16.msra.mxu1 %v8327_v14  ;;  %2438 = vmatprep.subr.bf16.mxu0 %v8339_v18  ;;  %v8404_v14 = vld [vmem:[%s11974_s4 + $0x38] sm:$0xff]   ;;  %v9143_v27 = vld [vmem:[%s9546_s28 + $0x50] ss:$28 sps:$4 sm:$0xff]  }
  0xc4   : > { %2353 = vmatprep.subr.bf16.mxu1 %v8336_v16  ;;  %v9139_v16 = vld [vmem:[%s9546_s28 + $0x10] ss:$28 sps:$4 sm:$0xff]   ;;  %v9140_v18 = vld [vmem:[%s9546_s28 + $0x18] ss:$28 sps:$4 sm:$0xff]  }
  0xc6   : > { %2439 = vmatpush2.bf16.msra.mxu0 %v8337_v20  ;;  %v9141_v20 = vld [vmem:[%s9546_s28 + $0x4c] ss:$28 sps:$4 sm:$0xff]  }
  0xc7   : > { %2354 = vmatpush2.bf16.msra.mxu1 %v8334_v19  ;;  %2440 = vmatprep.subr.bf16.mxu0 %v8345_v23  ;;  %v8406_v19 = vld [vmem:[%s11974_s4 + $0x30] sm:$0xff]   ;;  %v8408_v23 = vld [vmem:[%s11974_s4 + $0x28] sm:$0xff]  }
  0xc8   : > { %2509 = vmatprep.subr.bf16.mxu1 %v8342_v21  ;;  %v8407_v21 = vld [vmem:[%s11974_s4 + $0x68] sm:$0xff]  }
  0xca   : > { %2356 = vmatmul.mubr.bf16.vlgmr.msra.gmra.mxu1 %v9617_v4  ;;  %2441 = vmatpush2.bf16.msra.mxu0 %v8343_v25  ;;  %v8355_v4 = vld [vmem:[%s11972_s2 + $0x328] ss:$16 sps:$4 sm:$0xff]  }
  0xcb   : > { %2510 = vmatpush1.bf16.msra.mxu1 %v8340_v24  ;;  %2442 = vmatprep.subr.bf16.mxu0 %v8351_v29  ;;  %v8409_v24 = vld [vmem:[%s11974_s4 + $0x60] sm:$0xff]  }
  0xcc   : > { %2511 = vmatprep.subr.bf16.mxu1 %v8348_v28  ;;  %2365 = vmatprep.mubr.bf16.mxu1 %v9630_v9  ;;  %v8358_v9 = vld [vmem:[%s11972_s2 + $0x488] ss:$16 sps:$4 sm:$0xff]   ;;  %v8410_v28 = vld [vmem:[%s11974_s4 + $0x20] sm:$0xff]  }
  0xcd   : > { %v9142_v25 = vld [vmem:[%s9546_s28 + $0x48] ss:$28 sps:$4 sm:$0xff]  }
  0xce   : > { %2443 = vmatpush2.bf16.msra.mxu0 %v8349_v32  ;;  %v9144_v29 = vld [vmem:[%s9546_s28 + $0x84] ss:$28 sps:$4 sm:$0xff]   ;;  %v8412_v32 = vld [vmem:[%s11974_s4 + $0x18] sm:$0xff]  }
  0xcf   : > { %2512 = vmatpush1.bf16.msra.mxu1 %v8346_v31  ;;  %2444 = vmatprep.subr.bf16.mxu0 %v8357_v35  ;;  %v8411_v31 = vld [vmem:[%s11974_s4 + $0x58] sm:$0xff]  }
  0xd0   : > { %2513 = vmatprep.subr.bf16.mxu1 %v8354_v33  ;;  %v8413_v33 = vld [vmem:[%s11974_s4 + $0x50] sm:$0xff]   ;;  %v9145_v35 = vld [vmem:[%s9546_s28 + $0x80] ss:$28 sps:$4 sm:$0xff]  }
  0xd2   : > { %2366 = vmatmul.mubr.bf16.gmra.mxu1 %v9642_v13  ;;  %2445 = vmatpush2.bf16.msra.mxu0 %v8355_v4  ;;  %v8372_v13 = vld [vmem:[%s11972_s2 + $0x44c] ss:$16 sps:$4 sm:$0xff]  }
  0xd3   : > { %2514 = vmatpush1.bf16.msra.mxu1 %v8352_v36  ;;  %2446 = vmatprep.subr.bf16.mxu0 %v8363_v39  ;;  %v8414_v39 = vld [vmem:[%s11974_s4 + $0x10] sm:$0xff]  }
  0xd4   : > { %2515 = vmatprep.subr.bf16.mxu1 %v8360_v38  ;;  %2375 = vmatprep.mubr.bf16.mxu1 %v9652_v17  ;;  %v8375_v17 = vld [vmem:[%s11972_s2 + $0x42c] ss:$16 sps:$4 sm:$0xff]   ;;  %v9146_v38 = vld [vmem:[%s9546_s28 + $0x88] ss:$28 sps:$4 sm:$0xff]  }
  0xd6   : > { %2447 = vmatpush2.bf16.msra.mxu0 %v8361_v40  ;;  %v8415_v40 = vld [vmem:[%s11974_s4 + $0x48] sm:$0xff]  }
  0xd7   : > { %2516 = vmatpush1.bf16.msra.mxu1 %v8358_v9  ;;  %2616 = vmatprep.subr.bf16.mxu0 %v8369_v43  ;;  %v9147_v9 = vld [vmem:[%s9546_s28 + $0xbc] ss:$28 sps:$4 sm:$0xff]  }
  0xd8   : > { %2517 = vmatprep.subr.bf16.mxu1 %v8366_v42 }
  0xd9   : > { %2449 = vmatmul.mubr.bf16.vlgmr.msra.gmra.mxu0 %v9126_v48 }
  0xda   : > { %2376 = vmatmul.mubr.bf16.gmra.mxu1 %v9667_v22  ;;  %2617 = vmatpush1.bf16.msra.mxu0 %v8367_v45  ;;  %v8376_v22 = vld [vmem:[%s11972_s2 + $0x408] ss:$16 sps:$4 sm:$0xff]  }
  0xdb   : > { %2518 = vmatpush1.bf16.msra.mxu1 %v8364_v44  ;;  %2458 = vmatprep.mubr.bf16.mxu0 %v9127_v50 }
  0xdc   : > { %2519 = vmatprep.subr.bf16.mxu1 %v8372_v13  ;;  %2385 = vmatprep.mubr.bf16.mxu1 %v9677_v26  ;;  %v9129_v26 = vld [vmem:[%s9546_s28 + $0x7c] ss:$28 sps:$4 sm:$0xff]   ;;  %v8416_v13 = vld [vmem:[%s11974_s4 + $0x8] sm:$0xff]  }
  0xdd   : > { %7729 = vmatprep.subr.bf16.mxu0 %v8403_v47 }
  0xdf   : > { %2520 = vmatpush1.bf16.msra.mxu1 %v8370_v46  ;;  %v8417_v46 = vld [vmem:[%s11974_s4 + $0x40] sm:$0xff]  }
  0xe0   : > { %2521 = vmatprep.subr.bf16.mxu1 %v8375_v17  ;;  %v9148_v17 = vld [vmem:[%s9546_s28 + $0xb8] ss:$28 sps:$4 sm:$0xff]  }
  0xe1   : > { %2459 = vmatmul.mubr.bf16.gmra.mxu0 %v9128_v54  ;;  %v9150_v54 = vld [vmem:[%s9546_s28 + $0xf4] ss:$28 sps:$4 sm:$0xff]  }
  0xe2   : > { %2386 = vmatmul.mubr.bf16.gmra.mxu1 %v9689_v30  ;;  %2468 = vmatprep.mubr.bf16.mxu0 %v9129_v26  ;;  %v8382_v30 = vld [vmem:[%s11972_s2 + $0x5c8] ss:$16 sps:$4 sm:$0xff]  }
  0xe3   : > { %2522 = vmatpush1.bf16.msra.mxu1 %v8373_v51  ;;  %2395 = vmatprep.mubr.bf16.mxu1 %v9699_v34  ;;  %v8387_v34 = vld [vmem:[%s11972_s2 + $0x5ac] ss:$16 sps:$4 sm:$0xff]  }
  0xe4   : > { %2523 = vmatprep.subr.bf16.mxu1 %v8378_v52  ;;  %v9149_v52 = vld [vmem:[%s9546_s28 + $0xc0] ss:$28 sps:$4 sm:$0xff]  }
  0xe7   : > { %2524 = vmatpush1.bf16.msra.mxu1 %v8376_v22  ;;  %v8418_v22 = vld [vmem:[%s11974_s4] sm:$0xff]  }
  0xe8   : > { %2525 = vmatprep.subr.bf16.mxu1 %v8381_v55 }
  0xe9   : > { %2469 = vmatmul.mubr.bf16.gmra.mxu0 %v9130_v58 }
  0xea   : > { %2396 = vmatmul.mubr.bf16.gmra.mxu1 %v9708_v37  ;;  %2478 = vmatprep.mubr.bf16.mxu0 %v9131_v59  ;;  %v8388_v37 = vld [vmem:[%s11972_s2 + $0x588] ss:$16 sps:$4 sm:$0xff]   ;;  %v9151_v59 = vld [vmem:[%s9546_s28 + $0xf0] ss:$28 sps:$4 sm:$0xff]  }
  0xeb   : > { %2526 = vmatpush2.bf16.msra.mxu1 %v8379_v56  ;;  %2405 = vmatprep.mubr.bf16.mxu1 %v9718_v41  ;;  %v8393_v41 = vld [vmem:[%s11972_s2 + $0x56c] ss:$16 sps:$4 sm:$0xff]  }
  0xec   : > { %2527 = vmatprep.subr.bf16.mxu1 %v8384_v57 }
  0xef   : > { %2528 = vmatpush2.bf16.msra.mxu1 %v8382_v30 }
  0xf0   : > { %2529 = vmatprep.subr.bf16.mxu1 %v8387_v34  ;;  %v8419_v34 = vld [vmem:[%s11974_s4 + $0xf8] sm:$0xff]  }
  0xf1   : > { %2479 = vmatmul.mubr.bf16.gmra.mxu0 %v9132_v62  ;;  %v9153_v62 = vld [vmem:[%s9546_s28 + $0x12c] ss:$28 sps:$4 sm:$0xff]  }
  0xf2   : > { %2406 = vmatmul.mubr.bf16.gmra.mxu1 %v9133_v63  ;;  %2488 = vmatprep.mubr.bf16.mxu0 %v9134_v0 }
  0xf3   : > { %2530 = vmatpush2.bf16.msra.mxu1 %v8385_v60  ;;  %2541 = vmatprep.mubr.bf16.mxu1 %v9135_v1 }
  0xf4   : > { %2531 = vmatprep.subr.bf16.mxu1 %v8390_v61 }
  0xf7   : > { %2532 = vmatpush2.bf16.msra.mxu1 %v8388_v37  ;;  %v9152_v37 = vld [vmem:[%s9546_s28 + $0xf8] ss:$28 sps:$4 sm:$0xff]  }
  0xf8   : > { %2533 = vmatprep.subr.bf16.mxu1 %v8393_v41  ;;  %v8420_v41 = vld [vmem:[%s11974_s4 + $0xb8] sm:$0xff]  }
  0xf9   : > { %2489 = vmatmul.mubr.bf16.gmra.mxu0 %v9136_v6 }
  0xfa   : > { %2498 = vmatprep.mubr.bf16.mxu0 %v9137_v49  ;;  %v9154_v49 = vld [vmem:[%s9546_s28 + $0x128] ss:$28 sps:$4 sm:$0xff]  }
  0xfb   : > { %2534 = vmatpush2.bf16.msra.mxu1 %v8391_v2 }
  0xfc   : > { %2535 = vmatprep.subr.bf16.mxu1 %v8396_v3  ;;  %v8421_v3 = vld [vmem:[%s11974_s4 + $0xf0] sm:$0xff]  }
  0xff   : > { %2536 = vmatpush2.bf16.msra.mxu1 %v8394_v5 }
 0x100   : > { %2537 = vmatprep.subr.bf16.mxu1 %v8399_v7  ;;  %v8422_v7 = vld [vmem:[%s11974_s4 + $0xb0] sm:$0xff]  }
 0x101   : > { %2499 = vmatmul.mubr.bf16.gmra.mxu0 %v9138_v12 }
 0x102   : > { %2634 = vmatprep.mubr.bf16.mxu0 %v11986_v53 }
 0x103   : > { %2538 = vmatpush2.bf16.msra.mxu1 %v8397_v8 }
 0x104   : > { %2539 = vmatprep.subr.bf16.mxu1 %v8402_v10 }
 0x107   : > { %2540 = vmatpush2.bf16.msra.mxu1 %v8400_v11  ;;  %v9155_v11 = vld [vmem:[%s9546_s28 + $0x130] ss:$28 sps:$4 sm:$0xff]  }
 0x108   : > { %7781 = vmatprep.subr.bf16.mxu1 %v8419_v34 }
 0x109   : > { %7246 = vmatmul.mubr.msk.bf16.vlgmr.msra.gmra.mxu0 %vm1932_vm0, %v9140_v18 }
 0x10a   : > { %2542 = vmatmul.mubr.bf16.vlgmr.msra.gmra.mxu1 %v9139_v16  ;;  %2644 = vmatprep.mubr.bf16.mxu0 %v11986_v53 }
 0x10b   : > { %2551 = vmatprep.mubr.bf16.mxu1 %v9141_v20  ;;  %7730 = vmatpush3.bf16.msra.mxu0 %v8404_v14 }
 0x10c   : > { %7731 = vmatprep.subr.bf16.mxu0 %v8405_v15  ;;  %7782 = vmatpush3.bf16.msra.mxu1 %v8420_v41  ;;  %v8423_v15 = vld [vmem:[%s11974_s4 + $0xe8] sm:$0xff]  }
 0x10d   : > { %7783 = vmatprep.subr.bf16.mxu1 %v8421_v3 }
 0x10f   : > { %7732 = vmatpush3.bf16.msra.mxu0 %v8406_v19  ;;  %v8424_v19 = vld [vmem:[%s11974_s4 + $0xa8] sm:$0xff]  }
 0x110   : > { %7733 = vmatprep.subr.bf16.mxu0 %v8407_v21  ;;  %7784 = vmatpush3.bf16.msra.mxu1 %v8422_v7 }
 0x111   : > { %7247 = vmatmul.mubr.msk.bf16.gmra.mxu0 %vm1932_vm0, %v9143_v27  ;;  %7785 = vmatprep.subr.bf16.mxu1 %v8423_v15  ;;  %v10332_v15 = vld [vmem:[%s11973_s3] sm:$0xf] }
 0x112   : > { %2552 = vmatmul.mubr.bf16.gmra.mxu1 %v9142_v25  ;;  %2654 = vmatprep.mubr.bf16.mxu0 %v11986_v53  ;;  %12020 = vst [vmem:[#allocation20_spill] sm:$0xff] %v10332_v15 }
 0x113   : > { %2561 = vmatprep.mubr.bf16.mxu1 %v9144_v29  ;;  %7734 = vmatpush3.bf16.msra.mxu0 %v8408_v23 }
 0x114   : > { %7735 = vmatprep.subr.bf16.mxu0 %v8409_v24  ;;  %7786 = vmatpush3.bf16.msra.mxu1 %v8424_v19  ;;  %v8425_v24 = vld [vmem:[%s11974_s4 + $0xe0] sm:$0xff]   ;;  %v8432_v19 = vld [vmem:[%s11974_s4 + $0x88] sm:$0xff]  }
 0x115   : > { %7787 = vmatprep.subr.bf16.mxu1 %v8425_v24 }
 0x117   : > { %7736 = vmatpush3.bf16.msra.mxu0 %v8410_v28  ;;  %v8426_v28 = vld [vmem:[%s11974_s4 + $0xa0] sm:$0xff]  }
 0x118   : > { %7737 = vmatprep.subr.bf16.mxu0 %v8411_v31  ;;  %7788 = vmatpush3.bf16.msra.mxu1 %v8426_v28 }
 0x119   : > { %v10158_v36 = vpop.f32.mrf.mxu0  ;;  %7248 = vmatmul.mubr.msk.bf16.gmra.mxu0 %vm1932_vm0, %v9146_v38  ;;  %v8428_v38 = vld [vmem:[%s11974_s4 + $0x98] sm:$0xff]  }
 0x11a   : > { %2562 = vmatmul.mubr.bf16.gmra.mxu1 %v9145_v35  ;;  %v10160_v4 = vpop.f32.mrf.mxu1  ;;  %2664 = vmatprep.mubr.bf16.mxu0 %v11986_v53 }
 0x11b   : > { %2571 = vmatprep.mubr.bf16.mxu1 %v9147_v9  ;;  %v10172_v42 = vpop.f32.mrf.mxu0  ;;  %7738 = vmatpush3.bf16.msra.mxu0 %v8412_v32 }
 0x11c   : > { %v10174_v43 = vpop.f32.mrf.mxu1  ;;  %7739 = vmatprep.subr.bf16.mxu0 %v8413_v33  ;;  %v8427_v33 = vld [vmem:[%s11974_s4 + $0xd8] sm:$0xff]  }
 0x11d   : > { %v10176_v44 = vpop.f32.mrf.mxu0  ;;  %7789 = vmatprep.subr.bf16.mxu1 %v8427_v33 }
 0x11e   : > { %v10178_v45 = vpop.f32.mrf.mxu1  ;;  %7790 = vmatpush3.bf16.msra.mxu1 %v8428_v38 }
 0x11f   : > { %v10186_v47 = vpop.f32.mrf.mxu0  ;;  %7740 = vmatpush3.bf16.msra.mxu0 %v8414_v39 }
 0x120   : > { %v10188_v48 = vpop.f32.mrf.mxu1  ;;  %7741 = vmatprep.subr.bf16.mxu0 %v8415_v40 }
 0x121   : > { %v10191_v50 = vpop.f32.mrf.mxu0  ;;  %7249 = vmatmul.mubr.msk.bf16.gmra.mxu0 %vm1932_vm0, %v9149_v52 }
 0x122   : > { %2572 = vmatmul.mubr.bf16.gmra.mxu1 %v9148_v17  ;;  %v10193_v51 = vpop.f32.mrf.mxu1  ;;  %2674 = vmatprep.mubr.bf16.mxu0 %v11986_v53 }
 0x123   : > { %2581 = vmatprep.mubr.bf16.mxu1 %v9150_v54  ;;  %v10202_v55 = vpop.f32.mrf.mxu0  ;;  %7742 = vmatpush3.bf16.msra.mxu0 %v8416_v13  ;;  %v8429_v13 = vld [vmem:[%s11974_s4 + $0xd0] sm:$0xff]  }
 0x124   : > { %v10204_v26 = vpop.f32.mrf.mxu1  ;;  %7743 = vmatprep.subr.bf16.mxu0 %v8417_v46  ;;  %v722_v46 = vlaneseq  ;;  %7791 = vmatprep.subr.bf16.mxu1 %v8429_v13 }
 0x125   : > { %v10206_v56 = vpop.f32.mrf.mxu0 }
 0x126   : > { %v10208_v57 = vpop.f32.mrf.mxu1  ;;  %v10314_v34 = vshrl.u32 %v722_v46, 7  ;;  %v8433_v46 = vld [vmem:[%s11974_s4 + $0xc0] sm:$0xff]  }
 0x127   : > { %v10210_v30 = vpop.f32.mrf.mxu0  ;;  %7744 = vmatpush3.bf16.msra.mxu0 %v8418_v22  ;;  %v8430_v22 = vld [vmem:[%s11974_s4 + $0x90] sm:$0xff]  }
 0x128   : > { %v10212_v58 = vpop.f32.mrf.mxu1  ;;  %7792 = vmatpush3.bf16.msra.mxu1 %v8430_v22  ;;  %12015 = vst [vmem:[#allocation15_spill] sm:$0xff] %v10314_v34  ;;  %v10319_v41 = vsub.s32 1, %v10314_v34  ;;  %v10322_v3 = vsub.s32 0, %v10314_v34  ;;  %v8434_v22 = vld [vmem:[%s11974_s4 + $0x80] sm:$0xff]  }
 0x129   : > { %v10218_v60 = vpop.f32.mrf.mxu0  ;;  %7250 = vmatmul.mubr.msk.bf16.gmra.mxu0 %vm1932_vm0, %v9152_v37 }
 0x12a   : > { %2582 = vmatmul.mubr.bf16.gmra.mxu1 %v9151_v59  ;;  %v10220_v61 = vpop.f32.mrf.mxu1  ;;  %2684 = vmatprep.mubr.bf16.mxu0 %v11986_v53  ;;  %12017 = vst [vmem:[#allocation17_spill] sm:$0xff] %v10319_v41  ;;  %12018 = vst [vmem:[#allocation18_spill] sm:$0xff] %v10322_v3  ;;  %v10341_v28 = vrot.slane %v10332_v15, %v10319_v41  ;;  %v10345_v33 = vrot.slane %v10332_v15, %v10322_v3 }
 0x12b   : > { %2591 = vmatprep.mubr.bf16.mxu1 %v9153_v62  ;;  %v10229_v63 = vpop.f32.mrf.mxu0 }
 0x12c   : > { %v10231_v0 = vpop.f32.mrf.mxu1  ;;  %v1986_v53 = vadd.f32 %v10158_v36, %v10345_v33  ;;  %v1990_v15 = vadd.f32 %v10176_v44, %v10345_v33 }
 0x12d   : > { %v10233_v1 = vpop.f32.mrf.mxu0 }
 0x12e   : > { %v10235_v2 = vpop.f32.mrf.mxu1  ;;  %v2083_v36 = vadd.f32 %v10178_v45, %v1990_v15  ;;  %v2000_v45 = vadd.f32 %v10206_v56, %v10345_v33 }
 0x12f   : > { %v10240_v5 = vpop.f32.mrf.mxu0 }
 0x130   : > { %v10242_v6 = vpop.f32.mrf.mxu1  ;;  %v2093_v56 = vadd.f32 %v10208_v57, %v2000_v45  ;;  %v2010_v45 = vadd.f32 %v10233_v1, %v10345_v33 }
 0x131   : > { %v10248_v8 = vpop.f32.mrf.mxu0  ;;  %7251 = vmatmul.mubr.msk.bf16.gmra.mxu0 %vm1932_vm0, %v9155_v11  ;;  %v8431_v11 = vld [vmem:[%s11974_s4 + $0xc8] sm:$0xff]  }
 0x132   : > { %2592 = vmatmul.mubr.bf16.gmra.mxu1 %v9154_v49  ;;  %v10250_v10 = vpop.f32.mrf.mxu1  ;;  %7793 = vmatprep.subr.bf16.mxu1 %v8431_v11  ;;  %v2103_v1 = vadd.f32 %v10235_v2, %v2010_v45 }
 0x133   : > { %v10254_v12 = vpop.f32.mrf.mxu0  ;;  %7794 = vmatpush3.bf16.msra.mxu1 %v8432_v19  ;;  %v1988_v19 = vadd.f32 %v10172_v42, %v10341_v28  ;;  %v2079_v42 = vadd.f32 %v10160_v4, %v1986_v53 }
 0x134   : > { %v10256_v14 = vpop.f32.mrf.mxu1  ;;  %7795 = vmatprep.subr.bf16.mxu1 %v8433_v46  ;;  %v1992_v46 = vadd.f32 %v10186_v47, %v10341_v28  ;;  %v1996_v47 = vadd.f32 %v10191_v50, %v10345_v33 }
 0x135   : > { %v10261_v16 = vpop.f32.mrf.mxu0 }
 0x136   : > { %v10263_v18 = vpop.f32.mrf.mxu1  ;;  %v2085_v44 = vadd.f32 %v10188_v48, %v1992_v46  ;;  %v2089_v50 = vadd.f32 %v10193_v51, %v1996_v47  ;;  %v2020_v2 = vadd.f32 %v10261_v16, %v10345_v33 }
 0x137   : > { %v10268_v20 = vpop.f32.mrf.mxu0  ;;  %7796 = vmatpush3.bf16.msra.mxu1 %v8434_v22 }
 0x138   : > { %v10270_v21 = vpop.f32.mrf.mxu1 }
 0x139   : > { %v10277_v25 = vpop.f32.mrf.mxu0 }
 0x13a   : > { %v10272_v23 = vpop.f32.mrf.mxu1 }
 0x13b   : > { %v10286_v31 = vpop.f32.mrf.mxu0 }
 0x13c   : > { %v10279_v27 = vpop.f32.mrf.mxu1 }
 0x13d   : > { %v10298_v39 = vpop.f32.mrf.mxu0 }
 0x13e   : > { %v10284_v29 = vpop.f32.mrf.mxu1 }
 0x13f   : > { %v10307_v17 = vpop.f32.mrf.mxu0 }
 0x140   : > { %v10288_v32 = vpop.f32.mrf.mxu1 }
 0x141   : > { %12010 = vst [vmem:[#allocation10_spill] sm:$0xff] %v10288_v32  ;;  %v10316_v59 = vpop.f32.mrf.mxu0 }
 0x142   : > { %v10293_v35 = vpop.f32.mrf.mxu1  ;;  %12016 = vst [vmem:[#allocation16_spill] sm:$0xff] %v10316_v59 }
 0x143   : > { %12011 = vst [vmem:[#allocation11_spill] sm:$0xff] %v10293_v35  ;;  %v10324_v7 = vpop.f32.mrf.mxu0 }
 0x144   : > { %v10300_v9 = vpop.f32.mrf.mxu1  ;;  %12019 = vst [vmem:[#allocation19_spill] sm:$0xff] %v10324_v7 }
 0x145   : > { %12012 = vst [vmem:[#allocation12_spill] sm:$0xff] %v10300_v9  ;;  %v10347_v38 = vpop.f32.mrf.mxu0 }
 0x146   : > { %v10302_v40 = vpop.f32.mrf.mxu1  ;;  %12021 = vst [vmem:[#allocation21_spill] sm:$0xff] %v10347_v38 }
 0x147   : > { %12013 = vst [vmem:[#allocation13_spill] sm:$0xff] %v10302_v40  ;;  %v10359_v3 = vpop.f32.mrf.mxu0  ;;  %v2081_v40 = vadd.f32 %v10174_v43, %v1988_v19  ;;  %v1998_v43 = vadd.f32 %v10202_v55, %v10341_v28  ;;  %v2002_v55 = vadd.f32 %v10210_v30, %v10341_v28  ;;  %v2008_v30 = vadd.f32 %v10229_v63, %v10341_v28 }
 0x148   : > { %v10309_v52 = vpop.f32.mrf.mxu1  ;;  %12022 = vst [vmem:[#allocation22_spill] sm:$0xff] %v10359_v3 }
 0x149   : > { %12014 = vst [vmem:[#allocation14_spill] sm:$0xff] %v10309_v52  ;;  %v2091_v48 = vadd.f32 %v10204_v26, %v1998_v43  ;;  %v2095_v26 = vadd.f32 %v10212_v58, %v2002_v55  ;;  %v2006_v43 = vadd.f32 %v10218_v60, %v10345_v33  ;;  %v2101_v63 = vadd.f32 %v10231_v0, %v2008_v30 }
 0x14a   : > { %v2264_v54 = vpop.f32.mrf.mxu1  ;;  %v2012_v60 = vadd.f32 %v10240_v5, %v10341_v28  ;;  %v2018_v5 = vadd.f32 %v10254_v12, %v10341_v28 }
 0x14c   : > { %v2266_v37 = vpop.f32.mrf.mxu1  ;;  %v2105_v0 = vadd.f32 %v10242_v6, %v2012_v60  ;;  %v2111_v30 = vadd.f32 %v10256_v14, %v2018_v5  ;;  %v12024_v5 = vld [vmem:[#allocation19_spill] sm:$0xff] }
 0x14e   : > { %v2268_v62 = vpop.f32.mrf.mxu1 }
 0x150   : > { %v2270_v49 = vpop.f32.mrf.mxu1 }
 0x152   : > { %v10337_v24 = vpop.f32.mrf.mxu1 }
 0x154   : > { %v2276_v13 = vpop.f32.mrf.mxu1 }
 0x156   : > { %v2278_v11 = vpop.f32.mrf.mxu1 }
 0x158   : > { %v2280_v41 = vpop.f32.mrf.mxu1 }
 0x159   : > { %v2171_v34 = vpop.f32.mrf.mxu0 }
 0x15a   : > { %v10363_v52 = vpop.f32.mrf.mxu1  ;;  %v2172_v9 = vadd.f32 %v2171_v34, %v2079_v42 }
 0x15b   : > { %v2173_v22 = vpop.f32.mrf.mxu0 }
 0x15c   : > { %v10369_v35 = vpop.f32.mrf.mxu1  ;;  %v2174_v3 = vadd.f32 %v2173_v22, %v2081_v40  ;;  %v2265_v42 = vadd.f32 %v2264_v54, %v2172_v9 }
 0x15d   : > { %v2175_v38 = vpop.f32.mrf.mxu0 }
 0x15e   : > { %v10372_v59 = vpop.f32.mrf.mxu1  ;;  %v2176_v19 = vadd.f32 %v2175_v38, %v2083_v36  ;;  %v2267_v40 = vadd.f32 %v2266_v37, %v2174_v3  ;;  %v2695_v54 = vmax.f32 %v2265_v42, 0.0 }
 0x15f   : > { %v2177_v53 = vpop.f32.mrf.mxu0 }
 0x160   : > { %v10379_v4 = vpop.f32.mrf.mxu1  ;;  %v2269_v34 = vadd.f32 %v2268_v62, %v2176_v19  ;;  %v2178_v15 = vadd.f32 %v2177_v53, %v2085_v44  ;;  %v2696_v37 = vmax.f32 %v2267_v40, 0.0 }
 0x161   : > { %v2181_v22 = vpop.f32.mrf.mxu0 }
 0x162   : > { %v10383_v7 = vpop.f32.mrf.mxu1  ;;  %v2271_v38 = vadd.f32 %v2270_v49, %v2178_v15  ;;  %v2699_v46 = vmax.f32 %v2269_v34, 0.0  ;;  %v2182_v3 = vadd.f32 %v2181_v22, %v2089_v50 }
 0x163   : > { %v2183_v36 = vpop.f32.mrf.mxu0 }
 0x164   : > { %v10389_v32 = vpop.f32.mrf.mxu1  ;;  %v2700_v62 = vmax.f32 %v2271_v38, 0.0  ;;  %v2184_v9 = vadd.f32 %v2183_v36, %v2091_v48  ;;  %v2743_v47 = vpack.c.bf16 %v2699_v46, %v2695_v54  ;;  %v2275_v58 = vadd.f32 %v10337_v24, %v2182_v3 }
 0x165   : > { %v2185_v44 = vpop.f32.mrf.mxu0  ;;  %v2099_v48 = vadd.f32 %v10220_v61, %v2006_v43  ;;  %v2016_v61 = vadd.f32 %v10248_v8, %v10345_v33  ;;  %v2022_v8 = vadd.f32 %v10268_v20, %v10341_v28  ;;  %v2028_v20 = vadd.f32 %v10286_v31, %v10341_v28 }
 0x166   : > { %v10392_v19 = vpop.f32.mrf.mxu1  ;;  %v2186_v51 = vadd.f32 %v2185_v44, %v2093_v56  ;;  %v2744_v49 = vpack.c.bf16 %v2700_v62, %v2696_v37  ;;  %v2277_v40 = vadd.f32 %v2276_v13, %v2184_v9  ;;  %v2703_v24 = vmax.f32 %v2275_v58, 0.0 }
 0x167   : > { %v2187_v57 = vpop.f32.mrf.mxu0  ;;  %v2115_v14 = vadd.f32 %v10270_v21, %v2022_v8 }
 0x168   : > { %v10399_v53 = vpop.f32.mrf.mxu1  ;;  %v2279_v34 = vadd.f32 %v2278_v11, %v2186_v51  ;;  %v2188_v15 = vadd.f32 %v2187_v57, %v2095_v26  ;;  %3062 = vmatprep.mubr.bf16.mxu0 %v2744_v49  ;;  %v2704_v13 = vmax.f32 %v2277_v40, 0.0  ;;  %v2109_v49 = vadd.f32 %v10250_v10, %v2016_v61 }
 0x169   : > { %v2191_v42 = vpop.f32.mrf.mxu0  ;;  %3063 = vmatmul.mubr.bf16.vlgmr.msra.gmra.mxu0 %v2743_v47  ;;  %v2026_v10 = vadd.f32 %v10277_v25, %v10345_v33  ;;  %v2032_v25 = vadd.f32 %v10307_v17, %v10341_v28  ;;  %v2038_v17 = vadd.f32 %v12024_v5, %v10341_v28 }
 0x16a   : > { %v2281_v22 = vadd.f32 %v2280_v41, %v2188_v15  ;;  %v2707_v55 = vmax.f32 %v2279_v34, 0.0  ;;  %v10408_v50 = vpop.f32.mrf.mxu1  ;;  %v2192_v36 = vadd.f32 %v2191_v42, %v2099_v48 }
 0x16b   : > { %v2193_v38 = vpop.f32.mrf.mxu0 }
 0x16c   : > { %v2708_v11 = vmax.f32 %v2281_v22, 0.0  ;;  %v2194_v46 = vadd.f32 %v2193_v38, %v2101_v63  ;;  %v2747_v9 = vpack.c.bf16 %v2707_v55, %v2703_v24  ;;  %v2306_v54 = vpop.f32.mrf.mxu1  ;;  %v2285_v6 = vadd.f32 %v10363_v52, %v2192_v36 }
 0x16d   : > { %v2195_v56 = vpop.f32.mrf.mxu0  ;;  %v2121_v55 = vadd.f32 %v10279_v27, %v2028_v20  ;;  %v12031_v20 = vld [vmem:[#allocation14_spill] sm:$0xff] }
 0x16e   : > { %v2196_v41 = vadd.f32 %v2195_v56, %v2103_v1  ;;  %v2748_v37 = vpack.c.bf16 %v2708_v11, %v2704_v13  ;;  %v2287_v3 = vadd.f32 %v10369_v35, %v2194_v46  ;;  %v2308_v35 = vpop.f32.mrf.mxu1  ;;  %v2711_v52 = vmax.f32 %v2285_v6, 0.0 }
 0x16f   : > { %v2197_v62 = vpop.f32.mrf.mxu0  ;;  %v2119_v1 = vadd.f32 %v10272_v23, %v2026_v10  ;;  %v12025_v23 = vld [vmem:[#allocation16_spill] sm:$0xff] }
 0x170   : > { %v2289_v44 = vadd.f32 %v10372_v59, %v2196_v41  ;;  %v2198_v26 = vadd.f32 %v2197_v62, %v2105_v0  ;;  %3070 = vmatprep.mubr.bf16.mxu0 %v2748_v37  ;;  %v2113_v59 = vadd.f32 %v10263_v18, %v2020_v2  ;;  %v2712_v47 = vmax.f32 %v2287_v3, 0.0  ;;  %v2310_v42 = vpop.f32.mrf.mxu1  ;;  %v12023_v0 = vld [vmem:[#allocation10_spill] sm:$0xff] }
 0x171   : > { %v2201_v12 = vpop.f32.mrf.mxu0  ;;  %3071 = vmatmul.mubr.bf16.gmra.mxu0 %v2747_v9  ;;  %v2030_v18 = vadd.f32 %v10298_v39, %v10345_v33  ;;  %v2125_v27 = vadd.f32 %v12023_v0, %v2032_v25  ;;  %v2036_v37 = vadd.f32 %v12025_v23, %v10345_v33 }
 0x172   : > { %v2291_v51 = vadd.f32 %v10379_v4, %v2198_v26  ;;  %v2715_v16 = vmax.f32 %v2289_v44, 0.0  ;;  %v2202_v40 = vadd.f32 %v2201_v12, %v2109_v49 }
 0x173   : > { %v2203_v43 = vpop.f32.mrf.mxu0 }
 0x174   : > { %v2716_v57 = vmax.f32 %v2291_v51, 0.0  ;;  %v2204_v45 = vadd.f32 %v2203_v43, %v2111_v30  ;;  %v2751_v63 = vpack.c.bf16 %v2715_v16, %v2711_v52  ;;  %v2295_v21 = vadd.f32 %v10383_v7, %v2202_v40  ;;  %v12027_v30 = vld [vmem:[#allocation12_spill] sm:$0xff]  ;;  %v12028_v51 = vld [vmem:[#allocation22_spill] sm:$0xff]  ;;  %v12029_v43 = vld [vmem:[#allocation11_spill] sm:$0xff] }
 0x175   : > { %v2205_v34 = vpop.f32.mrf.mxu0  ;;  %v2131_v8 = vadd.f32 %v12027_v30, %v2038_v17  ;;  %v2042_v49 = vadd.f32 %v12028_v51, %v10341_v28 }
 0x176   : > { %v2206_v15 = vadd.f32 %v2205_v34, %v2113_v59  ;;  %v2752_v4 = vpack.c.bf16 %v2716_v57, %v2712_v47  ;;  %v2297_v60 = vadd.f32 %v10389_v32, %v2204_v45  ;;  %v2314_v32 = vpop.f32.mrf.mxu1  ;;  %v2719_v7 = vmax.f32 %v2295_v21, 0.0 }
 0x177   : > { %v2207_v58 = vpop.f32.mrf.mxu0  ;;  %v2129_v59 = vadd.f32 %v12029_v43, %v2036_v37 }
 0x178   : > { %v2299_v22 = vadd.f32 %v10392_v19, %v2206_v15  ;;  %v2208_v48 = vadd.f32 %v2207_v58, %v2115_v14  ;;  %3078 = vmatprep.mubr.bf16.mxu0 %v2752_v4  ;;  %v2123_v19 = vadd.f32 %v10284_v29, %v2030_v18  ;;  %v2720_v11 = vmax.f32 %v2297_v60, 0.0  ;;  %v2316_v61 = vpop.f32.mrf.mxu1  ;;  %v12026_v29 = vld [vmem:[#allocation21_spill] sm:$0xff] }
 0x179   : > { %v2211_v31 = vpop.f32.mrf.mxu0  ;;  %3079 = vmatmul.mubr.bf16.gmra.mxu0 %v2751_v63  ;;  %v2040_v2 = vadd.f32 %v12026_v29, %v10345_v33  ;;  %v12030_v33 = vld [vmem:[#allocation13_spill] sm:$0xff]  ;;  %v2135_v15 = vadd.f32 %v12031_v20, %v2042_v49 }
 0x17a   : > { %v2301_v38 = vadd.f32 %v10399_v53, %v2208_v48  ;;  %v2723_v39 = vmax.f32 %v2299_v22, 0.0  ;;  %v2212_v36 = vadd.f32 %v2211_v31, %v2119_v1  ;;  %v2318_v57 = vpop.f32.mrf.mxu1 }
 0x17b   : > { %v2213_v13 = vpop.f32.mrf.mxu0 }
 0x17c   : > { %v2724_v46 = vmax.f32 %v2301_v38, 0.0  ;;  %v2214_v24 = vadd.f32 %v2213_v13, %v2121_v55  ;;  %v2755_v9 = vpack.c.bf16 %v2723_v39, %v2719_v7  ;;  %v2305_v6 = vadd.f32 %v10408_v50, %v2212_v36  ;;  %v2320_v28 = vpop.f32.mrf.mxu1 }
 0x17d   : > { %v2215_v56 = vpop.f32.mrf.mxu0 }
 0x17e   : > { %v2216_v41 = vadd.f32 %v2215_v56, %v2123_v19  ;;  %v2756_v53 = vpack.c.bf16 %v2724_v46, %v2720_v11  ;;  %v2307_v3 = vadd.f32 %v2306_v54, %v2214_v24  ;;  %v2133_v54 = vadd.f32 %v12030_v33, %v2040_v2 }
 0x17f   : > { %v2217_v62 = vpop.f32.mrf.mxu0  ;;  %v2727_v34 = vmax.f32 %v2305_v6, 0.0  ;;  %v12032_v24 = vmov 0  }
 0x180   : > { %v2309_v44 = vadd.f32 %v2308_v35, %v2216_v41  ;;  %v2218_v26 = vadd.f32 %v2217_v62, %v2125_v27  ;;  %3086 = vmatprep.mubr.bf16.mxu0 %v2756_v53  ;;  %v2728_v35 = vmax.f32 %v2307_v3, 0.0 }
 0x181   : > { %v2221_v12 = vpop.f32.mrf.mxu0  ;;  %3087 = vmatmul.mubr.bf16.gmra.mxu0 %v2755_v9 }
 0x182   : > { %v2311_v16 = vadd.f32 %v2310_v42, %v2218_v26  ;;  %v2731_v47 = vmax.f32 %v2309_v44, 0.0  ;;  %v2222_v50 = vadd.f32 %v2221_v12, %v2129_v59 }
 0x183   : > { %v2223_v45 = vpop.f32.mrf.mxu0 }
 0x184   : > { %v2732_v52 = vmax.f32 %v2311_v16, 0.0  ;;  %v2224_v40 = vadd.f32 %v2223_v45, %v2131_v8  ;;  %v2759_v58 = vpack.c.bf16 %v2731_v47, %v2727_v34  ;;  %v2315_v22 = vadd.f32 %v2314_v32, %v2222_v50  ;;  %v12033_v34 = vld [vmem:[#allocation15_spill] sm:$0xff] }
 0x185   : > { %v2225_v14 = vpop.f32.mrf.mxu0  ;;  %v10525_v50 = vsub.s32 3, %v12033_v34 }
 0x186   : > { %v2226_v4 = vadd.f32 %v2225_v14, %v2133_v54  ;;  %v2760_v10 = vpack.c.bf16 %v2732_v52, %v2728_v35  ;;  %v2317_v63 = vadd.f32 %v2316_v61, %v2224_v40  ;;  %v2735_v1 = vmax.f32 %v2315_v22, 0.0 }
 0x187   : > { %v2227_v42 = vpop.f32.mrf.mxu0  ;;  %12034 = vst [vmem:[#allocation10_spill] sm:$0xff] %v10525_v50  ;;  %v10528_v14 = vsub.s32 2, %v12033_v34 }
 0x188   : > { %v2319_v18 = vadd.f32 %v2318_v57, %v2226_v4  ;;  %v2228_v60 = vadd.f32 %v2227_v42, %v2135_v15  ;;  %3094 = vmatprep.mubr.bf16.mxu0 %v2760_v10  ;;  %v2736_v25 = vmax.f32 %v2317_v63, 0.0  ;;  %v12038_v10 = vld [vmem:[#allocation20_spill] sm:$0xff] }
 0x189   : > { %3095 = vmatmul.mubr.bf16.gmra.mxu0 %v2759_v58  ;;  %12035 = vst [vmem:[#allocation19_spill] sm:$0xff] %v10528_v14  ;;  %v10538_v58 = vrot.slane %v12038_v10, %v10525_v50 }
 0x18a   : > { %v10457_v48 = vpop.f32.mrf.mxu1  ;;  %v2321_v21 = vadd.f32 %v2320_v28, %v2228_v60  ;;  %v2739_v31 = vmax.f32 %v2319_v18, 0.0  ;;  %v10542_v28 = vrot.slane %v12038_v10, %v10528_v14 }
 0x18c   : > { %v2359_v55 = vpop.f32.mrf.mxu1  ;;  %v2740_v38 = vmax.f32 %v2321_v21, 0.0  ;;  %v2763_v19 = vpack.c.bf16 %v2739_v31, %v2735_v1  ;;  %v2358_v22 = vadd.f32 %v10457_v48, %v10542_v28 }
 0x18d   : > { %v2360_v60 = vadd.f32 %v2359_v55, %v10538_v58 }
 0x18e   : > { %v2361_v39 = vpop.f32.mrf.mxu1  ;;  %v2764_v13 = vpack.c.bf16 %v2740_v38, %v2736_v25 }
 0x18f   : > { %v2362_v25 = vadd.f32 %v2361_v39, %v10542_v28 }
 0x190   : > { %v2363_v11 = vpop.f32.mrf.mxu1  ;;  %3102 = vmatprep.mubr.bf16.mxu0 %v2764_v13 }
 0x191   : > { %3103 = vmatmul.mubr.bf16.gmra.mxu0 %v2763_v19  ;;  %v2364_v10 = vadd.f32 %v2363_v11, %v10538_v58 }
 0x192   : > { %v10459_v46 = vpop.f32.mrf.mxu1  ;;  %3440 = vmatprep.mubr.bf16.mxu0 %v12032_v24 }
 0x193   : > { %v2368_v48 = vadd.f32 %v10459_v46, %v10542_v28 }
 0x194   : > { %v2369_v32 = vpop.f32.mrf.mxu1 }
 0x195   : > { %v2370_v55 = vadd.f32 %v2369_v32, %v10538_v58 }
 0x196   : > { %v10462_v7 = vpop.f32.mrf.mxu1 }
 0x198   : > { %v10464_v36 = vpop.f32.mrf.mxu1 }
 0x199   : > { %v2450_v56 = vpop.f32.mrf.mxu0  ;;  %v2374_v32 = vadd.f32 %v10464_v36, %v10538_v58 }
 0x19a   : > { %v10466_v0 = vpop.f32.mrf.mxu1  ;;  %v2451_v1 = vadd.f32 %v2450_v56, %v2358_v22 }
 0x19b   : > { %v2452_v27 = vpop.f32.mrf.mxu0 }
 0x19c   : > { %v10468_v5 = vpop.f32.mrf.mxu1  ;;  %v2453_v38 = vadd.f32 %v2452_v27, %v2360_v60 }
 0x19d   : > { %v2454_v17 = vpop.f32.mrf.mxu0 }
 0x19e   : > { %v10470_v41 = vpop.f32.mrf.mxu1  ;;  %v2455_v34 = vadd.f32 %v2454_v17, %v2362_v25  ;;  %v2372_v17 = vadd.f32 %v10462_v7, %v10542_v28  ;;  %v2380_v7 = vadd.f32 %v10468_v5, %v10538_v58 }
 0x19f   : > { %v2456_v53 = vpop.f32.mrf.mxu0  ;;  %v2382_v5 = vadd.f32 %v10470_v41, %v10542_v28 }
 0x1a0   : > { %v10472_v23 = vpop.f32.mrf.mxu1 }
 0x1a1   : > { %v10474_v37 = vpop.f32.mrf.mxu0 }
 0x1a2   : > { %v10476_v61 = vpop.f32.mrf.mxu1 }
 0x1a3   : > { %v2462_v62 = vpop.f32.mrf.mxu0 }
 0x1a4   : > { %v10478_v9 = vpop.f32.mrf.mxu1 }
 0x1a5   : > { %v10480_v29 = vpop.f32.mrf.mxu0 }
 0x1a6   : > { %v10482_v2 = vpop.f32.mrf.mxu1 }
 0x1a7   : > { %v10484_v3 = vpop.f32.mrf.mxu0 }
 0x1a8   : > { %v10486_v44 = vpop.f32.mrf.mxu1 }
 0x1a9   : > { %v10488_v26 = vpop.f32.mrf.mxu0 }
 0x1aa   : > { %v10492_v12 = vpop.f32.mrf.mxu1 }
 0x1ab   : > { %v10490_v6 = vpop.f32.mrf.mxu0 }
 0x1ac   : > { %v10498_v51 = vpop.f32.mrf.mxu1 }
 0x1ad   : > { %v10494_v30 = vpop.f32.mrf.mxu0 }
 0x1ae   : > { %v10504_v43 = vpop.f32.mrf.mxu1 }
 0x1af   : > { %v10496_v8 = vpop.f32.mrf.mxu0 }
 0x1b0   : > { %v10510_v57 = vpop.f32.mrf.mxu1 }
 0x1b1   : > { %v10500_v49 = vpop.f32.mrf.mxu0 }
 0x1b2   : > { %v10514_v33 = vpop.f32.mrf.mxu1 }
 0x1b3   : > { %v10502_v16 = vpop.f32.mrf.mxu0 }
 0x1b4   : > { %v10520_v52 = vpop.f32.mrf.mxu1 }
 0x1b5   : > { %v10506_v59 = vpop.f32.mrf.mxu0 }
 0x1b6   : > { %v10532_v15 = vpop.f32.mrf.mxu1 }
 0x1b7   : > { %v10508_v47 = vpop.f32.mrf.mxu0 }
 0x1b8   : > { %v10546_v63 = vpop.f32.mrf.mxu1 }
 0x1b9   : > { %v10512_v45 = vpop.f32.mrf.mxu0  ;;  %12040 = vst [vmem:[#allocation22_spill] sm:$0xff] %v10546_v63 }
 0x1bb   : > { %v10516_v54 = vpop.f32.mrf.mxu0 }
 0x1bd   : > { %v10518_v35 = vpop.f32.mrf.mxu0 }
 0x1bf   : > { %v10522_v40 = vpop.f32.mrf.mxu0 }
 0x1c1   : > { %v10530_v20 = vpop.f32.mrf.mxu0 }
 0x1c2   : > { %12036 = vst [vmem:[#allocation16_spill] sm:$0xff] %v10530_v20 }
 0x1c3   : > { %v10534_v4 = vpop.f32.mrf.mxu0 }
 0x1c4   : > { %12037 = vst [vmem:[#allocation21_spill] sm:$0xff] %v10534_v4 }
 0x1c5   : > { %v10544_v42 = vpop.f32.mrf.mxu0 }
 0x1c6   : > { %12039 = vst [vmem:[#allocation12_spill] sm:$0xff] %v10544_v42  ;;  %v2457_v42 = vadd.f32 %v2456_v53, %v2364_v10 }
 0x1c7   : > { %v10548_v18 = vpop.f32.mrf.mxu0 }
 0x1c8   : > { %12041 = vst [vmem:[#allocation11_spill] sm:$0xff] %v10548_v18 }
 0x1c9   : > { %v2636_v31 = vpop.f32.mrf.mxu0 }
 0x1ca   : > { %v2543_v21 = vpop.f32.mrf.mxu1 }
 0x1cb   : > { %v2638_v19 = vpop.f32.mrf.mxu0  ;;  %v2544_v50 = vadd.f32 %v2543_v21, %v2451_v1  ;;  %v2463_v21 = vadd.f32 %v2462_v62, %v2370_v55  ;;  %v2467_v62 = vadd.f32 %v10484_v3, %v2374_v32  ;;  %v2473_v3 = vadd.f32 %v10490_v6, %v2380_v7 }
 0x1cc   : > { %v2545_v13 = vpop.f32.mrf.mxu1  ;;  %v2390_v6 = vadd.f32 %v10478_v9, %v10538_v58  ;;  %v2392_v9 = vadd.f32 %v10482_v2, %v10542_v28 }
 0x1cd   : > { %v2546_v14 = vadd.f32 %v2545_v13, %v2453_v38  ;;  %v2640_v18 = vpop.f32.mrf.mxu0  ;;  %v2637_v22 = vadd.f32 %v2636_v31, %v2544_v50 }
 0x1ce   : > { %v2547_v24 = vpop.f32.mrf.mxu1 }
 0x1cf   : > { %v2548_v20 = vadd.f32 %v2547_v24, %v2455_v34  ;;  %v2642_v39 = vpop.f32.mrf.mxu0  ;;  %v2639_v27 = vadd.f32 %v2638_v19, %v2546_v14  ;;  %v2461_v24 = vadd.f32 %v10474_v37, %v2368_v48  ;;  %v2465_v14 = vadd.f32 %v10480_v29, %v2372_v17 }
 0x1d0   : > { %v2549_v63 = vpop.f32.mrf.mxu1  ;;  %v2378_v37 = vadd.f32 %v10466_v0, %v10542_v28  ;;  %v2384_v0 = vadd.f32 %v10472_v23, %v10538_v58 }
 0x1d1   : > { %v2641_v56 = vadd.f32 %v2640_v18, %v2548_v20  ;;  %v2550_v60 = vadd.f32 %v2549_v63, %v2457_v42  ;;  %v2646_v11 = vpop.f32.mrf.mxu0  ;;  %v2698_v20 = vmax.f32 %v2639_v27, 0.0  ;;  %v2697_v63 = vmax.f32 %v2637_v22, 0.0 }
 0x1d2   : > { %v2553_v4 = vpop.f32.mrf.mxu1 }
 0x1d3   : > { %v2643_v25 = vadd.f32 %v2642_v39, %v2550_v60  ;;  %v2701_v53 = vmax.f32 %v2641_v56, 0.0  ;;  %v2648_v34 = vpop.f32.mrf.mxu0  ;;  %v2554_v18 = vadd.f32 %v2553_v4, %v2461_v24  ;;  %v2471_v60 = vadd.f32 %v10488_v26, %v2378_v37 }
 0x1d4   : > { %v2555_v46 = vpop.f32.mrf.mxu1  ;;  %v2388_v26 = vadd.f32 %v10476_v61, %v10542_v28  ;;  %v2394_v61 = vadd.f32 %v10486_v44, %v10538_v58 }
 0x1d5   : > { %v2702_v42 = vmax.f32 %v2643_v25, 0.0  ;;  %v2556_v50 = vadd.f32 %v2555_v46, %v2463_v21  ;;  %v2650_v38 = vpop.f32.mrf.mxu0  ;;  %v2745_v13 = vpack.c.bf16 %v2701_v53, %v2697_v63  ;;  %v2647_v4 = vadd.f32 %v2646_v11, %v2554_v18 }
 0x1d6   : > { %v2557_v31 = vpop.f32.mrf.mxu1  ;;  %v2475_v25 = vadd.f32 %v10494_v30, %v2382_v5  ;;  %v2487_v5 = vadd.f32 %v10508_v47, %v2394_v61 }
 0x1d7   : > { %v2558_v36 = vadd.f32 %v2557_v31, %v2465_v14  ;;  %v2746_v1 = vpack.c.bf16 %v2702_v42, %v2698_v20  ;;  %v2652_v29 = vpop.f32.mrf.mxu0  ;;  %v2649_v10 = vadd.f32 %v2648_v34, %v2556_v50  ;;  %v2705_v53 = vmax.f32 %v2647_v4, 0.0 }
 0x1d8   : > { %v2559_v19 = vpop.f32.mrf.mxu1  ;;  %v2477_v14 = vadd.f32 %v10496_v8, %v2384_v0  ;;  %v2483_v8 = vadd.f32 %v10502_v16, %v2390_v6  ;;  %v2400_v16 = vadd.f32 %v10498_v51, %v10538_v58  ;;  %v2402_v51 = vadd.f32 %v10504_v43, %v10542_v28 }
 0x1d9   : > { %v2560_v55 = vadd.f32 %v2559_v19, %v2467_v62  ;;  %v2651_v48 = vadd.f32 %v2650_v38, %v2558_v36  ;;  %3143 = vmatprep.mubr.bf16.mxu1 %v2746_v1  ;;  %v2656_v27 = vpop.f32.mrf.mxu0  ;;  %v2706_v11 = vmax.f32 %v2649_v10, 0.0  ;;  %v2481_v1 = vadd.f32 %v10500_v49, %v2388_v26 }
 0x1da   : > { %v2563_v39 = vpop.f32.mrf.mxu1  ;;  %3144 = vmatmul.mubr.bf16.vlgmr.msra.gmra.mxu1 %v2745_v13  ;;  %v2398_v49 = vadd.f32 %v10492_v12, %v10542_v28  ;;  %v2493_v47 = vadd.f32 %v10516_v54, %v2400_v16  ;;  %v2404_v12 = vadd.f32 %v10510_v57, %v10538_v58  ;;  %v2410_v54 = vadd.f32 %v10520_v52, %v10538_v58 }
 0x1db   : > { %v2653_v56 = vadd.f32 %v2652_v29, %v2560_v55  ;;  %v2709_v22 = vmax.f32 %v2651_v48, 0.0  ;;  %v2658_v21 = vpop.f32.mrf.mxu0  ;;  %v2564_v46 = vadd.f32 %v2563_v39, %v2471_v60  ;;  %v2485_v29 = vadd.f32 %v10506_v59, %v2392_v9 }
 0x1dc   : > { %v2565_v17 = vpop.f32.mrf.mxu1  ;;  %v2412_v52 = vadd.f32 %v10532_v15, %v10542_v28 }
 0x1dd   : > { %v2710_v32 = vmax.f32 %v2653_v56, 0.0  ;;  %v2566_v24 = vadd.f32 %v2565_v17, %v2473_v3  ;;  %v2660_v41 = vpop.f32.mrf.mxu0  ;;  %v2749_v42 = vpack.c.bf16 %v2709_v22, %v2705_v53  ;;  %v2657_v38 = vadd.f32 %v2656_v27, %v2564_v46 }
 0x1de   : > { %v2567_v34 = vpop.f32.mrf.mxu1 }
 0x1df   : > { %v2568_v23 = vadd.f32 %v2567_v34, %v2475_v25  ;;  %v2750_v20 = vpack.c.bf16 %v2710_v32, %v2706_v11  ;;  %v2662_v30 = vpop.f32.mrf.mxu0  ;;  %v2659_v63 = vadd.f32 %v2658_v21, %v2566_v24  ;;  %v2713_v4 = vmax.f32 %v2657_v38, 0.0 }
 0x1e0   : > { %v2569_v50 = vpop.f32.mrf.mxu1  ;;  %v2491_v24 = vadd.f32 %v10512_v45, %v2398_v49  ;;  %v2408_v45 = vadd.f32 %v10514_v33, %v10542_v28  ;;  %v12046_v28 = vld [vmem:[#allocation11_spill] sm:$0xff] }
 0x1e1   : > { %v2570_v18 = vadd.f32 %v2569_v50, %v2477_v14  ;;  %v2661_v31 = vadd.f32 %v2660_v41, %v2568_v23  ;;  %3151 = vmatprep.mubr.bf16.mxu1 %v2750_v20  ;;  %v2666_v62 = vpop.f32.mrf.mxu0  ;;  %v2714_v10 = vmax.f32 %v2659_v63, 0.0  ;;  %v2495_v41 = vadd.f32 %v10518_v35, %v2402_v51 }
 0x1e2   : > { %v2573_v7 = vpop.f32.mrf.mxu1  ;;  %3152 = vmatmul.mubr.bf16.gmra.mxu1 %v2749_v42  ;;  %v2497_v50 = vadd.f32 %v10522_v40, %v2404_v12  ;;  %v12042_v40 = vld [vmem:[#allocation21_spill] sm:$0xff] }
 0x1e3   : > { %v2663_v36 = vadd.f32 %v2662_v30, %v2570_v18  ;;  %v2717_v37 = vmax.f32 %v2661_v31, 0.0  ;;  %v2668_v19 = vpop.f32.mrf.mxu0  ;;  %v2574_v39 = vadd.f32 %v2573_v7, %v2481_v1  ;;  %v12043_v1 = vld [vmem:[#allocation22_spill] sm:$0xff] }
 0x1e4   : > { %v2575_v13 = vpop.f32.mrf.mxu1  ;;  %v2414_v33 = vadd.f32 %v12043_v1, %v10538_v58 }
 0x1e5   : > { %v2718_v55 = vmax.f32 %v2663_v36, 0.0  ;;  %v2576_v48 = vadd.f32 %v2575_v13, %v2483_v8  ;;  %v2670_v2 = vpop.f32.mrf.mxu0  ;;  %v2753_v56 = vpack.c.bf16 %v2717_v37, %v2713_v4  ;;  %v2667_v21 = vadd.f32 %v2666_v62, %v2574_v39  ;;  %v12044_v37 = vld [vmem:[#allocation16_spill] sm:$0xff] }
 0x1e6   : > { %v2577_v27 = vpop.f32.mrf.mxu1  ;;  %v2503_v36 = vadd.f32 %v12042_v40, %v2410_v54  ;;  %v2501_v13 = vadd.f32 %v12044_v37, %v2408_v45  ;;  %v8442_v54 = vld [vmem:[%s11976_s6 + $0x8] ss:$16 sps:$4 sm:$0xff]   ;;  %v10638_v40 = vld [vmem:[%s11975_s5] ss:$0 sm:$0xff] }
 0x1e7   : > { %v2578_v44 = vadd.f32 %v2577_v27, %v2485_v29  ;;  %v2754_v3 = vpack.c.bf16 %v2718_v55, %v2714_v10  ;;  %v2672_v59 = vpop.f32.mrf.mxu0  ;;  %v2669_v60 = vadd.f32 %v2668_v19, %v2576_v48  ;;  %v2721_v20 = vmax.f32 %v2667_v21, 0.0  ;;  %v12045_v55 = vld [vmem:[#allocation12_spill] sm:$0xff] }
 0x1e8   : > { %v2579_v0 = vpop.f32.mrf.mxu1  ;;  %v2505_v48 = vadd.f32 %v12045_v55, %v2412_v52 }
 0x1e9   : > { %v2580_v22 = vadd.f32 %v2579_v0, %v2487_v5  ;;  %v2671_v17 = vadd.f32 %v2670_v2, %v2578_v44  ;;  %3159 = vmatprep.mubr.bf16.mxu1 %v2754_v3  ;;  %v2676_v11 = vpop.f32.mrf.mxu0  ;;  %v2722_v6 = vmax.f32 %v2669_v60, 0.0  ;;  %v2507_v44 = vadd.f32 %v12046_v28, %v2414_v33 }
 0x1ea   : > { %v2583_v25 = vpop.f32.mrf.mxu1  ;;  %3160 = vmatmul.mubr.bf16.gmra.mxu1 %v2753_v56 }
 0x1eb   : > { %v2673_v32 = vadd.f32 %v2672_v59, %v2580_v22  ;;  %v2725_v53 = vmax.f32 %v2671_v17, 0.0  ;;  %v2678_v34 = vpop.f32.mrf.mxu0  ;;  %v2584_v26 = vadd.f32 %v2583_v25, %v2491_v24  ;;  %v12047_v24 = vmov 0  }
 0x1ec   : > { %v2585_v46 = vpop.f32.mrf.mxu1 }
 0x1ed   : > { %v2726_v14 = vmax.f32 %v2673_v32, 0.0  ;;  %v2586_v23 = vadd.f32 %v2585_v46, %v2493_v47  ;;  %v2680_v43 = vpop.f32.mrf.mxu0  ;;  %v2757_v63 = vpack.c.bf16 %v2725_v53, %v2721_v20  ;;  %v2677_v62 = vadd.f32 %v2676_v11, %v2584_v26  ;;  %v3322_v53 = vld [vmem:[%s11976_s6 + $0x20] sm:$0x33]  ;;  %v3323_v46 = vld [vmem:[%s11976_s6 + $0x28] sm:$0x33] }
 0x1ee   : > { %v2587_v42 = vpop.f32.mrf.mxu1  ;;  %v8444_v20 = vld [vmem:[%s11976_s6 + $0xc] ss:$16 sps:$4 sm:$0xff]  }
 0x1ef   : > { %v2588_v57 = vadd.f32 %v2587_v42, %v2495_v41  ;;  %v2758_v30 = vpack.c.bf16 %v2726_v14, %v2722_v6  ;;  %v2682_v35 = vpop.f32.mrf.mxu0  ;;  %v2679_v31 = vadd.f32 %v2678_v34, %v2586_v23  ;;  %v2729_v2 = vmax.f32 %v2677_v62, 0.0  ;;  %v8441_v23 = vld [vmem:[%s11976_s6 + $0x4] ss:$16 sps:$4 sm:$0xff]  }
 0x1f0   : > { %v2589_v18 = vpop.f32.mrf.mxu1  ;;  %v7290_v34 = vcombine.high %v3322_v53, %v3322_v53  ;;  %v7289_v41 = vcombine.low %v3322_v53, %v3322_v53  ;;  %v7292_v6 = vcombine.high %v3323_v46, %v3323_v46  ;;  %v7291_v14 = vcombine.low %v3323_v46, %v3323_v46 }
 0x1f1   : > { %v2590_v38 = vadd.f32 %v2589_v18, %v2497_v50  ;;  %v2681_v7 = vadd.f32 %v2680_v43, %v2588_v57  ;;  %3167 = vmatprep.mubr.bf16.mxu1 %v2758_v30  ;;  %v2686_v8 = vpop.f32.mrf.mxu0  ;;  %v2730_v4 = vmax.f32 %v2679_v31, 0.0  ;;  %v8439_v43 = vld [vmem:[%s11976_s6] ss:$16 sps:$4 sm:$0xff]  }
 0x1f2   : > { %v2593_v9 = vpop.f32.mrf.mxu1  ;;  %3168 = vmatmul.mubr.bf16.gmra.mxu1 %v2757_v63  ;;  %7293 = vmatprep.subr.msk.bf16.mxu0 %vm3395_vm1, %v7290_v34  ;;  %v3397_v26 = vsel %vm3395_vm1, %v7289_v41, 0  ;;  %v3403_v42 = vsel %vm3395_vm1, %v7291_v14, 0 }
 0x1f3   : > { %v2683_v61 = vadd.f32 %v2682_v35, %v2590_v38  ;;  %v2733_v19 = vmax.f32 %v2681_v7, 0.0  ;;  %v2688_v10 = vpop.f32.mrf.mxu0  ;;  %v2594_v16 = vadd.f32 %v2593_v9, %v2501_v13  ;;  %7300 = vmatprep.subr.msk.bf16.mxu1 %vm3395_vm1, %v7292_v6  ;;  %3421 = vmatpush1.bf16.msra.mxu0 %v3397_v26 }
 0x1f4   : > { %v2595_v29 = vpop.f32.mrf.mxu1  ;;  %3514 = vmatpush1.bf16.msra.mxu1 %v3403_v42  ;;  %3422 = vmatprep.subr.bf16.mxu0 %v8441_v23 }
 0x1f5   : > { %v2734_v39 = vmax.f32 %v2683_v61, 0.0  ;;  %v2596_v27 = vadd.f32 %v2595_v29, %v2503_v36  ;;  %v2690_v15 = vpop.f32.mrf.mxu0  ;;  %v2761_v56 = vpack.c.bf16 %v2733_v19, %v2729_v2  ;;  %v2687_v17 = vadd.f32 %v2686_v8, %v2594_v16  ;;  %3515 = vmatprep.subr.bf16.mxu1 %v8444_v20 }
 0x1f6   : > { %v2597_v5 = vpop.f32.mrf.mxu1 }
 0x1f7   : > { %v2598_v3 = vadd.f32 %v2597_v5, %v2505_v48  ;;  %v2762_v49 = vpack.c.bf16 %v2734_v39, %v2730_v4  ;;  %v2692_v0 = vpop.f32.mrf.mxu0  ;;  %v2689_v59 = vadd.f32 %v2688_v10, %v2596_v27  ;;  %v2737_v47 = vmax.f32 %v2687_v17, 0.0  ;;  %3423 = vmatpush1.bf16.msra.mxu0 %v8439_v43 }
 0x1f8   : > { %v2599_v58 = vpop.f32.mrf.mxu1  ;;  %3516 = vmatpush1.bf16.msra.mxu1 %v8442_v54 }
 0x1f9   : > { %v2600_v60 = vadd.f32 %v2599_v58, %v2507_v44  ;;  %v2691_v22 = vadd.f32 %v2690_v15, %v2598_v3  ;;  %3175 = vmatprep.mubr.bf16.mxu1 %v2762_v49  ;;  %v2738_v11 = vmax.f32 %v2689_v59, 0.0 }
 0x1fa   : > { %3176 = vmatmul.mubr.bf16.gmra.mxu1 %v2761_v56 }
 0x1fb   : > { %v2693_v21 = vadd.f32 %v2692_v0, %v2600_v60  ;;  %v2741_v25 = vmax.f32 %v2691_v22, 0.0 }
 0x1fd   : > { %v2742_v51 = vmax.f32 %v2693_v21, 0.0  ;;  %v2765_v12 = vpack.c.bf16 %v2741_v25, %v2737_v47 }
 0x1ff   : > { %v2766_v32 = vpack.c.bf16 %v2742_v51, %v2738_v11 }
 0x201   : > { %3183 = vmatprep.mubr.bf16.mxu1 %v2766_v32 }
 0x202   : > { %3184 = vmatmul.mubr.bf16.gmra.mxu1 %v2765_v12 }
 0x203   : > { %3533 = vmatprep.mubr.bf16.mxu1 %v12047_v24 }
 0x229   : > { %v7745_v50 = vpop.f32.mrf.mxu0 }
 0x22b   : > { %v7746_v57 = vpop.f32.mrf.mxu0 }
 0x22c   : > { %v7747_v52 = vadd.f32 %v7746_v57, %v7745_v50 }
 0x22d   : > { %v7748_v30 = vpop.f32.mrf.mxu0 }
 0x22e   : > { %v3065_v33 = vadd.f32 %v7747_v52, %v10638_v40 }
 0x22f   : > { %v7749_v45 = vpop.f32.mrf.mxu0 }
 0x230   : > { %v7750_v37 = vadd.f32 %v7749_v45, %v7748_v30 }
 0x231   : > { %v7751_v63 = vpop.f32.mrf.mxu0 }
 0x232   : > { %v3068_v4 = vadd.f32 %v7750_v37, %v10638_v40 }
 0x233   : > { %v7752_v18 = vpop.f32.mrf.mxu0 }
 0x234   : > { %v7753_v55 = vadd.f32 %v7752_v18, %v7751_v63 }
 0x235   : > { %v7754_v35 = vpop.f32.mrf.mxu0 }
 0x236   : > { %v3073_v28 = vadd.f32 %v7753_v55, %v10638_v40 }
 0x237   : > { %v7755_v31 = vpop.f32.mrf.mxu0 }
 0x238   : > { %v7756_v3 = vadd.f32 %v7755_v31, %v7754_v35 }
 0x239   : > { %v7757_v38 = vpop.f32.mrf.mxu0 }
 0x23a   : > { %v3076_v21 = vadd.f32 %v7756_v3, %v10638_v40 }
 0x23b   : > { %v7758_v7 = vpop.f32.mrf.mxu0 }
 0x23c   : > { %v7759_v22 = vadd.f32 %v7758_v7, %v7757_v38 }
 0x23d   : > { %v7760_v62 = vpop.f32.mrf.mxu0 }
 0x23e   : > { %v3081_v53 = vadd.f32 %v7759_v22, %v10638_v40 }
 0x23f   : > { %v7761_v9 = vpop.f32.mrf.mxu0 }
 0x240   : > { %v7762_v34 = vadd.f32 %v7761_v9, %v7760_v62 }
 0x241   : > { %v7763_v8 = vpop.f32.mrf.mxu0 }
 0x242   : > { %v3084_v54 = vadd.f32 %v7762_v34, %v10638_v40 }
 0x243   : > { %v7764_v36 = vpop.f32.mrf.mxu0 }
 0x244   : > { %v7765_v42 = vadd.f32 %v7764_v36, %v7763_v8 }
 0x245   : > { %v10642_v19 = vpop.f32.mrf.mxu0 }
 0x246   : > { %v3089_v31 = vadd.f32 %v7765_v42, %v10638_v40 }
 0x247   : > { %v7767_v2 = vpop.f32.mrf.mxu0 }
 0x248   : > { %v7768_v7 = vadd.f32 %v7767_v2, %v10642_v19 }
 0x249   : > { %v7769_v58 = vpop.f32.mrf.mxu0 }
 0x24b   : > { %v7770_v51 = vpop.f32.mrf.mxu0 }
 0x24d   : > { %v7772_v14 = vpop.f32.mrf.mxu0 }
 0x24f   : > { %v7773_v45 = vpop.f32.mrf.mxu0 }
 0x251   : > { %v7775_v52 = vpop.f32.mrf.mxu0 }
 0x29a   : > { %v7797_v61 = vpop.f32.mrf.mxu1 }
 0x29c   : > { %v7798_v1 = vpop.f32.mrf.mxu1 }
 0x29d   : > { %v7799_v13 = vadd.f32 %v7798_v1, %v7797_v61 }
 0x29e   : > { %v7800_v29 = vpop.f32.mrf.mxu1 }
 0x29f   : > { %v10644_v10 = vadd.f32 %v7799_v13, %v3065_v33  ;;  %v7771_v33 = vadd.f32 %v7770_v51, %v7769_v58  ;;  %v3092_v13 = vadd.f32 %v7768_v7, %v10638_v40 }
 0x2a0   : > { %v7801_v48 = vpop.f32.mrf.mxu1 }
 0x2a1   : > { %v3204_v39 = vmul.f32 0.5, %v10644_v10  ;;  %6649 = vst.msk [vmem:[%s10648_s30] sm:$0xff] %vm6648_vm2, %v10644_v10  ;;  %v7802_v27 = vadd.f32 %v7801_v48, %v7800_v29  ;;  %v7776_v48 = vpop.f32.mrf.mxu0  ;;  %v3097_v2 = vadd.f32 %v7771_v33, %v10638_v40 }
 0x2a2   : > { %v7803_v16 = vpop.f32.mrf.mxu1 }
 0x2a3   : > { %v3216_v5 = vmul.f32 1.442695, %v3204_v39  ;;  %v10653_v15 = vadd.f32 %v7802_v27, %v3068_v4 }
 0x2a4   : > { %v7804_v44 = vpop.f32.mrf.mxu1 }
 0x2a5   : > { %8765 = vpow2.f32 %v3216_v5  ;;  %v3205_v49 = vmul.f32 0.5, %v10653_v15  ;;  %6650 = vst.msk [vmem:[%s10648_s30 + $0x8] sm:$0xff] %vm6648_vm2, %v10653_v15  ;;  %v7805_v56 = vadd.f32 %v7804_v44, %v7803_v16  ;;  %v7774_v5 = vadd.f32 %v7773_v45, %v7772_v14 }
 0x2a6   : > { %v7806_v0 = vpop.f32.mrf.mxu1 }
 0x2a7   : > { %v3218_v59 = vmul.f32 1.442695, %v3205_v49  ;;  %v10660_v60 = vadd.f32 %v7805_v56, %v3073_v28  ;;  %v7778_v49 = vpop.f32.mrf.mxu0 }
 0x2a8   : > { %v7807_v17 = vpop.f32.mrf.mxu1 }
 0x2a9   : > { %8767 = vpow2.f32 %v3218_v59  ;;  %v3206_v25 = vmul.f32 0.5, %v10660_v60  ;;  %6651 = vst.msk [vmem:[%s10648_s30 + $0x10] sm:$0xff] %vm6648_vm2, %v10660_v60  ;;  %v7808_v11 = vadd.f32 %v7807_v17, %v7806_v0  ;;  %v7777_v59 = vadd.f32 %v7776_v48, %v7775_v52  ;;  %v7779_v51 = vpop.f32.mrf.mxu0 }
 0x2aa   : > { %v7809_v47 = vpop.f32.mrf.mxu1  ;;  %v3100_v17 = vadd.f32 %v7774_v5, %v10638_v40  ;;  %v8448_v5 = vld [vmem:[%s11978_s8 + $0x508] ss:$28 sps:$4 sm:$0xff]  }
 0x2ab   : > { %v3220_v32 = vmul.f32 1.442695, %v3206_v25  ;;  %v10667_v12 = vadd.f32 %v7808_v11, %v3076_v21 }
 0x2ac   : > { %v7810_v46 = vpop.f32.mrf.mxu1 }
 0x2ad   : > { %8769 = vpow2.f32 %v3220_v32  ;;  %v3207_v41 = vmul.f32 0.5, %v10667_v12  ;;  %6652 = vst.msk [vmem:[%s10648_s30 + $0x18] sm:$0xff] %vm6648_vm2, %v10667_v12  ;;  %v7811_v6 = vadd.f32 %v7810_v46, %v7809_v47  ;;  %v3105_v46 = vadd.f32 %v7777_v59, %v10638_v40  ;;  %v8459_v59 = vld [vmem:[%s11978_s8 + $0x11c] ss:$28 sps:$4 sm:$0xff]  }
 0x2ae   : > { %v7812_v23 = vpop.f32.mrf.mxu1 }
 0x2af   : > { %v3222_v20 = vmul.f32 1.442695, %v3207_v41  ;;  %v10674_v26 = vadd.f32 %v7811_v6, %v3081_v53  ;;  %v7780_v41 = vadd.f32 %v7779_v51, %v7778_v49 }
 0x2b0   : > { %v7813_v43 = vpop.f32.mrf.mxu1 }
 0x2b1   : > { %8771 = vpow2.f32 %v3222_v20  ;;  %v3208_v50 = vmul.f32 0.5, %v10674_v26  ;;  %6653 = vst.msk [vmem:[%s10648_s30 + $0x20] sm:$0xff] %vm6648_vm2, %v10674_v26  ;;  %v7814_v57 = vadd.f32 %v7813_v43, %v7812_v23 }
 0x2b2   : > { %v8766_v30 = vpop.eup %8765  ;;  %v7815_v63 = vpop.f32.mrf.mxu1 }
 0x2b3   : > { %v3224_v18 = vmul.f32 1.442695, %v3208_v50  ;;  %v10681_v35 = vadd.f32 %v7814_v57, %v3084_v54  ;;  %3252 = vrot.lane.b32.xlu0 %v8766_v30, %s9288_s14  ;;  %v3108_v50 = vadd.f32 %v7780_v41, %v10638_v40 }
 0x2b4   : > { %v7816_v38 = vpop.f32.mrf.mxu1 }
 0x2b5   : > { %8773 = vpow2.f32 %v3224_v18  ;;  %v3209_v62 = vmul.f32 0.5, %v10681_v35  ;;  %6654 = vst.msk [vmem:[%s10648_s30 + $0x28] sm:$0xff] %vm6648_vm2, %v10681_v35  ;;  %v7817_v9 = vadd.f32 %v7816_v38, %v7815_v63 }
 0x2b6   : > { %v8768_v8 = vpop.eup %8767  ;;  %v7818_v36 = vpop.f32.mrf.mxu1 }
 0x2b7   : > { %v3226_v61 = vmul.f32 1.442695, %v3209_v62  ;;  %v10690_v1 = vadd.f32 %v7817_v9, %v3089_v31  ;;  %3254 = vrot.lane.b32.xlu0 %v8768_v8, %s9288_s14  ;;  %v8447_v9 = vld [vmem:[%s11978_s8 + $0x18c] ss:$28 sps:$4 sm:$0xff]  }
 0x2b8   : > { %v7819_v37 = vpop.f32.mrf.mxu1  ;;  %v8450_v8 = vld [vmem:[%s11978_s8 + $0x50c] ss:$28 sps:$4 sm:$0xff]   ;;  %5111 = vmatprep.subr.bf16.mxu0 %v8447_v9 }
 0x2b9   : > { %8775 = vpow2.f32 %v3226_v61  ;;  %v3210_v19 = vmul.f32 0.5, %v10690_v1  ;;  %6655 = vst.msk [vmem:[%s10648_s30 + $0x30] sm:$0xff] %vm6648_vm2, %v10690_v1  ;;  %v7820_v29 = vadd.f32 %v7819_v37, %v7818_v36  ;;  %5204 = vmatprep.subr.bf16.mxu1 %v8450_v8  ;;  %v3192_v61 = vld [vmem:[%s10752_s29] sm:$0xff]  ;;  %v3193_v37 = vld [vmem:[%s10752_s29 + $0x8] sm:$0xff] }
 0x2ba   : > { %v8770_v55 = vpop.eup %8769  ;;  %v7821_v4 = vpop.f32.mrf.mxu1  ;;  %v8475_v9 = vld [vmem:[%s11978_s8 + $0x70] ss:$28 sps:$4 sm:$0xff]  }
 0x2bb   : > { %v3228_v39 = vmul.f32 1.442695, %v3210_v19  ;;  %v10698_v27 = vadd.f32 %v7820_v29, %v3092_v13  ;;  %3256 = vrot.lane.b32.xlu1 %v8770_v55, %s9288_s14  ;;  %v8478_v8 = vld [vmem:[%s11978_s8 + $0x3f0] ss:$28 sps:$4 sm:$0xff]  }
 0x2bc   : > { %v7822_v16 = vpop.f32.mrf.mxu1 }
 0x2bd   : > { %8777 = vpow2.f32 %v3228_v39  ;;  %v3211_v28 = vmul.f32 0.5, %v10698_v27  ;;  %6656 = vst.msk [vmem:[%s10648_s30 + $0x38] sm:$0xff] %vm6648_vm2, %v10698_v27  ;;  %v7823_v44 = vadd.f32 %v7822_v16, %v7821_v4  ;;  %v3194_v4 = vld [vmem:[%s10752_s29 + $0x10] sm:$0xff]  ;;  %v8445_v16 = vld [vmem:[%s11978_s8 + $0x188] ss:$28 sps:$4 sm:$0xff]  }
 0x2be   : > { %v8772_v3 = vpop.eup %8771  ;;  %v7824_v56 = vpop.f32.mrf.mxu1 }
 0x2bf   : > { %v3230_v58 = vmul.f32 1.442695, %v3211_v28  ;;  %v10706_v0 = vadd.f32 %v7823_v44, %v3097_v2  ;;  %3258 = vrot.lane.b32.xlu1 %v8772_v3, %s9288_s14  ;;  %v3195_v28 = vld [vmem:[%s10752_s29 + $0x18] sm:$0xff]  ;;  %v8453_v44 = vld [vmem:[%s11978_s8 + $0x154] ss:$28 sps:$4 sm:$0xff]  }
 0x2c0   : > { %v7825_v22 = vpop.f32.mrf.mxu1 }
 0x2c1   : > { %8779 = vpow2.f32 %v3230_v58  ;;  %v3212_v21 = vmul.f32 0.5, %v10706_v0  ;;  %6657 = vst.msk [vmem:[%s10648_s30 + $0x40] sm:$0xff] %vm6648_vm2, %v10706_v0  ;;  %v7826_v25 = vadd.f32 %v7825_v22, %v7824_v56  ;;  %v8451_v56 = vld [vmem:[%s11978_s8 + $0x150] ss:$28 sps:$4 sm:$0xff]   ;;  %v8462_v22 = vld [vmem:[%s11978_s8 + $0x49c] ss:$28 sps:$4 sm:$0xff]  }
 0x2c2   : > { %v8774_v11 = vpop.eup %8773  ;;  %v7827_v47 = vpop.f32.mrf.mxu1  ;;  %v8454_v58 = vld [vmem:[%s11978_s8 + $0x4d0] ss:$28 sps:$4 sm:$0xff]  }
 0x2c3   : > { %v3232_v32 = vmul.f32 1.442695, %v3212_v21  ;;  %v10714_v53 = vadd.f32 %v7826_v25, %v3100_v17  ;;  %3260 = vrot.lane.b32.xlu0 %v8774_v11, %s9288_s14  ;;  %v3196_v25 = vld [vmem:[%s10752_s29 + $0x20] sm:$0xff] }
 0x2c4   : > { %v7828_v34 = vpop.f32.mrf.mxu1 }
 0x2c5   : > { %8781 = vpow2.f32 %v3232_v32  ;;  %v3213_v6 = vmul.f32 0.5, %v10714_v53  ;;  %6658 = vst.msk [vmem:[%s10648_s30 + $0x48] sm:$0xff] %vm6648_vm2, %v10714_v53  ;;  %v7829_v14 = vadd.f32 %v7828_v34, %v7827_v47  ;;  %v8457_v47 = vld [vmem:[%s11978_s8 + $0x118] ss:$28 sps:$4 sm:$0xff]  }
 0x2c6   : > { %v8776_v23 = vpop.eup %8775  ;;  %v7830_v20 = vpop.f32.mrf.mxu1  ;;  %v8460_v32 = vld [vmem:[%s11978_s8 + $0x498] ss:$28 sps:$4 sm:$0xff]  }
 0x2c7   : > { %v3234_v42 = vmul.f32 1.442695, %v3213_v6  ;;  %v10722_v43 = vadd.f32 %v7829_v14, %v3105_v46  ;;  %3262 = vrot.lane.b32.xlu1 %v8776_v23, %s9288_s14  ;;  %v3197_v46 = vld [vmem:[%s10752_s29 + $0x28] sm:$0xff]  ;;  %v8463_v14 = vld [vmem:[%s11978_s8 + $0xe0] ss:$28 sps:$4 sm:$0xff]  }
 0x2c8   : > { %v7831_v54 = vpop.f32.mrf.mxu1  ;;  %v8466_v23 = vld [vmem:[%s11978_s8 + $0x460] ss:$28 sps:$4 sm:$0xff]  }
 0x2c9   : > { %8783 = vpow2.f32 %v3234_v42  ;;  %v3214_v57 = vmul.f32 0.5, %v10722_v43  ;;  %6659 = vst.msk [vmem:[%s10648_s30 + $0x50] sm:$0xff] %vm6648_vm2, %v10722_v43  ;;  %v7832_v30 = vadd.f32 %v7831_v54, %v7830_v20  ;;  %v8471_v20 = vld [vmem:[%s11978_s8 + $0xac] ss:$28 sps:$4 sm:$0xff]  }
 0x2ca   : > { %v8778_v45 = vpop.eup %8777  ;;  %v8474_v42 = vld [vmem:[%s11978_s8 + $0x42c] ss:$28 sps:$4 sm:$0xff]  }
 0x2cb   : > { %v3236_v63 = vmul.f32 1.442695, %v3214_v57  ;;  %v10730_v18 = vadd.f32 %v7832_v30, %v3108_v50  ;;  %3264 = vrot.lane.b32.xlu0 %v8778_v45, %s9288_s14  ;;  %v3198_v57 = vld [vmem:[%s10752_s29 + $0x30] sm:$0xff] }
 0x2cd   : > { %8785 = vpow2.f32 %v3236_v63  ;;  %v3215_v31 = vmul.f32 0.5, %v10730_v18  ;;  %6660 = vst.msk [vmem:[%s10648_s30 + $0x58] sm:$0xff] %vm6648_vm2, %v10730_v18  ;;  %v8469_v63 = vld [vmem:[%s11978_s8 + $0xa8] ss:$28 sps:$4 sm:$0xff]  }
 0x2ce   : > { %v8780_v40 = vpop.eup %8779 }
 0x2cf   : > { %v3238_v38 = vmul.f32 1.442695, %v3215_v31  ;;  %3266 = vrot.lane.b32.xlu1 %v8780_v40, %s9288_s14  ;;  %v8472_v31 = vld [vmem:[%s11978_s8 + $0x428] ss:$28 sps:$4 sm:$0xff]   ;;  %v3199_v40 = vld [vmem:[%s10752_s29 + $0x38] sm:$0xff] }
 0x2d1   : > { %8787 = vpow2.f32 %v3238_v38 }
 0x2d2   : > { %v8782_v7 = vpop.eup %8781 }
 0x2d3   : > { %3268 = vrot.lane.b32.xlu0 %v8782_v7, %s9288_s14 }
 0x2d6   : > { %v8784_v62 = vpop.eup %8783 }
 0x2d7   : > { %3270 = vrot.lane.b32.xlu1 %v8784_v62, %s9288_s14 }
 0x2da   : > { %v8786_v52 = vpop.eup %8785 }
 0x2db   : > { %3272 = vrot.lane.b32.xlu0 %v8786_v52, %s9288_s14  ;;  %v8483_v52 = vld [vmem:[%s11978_s8 + $0x3c] ss:$28 sps:$4 sm:$0xff]  }
 0x2de   : > { %v8788_v36 = vpop.eup %8787 }
 0x2df   : > { %3274 = vrot.lane.b32.xlu1 %v8788_v36, %s9288_s14  ;;  %v8486_v36 = vld [vmem:[%s11978_s8 + $0x3bc] ss:$28 sps:$4 sm:$0xff]  }
 0x325   : > { %v3253_v33 = vpop.permute.xlu0 %3252 }
 0x326   : > { %v3288_v13 = vmul.f32 %v3253_v33, %v3192_v61 }
 0x328   : > { %v3300_v55 = vadd.f32 %v3288_v13, %v10644_v10  ;;  %v8456_v10 = vld [vmem:[%s11978_s8 + $0x4d4] ss:$28 sps:$4 sm:$0xff]  }
 0x329   : > { %v3255_v19 = vpop.permute.xlu0 %3254 }
 0x32a   : > { %v3289_v29 = vmul.f32 %v3255_v19, %v3193_v37  ;;  %v3200_v37 = vld [vmem:[%s10752_s29 + $0x40] sm:$0xff] }
 0x32c   : > { %v3301_v48 = vadd.f32 %v3289_v29, %v10653_v15  ;;  %v8481_v29 = vld [vmem:[%s11978_s8 + $0x38] ss:$28 sps:$4 sm:$0xff]  }
 0x32d   : > { %v3257_v39 = vpop.permute.xlu1 %3256 }
 0x32e   : > { %v3312_v2 = vpack.c.bf16 %v3301_v48, %v3300_v55  ;;  %v3290_v15 = vmul.f32 %v3257_v39, %v3194_v4  ;;  %v8484_v55 = vld [vmem:[%s11978_s8 + $0x3b8] ss:$28 sps:$4 sm:$0xff]   ;;  %v3201_v48 = vld [vmem:[%s10752_s29 + $0x48] sm:$0xff] }
 0x330   : > { %7294 = vmatmul.mubr.msk.bf16.vlgmr.msra.gmra.mxu0 %vm3376_vm3, %v3312_v2  ;;  %7301 = vmatmul.mubr.msk.bf16.vlgmr.msra.gmra.mxu1 %vm3376_vm3, %v3312_v2  ;;  %v3302_v17 = vadd.f32 %v3290_v15, %v10660_v60  ;;  %v8465_v60 = vld [vmem:[%s11978_s8 + $0xe4] ss:$28 sps:$4 sm:$0xff]  }
 0x331   : > { %v3259_v3 = vpop.permute.xlu1 %3258  ;;  %3450 = vmatprep.mubr.bf16.mxu0 %v12047_v24  ;;  %3543 = vmatprep.mubr.bf16.mxu1 %v12047_v24 }
 0x332   : > { %v3291_v49 = vmul.f32 %v3259_v3, %v3195_v28  ;;  %5112 = vmatpush1.bf16.msra.mxu0 %v8445_v16  ;;  %5205 = vmatpush1.bf16.msra.mxu1 %v8448_v5  ;;  %v8487_v16 = vld [vmem:[%s11978_s8] ss:$28 sps:$4 sm:$0xff]   ;;  %v8495_v28 = vld [vmem:[%s11978_s8 + $0x34c] ss:$28 sps:$4 sm:$0xff]   ;;  %v3202_v3 = vld [vmem:[%s10752_s29 + $0x50] sm:$0xff] }
 0x333   : > { %5113 = vmatprep.subr.bf16.mxu0 %v8453_v44  ;;  %5206 = vmatprep.subr.bf16.mxu1 %v8456_v10  ;;  %v8490_v5 = vld [vmem:[%s11978_s8 + $0x380] ss:$28 sps:$4 sm:$0xff]   ;;  %v8498_v44 = vld [vmem:[%s11978_s8 + $0x6cc] ss:$28 sps:$4 sm:$0xff]  }
 0x334   : > { %v3303_v21 = vadd.f32 %v3291_v49, %v10667_v12  ;;  %v8468_v12 = vld [vmem:[%s11978_s8 + $0x464] ss:$28 sps:$4 sm:$0xff]  }
 0x335   : > { %v3261_v11 = vpop.permute.xlu0 %3260 }
 0x336   : > { %v3313_v51 = vpack.c.bf16 %v3303_v21, %v3302_v17  ;;  %5114 = vmatpush1.bf16.msra.mxu0 %v8451_v56  ;;  %5207 = vmatpush1.bf16.msra.mxu1 %v8454_v58  ;;  %v3292_v34 = vmul.f32 %v3261_v11, %v3196_v25  ;;  %v8493_v58 = vld [vmem:[%s11978_s8 + $0x348] ss:$28 sps:$4 sm:$0xff]   ;;  %v8499_v11 = vld [vmem:[%s11978_s8 + $0x310] ss:$28 sps:$4 sm:$0xff]  }
 0x337   : > { %5115 = vmatprep.subr.bf16.mxu0 %v8459_v59  ;;  %5208 = vmatprep.subr.bf16.mxu1 %v8462_v22  ;;  %v8496_v59 = vld [vmem:[%s11978_s8 + $0x6c8] ss:$28 sps:$4 sm:$0xff]   ;;  %v3203_v22 = vld [vmem:[%s10752_s29 + $0x58] sm:$0xff] }
 0x338   : > { %7295 = vmatmul.mubr.msk.bf16.gmra.mxu0 %vm3376_vm3, %v3313_v51  ;;  %7302 = vmatmul.mubr.msk.bf16.gmra.mxu1 %vm3376_vm3, %v3313_v51  ;;  %v3304_v54 = vadd.f32 %v3292_v34, %v10674_v26  ;;  %v8477_v26 = vld [vmem:[%s11978_s8 + $0x74] ss:$28 sps:$4 sm:$0xff]  }
 0x339   : > { %v3263_v41 = vpop.permute.xlu1 %3262  ;;  %3460 = vmatprep.mubr.bf16.mxu0 %v12047_v24  ;;  %3553 = vmatprep.mubr.bf16.mxu1 %v12047_v24  ;;  %v8502_v51 = vld [vmem:[%s11978_s8 + $0x690] ss:$28 sps:$4 sm:$0xff]   ;;  %v8508_v34 = vld [vmem:[%s11978_s8 + $0x658] ss:$28 sps:$4 sm:$0xff]  }
 0x33a   : > { %v3293_v6 = vmul.f32 %v3263_v41, %v3197_v46  ;;  %5116 = vmatpush1.bf16.msra.mxu0 %v8457_v47  ;;  %5209 = vmatpush1.bf16.msra.mxu1 %v8460_v32  ;;  %v8507_v47 = vld [vmem:[%s11978_s8 + $0x2dc] ss:$28 sps:$4 sm:$0xff]   ;;  %v8513_v41 = vld [vmem:[%s11978_s8 + $0x2a4] ss:$28 sps:$4 sm:$0xff]  }
 0x33b   : > { %5117 = vmatprep.subr.bf16.mxu0 %v8465_v60  ;;  %5210 = vmatprep.subr.bf16.mxu1 %v8468_v12  ;;  %v8505_v12 = vld [vmem:[%s11978_s8 + $0x2d8] ss:$28 sps:$4 sm:$0xff]  }
 0x33c   : > { %v3305_v50 = vadd.f32 %v3293_v6, %v10681_v35  ;;  %v8480_v35 = vld [vmem:[%s11978_s8 + $0x3f4] ss:$28 sps:$4 sm:$0xff]   ;;  %v8514_v6 = vld [vmem:[%s11978_s8 + $0x620] ss:$28 sps:$4 sm:$0xff]  }
 0x33d   : > { %v3265_v30 = vpop.permute.xlu0 %3264 }
 0x33e   : > { %v3314_v45 = vpack.c.bf16 %v3305_v50, %v3304_v54  ;;  %5118 = vmatpush1.bf16.msra.mxu0 %v8463_v14  ;;  %5211 = vmatpush1.bf16.msra.mxu1 %v8466_v23  ;;  %v3294_v38 = vmul.f32 %v3265_v30, %v3198_v57  ;;  %v8519_v14 = vld [vmem:[%s11978_s8 + $0x26c] ss:$28 sps:$4 sm:$0xff]   ;;  %v8525_v54 = vld [vmem:[%s11978_s8 + $0x234] ss:$28 sps:$4 sm:$0xff]  }
 0x33f   : > { %5119 = vmatprep.subr.bf16.mxu0 %v8471_v20  ;;  %5212 = vmatprep.subr.bf16.mxu1 %v8474_v42  ;;  %v8522_v23 = vld [vmem:[%s11978_s8 + $0x5ec] ss:$28 sps:$4 sm:$0xff]   ;;  %v8528_v50 = vld [vmem:[%s11978_s8 + $0x5b4] ss:$28 sps:$4 sm:$0xff]  }
 0x340   : > { %7296 = vmatmul.mubr.msk.bf16.gmra.mxu0 %vm3376_vm3, %v3314_v45  ;;  %7303 = vmatmul.mubr.msk.bf16.gmra.mxu1 %vm3376_vm3, %v3314_v45  ;;  %v3306_v61 = vadd.f32 %v3294_v38, %v10690_v1  ;;  %v8489_v1 = vld [vmem:[%s11978_s8 + $0x4] ss:$28 sps:$4 sm:$0xff]   ;;  %v8523_v57 = vld [vmem:[%s11978_s8 + $0x230] ss:$28 sps:$4 sm:$0xff]   ;;  %v8531_v45 = vld [vmem:[%s11978_s8 + $0x1fc] ss:$28 sps:$4 sm:$0xff]  }
 0x341   : > { %v3267_v7 = vpop.permute.xlu1 %3266  ;;  %3470 = vmatprep.mubr.bf16.mxu0 %v12047_v24  ;;  %3563 = vmatprep.mubr.bf16.mxu1 %v12047_v24  ;;  %v8517_v20 = vld [vmem:[%s11978_s8 + $0x268] ss:$28 sps:$4 sm:$0xff]   ;;  %v8526_v30 = vld [vmem:[%s11978_s8 + $0x5b0] ss:$28 sps:$4 sm:$0xff]   ;;  %v8535_v38 = vld [vmem:[%s11978_s8 + $0x1c0] ss:$28 sps:$4 sm:$0xff]  }
 0x342   : > { %v3295_v62 = vmul.f32 %v3267_v7, %v3199_v40  ;;  %5120 = vmatpush1.bf16.msra.mxu0 %v8469_v63  ;;  %5213 = vmatpush1.bf16.msra.mxu1 %v8472_v31  ;;  %v8520_v42 = vld [vmem:[%s11978_s8 + $0x5e8] ss:$28 sps:$4 sm:$0xff]   ;;  %v8534_v63 = vld [vmem:[%s11978_s8 + $0x57c] ss:$28 sps:$4 sm:$0xff]  }
 0x343   : > { %5121 = vmatprep.subr.bf16.mxu0 %v8477_v26  ;;  %5214 = vmatprep.subr.bf16.mxu1 %v8480_v35  ;;  %v8529_v31 = vld [vmem:[%s11978_s8 + $0x1f8] ss:$28 sps:$4 sm:$0xff]   ;;  %v8537_v26 = vld [vmem:[%s11978_s8 + $0x1c4] ss:$28 sps:$4 sm:$0xff]  }
 0x344   : > { %v3307_v33 = vadd.f32 %v3295_v62, %v10698_v27  ;;  %v8492_v27 = vld [vmem:[%s11978_s8 + $0x384] ss:$28 sps:$4 sm:$0xff]   ;;  %v8532_v40 = vld [vmem:[%s11978_s8 + $0x578] ss:$28 sps:$4 sm:$0xff]  }
 0x345   : > { %v3269_v13 = vpop.permute.xlu0 %3268  ;;  %v8540_v35 = vld [vmem:[%s11978_s8 + $0x544] ss:$28 sps:$4 sm:$0xff]   ;;  %v8543_v62 = vld [vmem:[%s11978_s8 + $0x194] ss:$28 sps:$4 sm:$0xff]  }
 0x346   : > { %v3315_v19 = vpack.c.bf16 %v3307_v33, %v3306_v61  ;;  %5122 = vmatpush1.bf16.msra.mxu0 %v8475_v9  ;;  %5215 = vmatpush1.bf16.msra.mxu1 %v8478_v8  ;;  %v3296_v4 = vmul.f32 %v3269_v13, %v3200_v37  ;;  %v8538_v7 = vld [vmem:[%s11978_s8 + $0x540] ss:$28 sps:$4 sm:$0xff]   ;;  %v8546_v9 = vld [vmem:[%s11978_s8 + $0x514] ss:$28 sps:$4 sm:$0xff]  }
 0x347   : > { %5123 = vmatprep.subr.bf16.mxu0 %v8483_v52  ;;  %5216 = vmatprep.subr.bf16.mxu1 %v8486_v36  ;;  %v3324_v8 = vld [vmem:[%s11977_s7] sm:$0xf]  ;;  %v12048_v61 = vld [vmem:[#allocation17_spill] sm:$0xff] }
 0x348   : > { %7297 = vmatmul.mubr.msk.bf16.gmra.mxu0 %vm3376_vm3, %v3315_v19  ;;  %7304 = vmatmul.mubr.msk.bf16.gmra.mxu1 %vm3376_vm3, %v3315_v19  ;;  %v3308_v10 = vadd.f32 %v3296_v4, %v10706_v0  ;;  %v8501_v0 = vld [vmem:[%s11978_s8 + $0x314] ss:$28 sps:$4 sm:$0xff]   ;;  %v10996_v33 = vrot.slane %v3324_v8, %v12048_v61  ;;  %v12049_v37 = vld [vmem:[#allocation10_spill] sm:$0xff] }
 0x349   : > { %v3271_v39 = vpop.permute.xlu1 %3270  ;;  %3480 = vmatprep.mubr.bf16.mxu0 %v12047_v24  ;;  %3573 = vmatprep.mubr.bf16.mxu1 %v12047_v24  ;;  %v10999_v13 = vrot.slane %v3324_v8, %v12049_v37  ;;  %v12050_v19 = vld [vmem:[#allocation18_spill] sm:$0xff] }
 0x34a   : > { %v3297_v2 = vmul.f32 %v3271_v39, %v3201_v48  ;;  %5124 = vmatpush1.bf16.msra.mxu0 %v8481_v29  ;;  %5217 = vmatpush1.bf16.msra.mxu1 %v8484_v55  ;;  %v11002_v29 = vrot.slane %v3324_v8, %v12050_v19  ;;  %v12051_v55 = vld [vmem:[#allocation19_spill] sm:$0xff] }
 0x34b   : > { %5125 = vmatprep.subr.bf16.mxu0 %v8489_v1  ;;  %5218 = vmatprep.subr.bf16.mxu1 %v8492_v27  ;;  %v11005_v48 = vrot.slane %v3324_v8, %v12051_v55 }
 0x34c   : > { %v3309_v15 = vadd.f32 %v3297_v2, %v10714_v53  ;;  %v8504_v53 = vld [vmem:[%s11978_s8 + $0x694] ss:$28 sps:$4 sm:$0xff]  }
 0x34d   : > { %v3273_v49 = vpop.permute.xlu0 %3272 }
 0x34e   : > { %v3316_v56 = vpack.c.bf16 %v3309_v15, %v3308_v10  ;;  %5126 = vmatpush1.bf16.msra.mxu0 %v8487_v16  ;;  %5219 = vmatpush1.bf16.msra.mxu1 %v8490_v5  ;;  %v3298_v17 = vmul.f32 %v3273_v49, %v3202_v3 }
 0x34f   : > { %5127 = vmatprep.subr.bf16.mxu0 %v8495_v28  ;;  %5220 = vmatprep.subr.bf16.mxu1 %v8498_v44 }
 0x350   : > { %7298 = vmatmul.mubr.msk.bf16.gmra.mxu0 %vm3376_vm3, %v3316_v56  ;;  %7305 = vmatmul.mubr.msk.bf16.gmra.mxu1 %vm3376_vm3, %v3316_v56  ;;  %v3310_v32 = vadd.f32 %v3298_v17, %v10722_v43  ;;  %v8516_v43 = vld [vmem:[%s11978_s8 + $0x624] ss:$28 sps:$4 sm:$0xff]  }
 0x351   : > { %v3275_v21 = vpop.permute.xlu1 %3274  ;;  %3490 = vmatprep.mubr.bf16.mxu0 %v12047_v24  ;;  %3583 = vmatprep.mubr.bf16.mxu1 %v12047_v24  ;;  %v8510_v24 = vld [vmem:[%s11978_s8 + $0x65c] ss:$28 sps:$4 sm:$0xff]  }
 0x352   : > { %v3299_v25 = vmul.f32 %v3275_v21, %v3203_v22  ;;  %5128 = vmatpush2.bf16.msra.mxu0 %v8493_v58  ;;  %5221 = vmatpush2.bf16.msra.mxu1 %v8496_v59 }
 0x353   : > { %5129 = vmatprep.subr.bf16.mxu0 %v8501_v0  ;;  %5222 = vmatprep.subr.bf16.mxu1 %v8504_v53 }
 0x354   : > { %v3311_v46 = vadd.f32 %v3299_v25, %v10730_v18  ;;  %v8511_v18 = vld [vmem:[%s11978_s8 + $0x2a0] ss:$28 sps:$4 sm:$0xff]  }
 0x356   : > { %v3317_v60 = vpack.c.bf16 %v3311_v46, %v3310_v32  ;;  %5130 = vmatpush2.bf16.msra.mxu0 %v8499_v11  ;;  %5223 = vmatpush2.bf16.msra.mxu1 %v8502_v51 }
 0x357   : > { %5131 = vmatprep.subr.bf16.mxu0 %v8507_v47  ;;  %5224 = vmatprep.subr.bf16.mxu1 %v8510_v24 }
 0x358   : > { %7299 = vmatmul.mubr.msk.bf16.gmra.mxu0 %vm3376_vm3, %v3317_v60  ;;  %7306 = vmatmul.mubr.msk.bf16.gmra.mxu1 %vm3376_vm3, %v3317_v60  ;;  %v8541_v60 = vld [vmem:[%s11978_s8 + $0x190] ss:$28 sps:$4 sm:$0xff]  }
 0x35a   : > { %5132 = vmatpush2.bf16.msra.mxu0 %v8505_v12  ;;  %5225 = vmatpush2.bf16.msra.mxu1 %v8508_v34  ;;  %v8544_v12 = vld [vmem:[%s11978_s8 + $0x510] ss:$28 sps:$4 sm:$0xff]  }
 0x35b   : > { %5133 = vmatprep.subr.bf16.mxu0 %v8513_v41  ;;  %5226 = vmatprep.subr.bf16.mxu1 %v8516_v43 }
 0x35e   : > { %5134 = vmatpush2.bf16.msra.mxu0 %v8511_v18  ;;  %5227 = vmatpush2.bf16.msra.mxu1 %v8514_v6 }
 0x35f   : > { %5135 = vmatprep.subr.bf16.mxu0 %v8519_v14  ;;  %5228 = vmatprep.subr.bf16.mxu1 %v8522_v23  ;;  %v8549_v14 = vld [vmem:[%s11978_s8 + $0x15c] ss:$28 sps:$4 sm:$0xff]  }
 0x360   : > { %v8552_v23 = vld [vmem:[%s11978_s8 + $0x4dc] ss:$28 sps:$4 sm:$0xff]  }
 0x362   : > { %5136 = vmatpush2.bf16.msra.mxu0 %v8517_v20  ;;  %5229 = vmatpush2.bf16.msra.mxu1 %v8520_v42 }
 0x363   : > { %5137 = vmatprep.subr.bf16.mxu0 %v8525_v54  ;;  %5230 = vmatprep.subr.bf16.mxu1 %v8528_v50 }
 0x366   : > { %5138 = vmatpush2.bf16.msra.mxu0 %v8523_v57  ;;  %5231 = vmatpush2.bf16.msra.mxu1 %v8526_v30 }
 0x367   : > { %5139 = vmatprep.subr.bf16.mxu0 %v8531_v45  ;;  %5232 = vmatprep.subr.bf16.mxu1 %v8534_v63 }
 0x36a   : > { %5140 = vmatpush2.bf16.msra.mxu0 %v8529_v31  ;;  %5233 = vmatpush2.bf16.msra.mxu1 %v8532_v40  ;;  %v8547_v40 = vld [vmem:[%s11978_s8 + $0x158] ss:$28 sps:$4 sm:$0xff]  }
 0x36b   : > { %5141 = vmatprep.subr.bf16.mxu0 %v8537_v26  ;;  %5234 = vmatprep.subr.bf16.mxu1 %v8540_v35 }
 0x36e   : > { %5142 = vmatpush2.bf16.msra.mxu0 %v8535_v38  ;;  %5235 = vmatpush2.bf16.msra.mxu1 %v8538_v7 }
 0x36f   : > { %5297 = vmatprep.subr.bf16.mxu0 %v8543_v62  ;;  %5390 = vmatprep.subr.bf16.mxu1 %v8546_v9  ;;  %v8550_v62 = vld [vmem:[%s11978_s8 + $0x4d8] ss:$28 sps:$4 sm:$0xff]   ;;  %v8555_v9 = vld [vmem:[%s11978_s8 + $0x124] ss:$28 sps:$4 sm:$0xff]  }
 0x3f0   : > { %v3442_v52 = vpop.f32.mrf.mxu0  ;;  %v3535_v36 = vpop.f32.mrf.mxu1 }
 0x3f1   : > { %v3443_v44 = vadd.f32 %v3442_v52, %v11002_v29  ;;  %v3536_v10 = vadd.f32 %v3535_v36, %v11005_v48 }
 0x3f2   : > { %v3444_v1 = vpop.f32.mrf.mxu0  ;;  %v3537_v27 = vpop.f32.mrf.mxu1 }
 0x3f3   : > { %v3445_v2 = vadd.f32 %v3444_v1, %v10996_v33  ;;  %v3538_v16 = vadd.f32 %v3537_v27, %v10999_v13  ;;  %v3594_v11 = vmax.f32 %v3443_v44, 0.0  ;;  %v3596_v51 = vmax.f32 %v3536_v10, 0.0  ;;  %v8553_v44 = vld [vmem:[%s11978_s8 + $0x120] ss:$28 sps:$4 sm:$0xff]  }
 0x3f4   : > { %v3446_v4 = vpop.f32.mrf.mxu0  ;;  %v3539_v39 = vpop.f32.mrf.mxu1 }
 0x3f5   : > { %v3447_v5 = vadd.f32 %v3446_v4, %v11002_v29  ;;  %v3540_v28 = vadd.f32 %v3539_v39, %v11005_v48  ;;  %v3595_v53 = vmax.f32 %v3445_v2, 0.0  ;;  %v3597_v17 = vmax.f32 %v3538_v16, 0.0  ;;  %v8558_v16 = vld [vmem:[%s11978_s8 + $0x4a4] ss:$28 sps:$4 sm:$0xff]  }
 0x3f6   : > { %v3448_v15 = vpop.f32.mrf.mxu0  ;;  %v3541_v3 = vpop.f32.mrf.mxu1 }
 0x3f7   : > { %v3449_v49 = vadd.f32 %v3448_v15, %v10996_v33  ;;  %v3542_v56 = vadd.f32 %v3541_v3, %v10999_v13  ;;  %v3598_v58 = vmax.f32 %v3447_v5, 0.0  ;;  %v3600_v59 = vmax.f32 %v3540_v28, 0.0 }
 0x3f8   : > { %v3452_v22 = vpop.f32.mrf.mxu0  ;;  %v3545_v0 = vpop.f32.mrf.mxu1 }
 0x3f9   : > { %v3599_v21 = vmax.f32 %v3449_v49, 0.0  ;;  %v3601_v25 = vmax.f32 %v3542_v56, 0.0  ;;  %v11025_v34 = vpack.c.bf16 %v3598_v58, %v3594_v11  ;;  %v11027_v41 = vpack.c.bf16 %v3600_v59, %v3596_v51  ;;  %v8556_v58 = vld [vmem:[%s11978_s8 + $0x4a0] ss:$28 sps:$4 sm:$0xff]   ;;  %v8561_v59 = vld [vmem:[%s11978_s8 + $0xec] ss:$28 sps:$4 sm:$0xff]  }
 0x3fa   : > { %v3454_v47 = vpop.f32.mrf.mxu0  ;;  %v3547_v24 = vpop.f32.mrf.mxu1  ;;  %v3453_v50 = vadd.f32 %v3452_v22, %v11002_v29  ;;  %v3546_v57 = vadd.f32 %v3545_v0, %v11005_v48 }
 0x3fb   : > { %v11015_v32 = vpack.c.bf16 %v3599_v21, %v3595_v53  ;;  %v11017_v46 = vpack.c.bf16 %v3601_v25, %v3597_v17  ;;  %v3455_v43 = vadd.f32 %v3454_v47, %v10996_v33  ;;  %v3548_v20 = vadd.f32 %v3547_v24, %v10999_v13  ;;  %v8564_v17 = vld [vmem:[%s11978_s8 + $0x46c] ss:$28 sps:$4 sm:$0xff]  }
 0x3fc   : > { %v3456_v18 = vpop.f32.mrf.mxu0  ;;  %v3549_v6 = vpop.f32.mrf.mxu1  ;;  %v3602_v27 = vmax.f32 %v3453_v50, 0.0  ;;  %v3604_v4 = vmax.f32 %v3546_v57, 0.0 }
 0x3fd   : > { %v3457_v42 = vadd.f32 %v3456_v18, %v11002_v29  ;;  %v3550_v54 = vadd.f32 %v3549_v6, %v11005_v48  ;;  %5143 = vmatprep.mubr.bf16.mxu0 %v11015_v32  ;;  %5236 = vmatprep.mubr.bf16.mxu1 %v11017_v46  ;;  %v3603_v8 = vmax.f32 %v3455_v43, 0.0  ;;  %v3605_v52 = vmax.f32 %v3548_v20, 0.0 }
 0x3fe   : > { %v3458_v30 = vpop.f32.mrf.mxu0  ;;  %v3551_v45 = vpop.f32.mrf.mxu1  ;;  %5144 = vmatmul.mubr.bf16.vlgmr.msra.gmra.mxu0 %v11025_v34  ;;  %5237 = vmatmul.mubr.bf16.vlgmr.msra.gmra.mxu1 %v11027_v41 }
 0x3ff   : > { %v3459_v63 = vadd.f32 %v3458_v30, %v10996_v33  ;;  %v3552_v31 = vadd.f32 %v3551_v45, %v10999_v13  ;;  %5298 = vmatpush1.bf16.msra.mxu0 %v8541_v60  ;;  %5391 = vmatpush1.bf16.msra.mxu1 %v8544_v12  ;;  %v3606_v26 = vmax.f32 %v3457_v42, 0.0  ;;  %v3608_v35 = vmax.f32 %v3550_v54, 0.0  ;;  %v8559_v60 = vld [vmem:[%s11978_s8 + $0xe8] ss:$28 sps:$4 sm:$0xff]  }
 0x400   : > { %v3462_v38 = vpop.f32.mrf.mxu0  ;;  %v3555_v7 = vpop.f32.mrf.mxu1  ;;  %5299 = vmatprep.subr.bf16.mxu0 %v8549_v14  ;;  %5392 = vmatprep.subr.bf16.mxu1 %v8552_v23  ;;  %v8562_v14 = vld [vmem:[%s11978_s8 + $0x468] ss:$28 sps:$4 sm:$0xff]   ;;  %v8567_v23 = vld [vmem:[%s11978_s8 + $0xb4] ss:$28 sps:$4 sm:$0xff]  }
 0x401   : > { %v3607_v36 = vmax.f32 %v3459_v63, 0.0  ;;  %v3609_v1 = vmax.f32 %v3552_v31, 0.0  ;;  %v11066_v10 = vpack.c.bf16 %v3606_v26, %v3602_v27  ;;  %v11068_v15 = vpack.c.bf16 %v3608_v35, %v3604_v4  ;;  %v8570_v31 = vld [vmem:[%s11978_s8 + $0x434] ss:$28 sps:$4 sm:$0xff]  }
 0x402   : > { %v3464_v39 = vpop.f32.mrf.mxu0  ;;  %v3557_v2 = vpop.f32.mrf.mxu1  ;;  %v3463_v21 = vadd.f32 %v3462_v38, %v11002_v29  ;;  %v3556_v25 = vadd.f32 %v3555_v7, %v11005_v48  ;;  %v8565_v35 = vld [vmem:[%s11978_s8 + $0xb0] ss:$28 sps:$4 sm:$0xff]  }
 0x403   : > { %v11059_v5 = vpack.c.bf16 %v3607_v36, %v3603_v8  ;;  %v11061_v28 = vpack.c.bf16 %v3609_v1, %v3605_v52  ;;  %5300 = vmatpush1.bf16.msra.mxu0 %v8547_v40  ;;  %v3465_v3 = vadd.f32 %v3464_v39, %v10996_v33  ;;  %5393 = vmatpush1.bf16.msra.mxu1 %v8550_v62  ;;  %v8568_v52 = vld [vmem:[%s11978_s8 + $0x430] ss:$28 sps:$4 sm:$0xff]   ;;  %v8573_v36 = vld [vmem:[%s11978_s8 + $0x7c] ss:$28 sps:$4 sm:$0xff]  }
 0x404   : > { %v3466_v49 = vpop.f32.mrf.mxu0  ;;  %v3559_v56 = vpop.f32.mrf.mxu1  ;;  %5301 = vmatprep.subr.bf16.mxu0 %v8555_v9  ;;  %v3558_v22 = vadd.f32 %v3557_v2, %v10999_v13  ;;  %5394 = vmatprep.subr.bf16.mxu1 %v8558_v16  ;;  %v3610_v57 = vmax.f32 %v3463_v21, 0.0  ;;  %v3612_v30 = vmax.f32 %v3556_v25, 0.0  ;;  %v8576_v39 = vld [vmem:[%s11978_s8 + $0x3fc] ss:$28 sps:$4 sm:$0xff]   ;;  %v8579_v21 = vld [vmem:[%s11978_s8 + $0x44] ss:$28 sps:$4 sm:$0xff]  }
 0x405   : > { %v3467_v0 = vadd.f32 %v3466_v49, %v11002_v29  ;;  %v3560_v53 = vadd.f32 %v3559_v56, %v11005_v48  ;;  %5153 = vmatprep.mubr.bf16.mxu0 %v11059_v5  ;;  %5246 = vmatprep.mubr.bf16.mxu1 %v11061_v28  ;;  %v3611_v20 = vmax.f32 %v3465_v3, 0.0 }
 0x406   : > { %v3468_v11 = vpop.f32.mrf.mxu0  ;;  %v3561_v51 = vpop.f32.mrf.mxu1  ;;  %5154 = vmatmul.mubr.bf16.gmra.mxu0 %v11066_v10  ;;  %5247 = vmatmul.mubr.bf16.gmra.mxu1 %v11068_v15  ;;  %v3613_v42 = vmax.f32 %v3558_v22, 0.0 }
 0x407   : > { %v3469_v47 = vadd.f32 %v3468_v11, %v10996_v33  ;;  %v3562_v24 = vadd.f32 %v3561_v51, %v10999_v13  ;;  %5302 = vmatpush1.bf16.msra.mxu0 %v8553_v44  ;;  %v3614_v12 = vmax.f32 %v3467_v0, 0.0  ;;  %v3616_v43 = vmax.f32 %v3560_v53, 0.0  ;;  %5395 = vmatpush1.bf16.msra.mxu1 %v8556_v58  ;;  %v8571_v58 = vld [vmem:[%s11978_s8 + $0x78] ss:$28 sps:$4 sm:$0xff]  }
 0x408   : > { %v3472_v18 = vpop.f32.mrf.mxu0  ;;  %v3565_v6 = vpop.f32.mrf.mxu1  ;;  %5303 = vmatprep.subr.bf16.mxu0 %v8561_v59  ;;  %5396 = vmatprep.subr.bf16.mxu1 %v8564_v17  ;;  %v8574_v17 = vld [vmem:[%s11978_s8 + $0x3f8] ss:$28 sps:$4 sm:$0xff]  }
 0x409   : > { %v3615_v54 = vmax.f32 %v3469_v47, 0.0  ;;  %v3617_v50 = vmax.f32 %v3562_v24, 0.0  ;;  %v11110_v38 = vpack.c.bf16 %v3614_v12, %v3610_v57  ;;  %v11112_v7 = vpack.c.bf16 %v3616_v43, %v3612_v30  ;;  %v8580_v30 = vld [vmem:[%s11978_s8 + $0x3c0] ss:$28 sps:$4 sm:$0xff]  }
 0x40a   : > { %v3474_v45 = vpop.f32.mrf.mxu0  ;;  %v3567_v63 = vpop.f32.mrf.mxu1  ;;  %v3473_v2 = vadd.f32 %v3472_v18, %v11002_v29  ;;  %v3566_v16 = vadd.f32 %v3565_v6, %v11005_v48  ;;  %v8582_v18 = vld [vmem:[%s11978_s8 + $0x3c4] ss:$28 sps:$4 sm:$0xff]  }
 0x40b   : > { %v11103_v40 = vpack.c.bf16 %v3615_v54, %v3611_v20  ;;  %v11105_v26 = vpack.c.bf16 %v3617_v50, %v3613_v42  ;;  %5304 = vmatpush1.bf16.msra.mxu0 %v8559_v60  ;;  %v3475_v62 = vadd.f32 %v3474_v45, %v10996_v33  ;;  %5397 = vmatpush1.bf16.msra.mxu1 %v8562_v14  ;;  %v8585_v45 = vld [vmem:[%s11978_s8 + $0xc] ss:$28 sps:$4 sm:$0xff]  }
 0x40c   : > { %v3476_v9 = vpop.f32.mrf.mxu0  ;;  %v3569_v8 = vpop.f32.mrf.mxu1  ;;  %5305 = vmatprep.subr.bf16.mxu0 %v8567_v23  ;;  %v3568_v1 = vadd.f32 %v3567_v63, %v10999_v13  ;;  %5398 = vmatprep.subr.bf16.mxu1 %v8570_v31  ;;  %v3618_v24 = vmax.f32 %v3473_v2, 0.0  ;;  %v3620_v60 = vmax.f32 %v3566_v16, 0.0  ;;  %v8577_v23 = vld [vmem:[%s11978_s8 + $0x40] ss:$28 sps:$4 sm:$0xff]  }
 0x40d   : > { %v3477_v27 = vadd.f32 %v3476_v9, %v11002_v29  ;;  %v3570_v4 = vadd.f32 %v3569_v8, %v11005_v48  ;;  %5163 = vmatprep.mubr.bf16.mxu0 %v11103_v40  ;;  %5256 = vmatprep.mubr.bf16.mxu1 %v11105_v26  ;;  %v3619_v25 = vmax.f32 %v3475_v62, 0.0  ;;  %v8588_v62 = vld [vmem:[%s11978_s8 + $0x38c] ss:$28 sps:$4 sm:$0xff]  }
 0x40e   : > { %v3478_v44 = vpop.f32.mrf.mxu0  ;;  %v3571_v3 = vpop.f32.mrf.mxu1  ;;  %5164 = vmatmul.mubr.bf16.gmra.mxu0 %v11110_v38  ;;  %5257 = vmatmul.mubr.bf16.gmra.mxu1 %v11112_v7  ;;  %v3621_v11 = vmax.f32 %v3568_v1, 0.0 }
 0x40f   : > { %v3479_v49 = vadd.f32 %v3478_v44, %v10996_v33  ;;  %v3572_v56 = vadd.f32 %v3571_v3, %v10999_v13  ;;  %5306 = vmatpush1.bf16.msra.mxu0 %v8565_v35  ;;  %v3622_v59 = vmax.f32 %v3477_v27, 0.0  ;;  %v3624_v22 = vmax.f32 %v3570_v4, 0.0  ;;  %5399 = vmatpush1.bf16.msra.mxu1 %v8568_v52  ;;  %v8583_v4 = vld [vmem:[%s11978_s8 + $0x8] ss:$28 sps:$4 sm:$0xff]  }
 0x410   : > { %v3482_v0 = vpop.f32.mrf.mxu0  ;;  %v3575_v53 = vpop.f32.mrf.mxu1  ;;  %5307 = vmatprep.subr.bf16.mxu0 %v8573_v36  ;;  %5400 = vmatprep.subr.bf16.mxu1 %v8576_v39  ;;  %v8586_v3 = vld [vmem:[%s11978_s8 + $0x388] ss:$28 sps:$4 sm:$0xff]  }
 0x411   : > { %v3623_v51 = vmax.f32 %v3479_v49, 0.0  ;;  %v3625_v47 = vmax.f32 %v3572_v56, 0.0  ;;  %v11154_v20 = vpack.c.bf16 %v3622_v59, %v3618_v24  ;;  %v11156_v42 = vpack.c.bf16 %v3624_v22, %v3620_v60  ;;  %v8591_v49 = vld [vmem:[%s11978_s8 + $0x354] ss:$28 sps:$4 sm:$0xff]  }
 0x412   : > { %v3484_v12 = vpop.f32.mrf.mxu0  ;;  %v3577_v43 = vpop.f32.mrf.mxu1  ;;  %v3483_v9 = vadd.f32 %v3482_v0, %v11002_v29  ;;  %v3576_v8 = vadd.f32 %v3575_v53, %v11005_v48 }
 0x413   : > { %v11147_v6 = vpack.c.bf16 %v3623_v51, %v3619_v25  ;;  %v11149_v14 = vpack.c.bf16 %v3625_v47, %v3621_v11  ;;  %5308 = vmatpush1.bf16.msra.mxu0 %v8571_v58  ;;  %v3485_v54 = vadd.f32 %v3484_v12, %v10996_v33  ;;  %5401 = vmatpush1.bf16.msra.mxu1 %v8574_v17  ;;  %v8594_v25 = vld [vmem:[%s11978_s8 + $0x6d4] ss:$28 sps:$4 sm:$0xff]  }
 0x414   : > { %v3486_v50 = vpop.f32.mrf.mxu0  ;;  %v3579_v57 = vpop.f32.mrf.mxu1  ;;  %5309 = vmatprep.subr.bf16.mxu0 %v8579_v21  ;;  %v3578_v63 = vadd.f32 %v3577_v43, %v10999_v13  ;;  %5402 = vmatprep.subr.bf16.mxu1 %v8582_v18  ;;  %v3626_v0 = vmax.f32 %v3483_v9, 0.0  ;;  %v3628_v53 = vmax.f32 %v3576_v8, 0.0  ;;  %v8589_v47 = vld [vmem:[%s11978_s8 + $0x350] ss:$28 sps:$4 sm:$0xff]  }
 0x415   : > { %v3487_v31 = vadd.f32 %v3486_v50, %v11002_v29  ;;  %v3580_v35 = vadd.f32 %v3579_v57, %v11005_v48  ;;  %5173 = vmatprep.mubr.bf16.mxu0 %v11147_v6  ;;  %5266 = vmatprep.mubr.bf16.mxu1 %v11149_v14  ;;  %v3627_v56 = vmax.f32 %v3485_v54, 0.0  ;;  %v8597_v54 = vld [vmem:[%s11978_s8 + $0x31c] ss:$28 sps:$4 sm:$0xff]  }
 0x416   : > { %v3488_v52 = vpop.f32.mrf.mxu0  ;;  %v3581_v36 = vpop.f32.mrf.mxu1  ;;  %5174 = vmatmul.mubr.bf16.gmra.mxu0 %v11154_v20  ;;  %5267 = vmatmul.mubr.bf16.gmra.mxu1 %v11156_v42  ;;  %v3629_v58 = vmax.f32 %v3578_v63, 0.0 }
 0x417   : > { %v3489_v1 = vadd.f32 %v3488_v52, %v10996_v33  ;;  %v3582_v27 = vadd.f32 %v3581_v36, %v10999_v13  ;;  %5310 = vmatpush1.bf16.msra.mxu0 %v8577_v23  ;;  %v3630_v39 = vmax.f32 %v3487_v31, 0.0  ;;  %v3632_v2 = vmax.f32 %v3580_v35, 0.0  ;;  %5403 = vmatpush1.bf16.msra.mxu1 %v8580_v30  ;;  %v8592_v23 = vld [vmem:[%s11978_s8 + $0x6d0] ss:$28 sps:$4 sm:$0xff]   ;;  %v8595_v52 = vld [vmem:[%s11978_s8 + $0x318] ss:$28 sps:$4 sm:$0xff]  }
 0x418   : > { %v3492_v16 = vpop.f32.mrf.mxu0  ;;  %v3585_v44 = vpop.f32.mrf.mxu1  ;;  %5311 = vmatprep.subr.bf16.mxu0 %v8585_v45  ;;  %5404 = vmatprep.subr.bf16.mxu1 %v8588_v62  ;;  %v8600_v45 = vld [vmem:[%s11978_s8 + $0x69c] ss:$28 sps:$4 sm:$0xff]  }
 0x419   : > { %v3631_v59 = vmax.f32 %v3489_v1, 0.0  ;;  %v3633_v22 = vmax.f32 %v3582_v27, 0.0  ;;  %v11198_v24 = vpack.c.bf16 %v3630_v39, %v3626_v0  ;;  %v11200_v60 = vpack.c.bf16 %v3632_v2, %v3628_v53  ;;  %v8598_v1 = vld [vmem:[%s11978_s8 + $0x698] ss:$28 sps:$4 sm:$0xff]   ;;  %v8606_v2 = vld [vmem:[%s11978_s8 + $0x664] ss:$28 sps:$4 sm:$0xff]  }
 0x41a   : > { %v3494_v17 = vpop.f32.mrf.mxu0  ;;  %v3587_v21 = vpop.f32.mrf.mxu1  ;;  %v3493_v63 = vadd.f32 %v3492_v16, %v11002_v29  ;;  %v3586_v62 = vadd.f32 %v3585_v44, %v11005_v48  ;;  %v8612_v0 = vld [vmem:[%s11978_s8 + $0x62c] ss:$28 sps:$4 sm:$0xff]  }
 0x41b   : > { %v11191_v11 = vpack.c.bf16 %v3631_v59, %v3627_v56  ;;  %v11193_v51 = vpack.c.bf16 %v3633_v22, %v3629_v58  ;;  %5312 = vmatpush1.bf16.msra.mxu0 %v8583_v4  ;;  %v3495_v12 = vadd.f32 %v3494_v17, %v10996_v33  ;;  %5405 = vmatpush1.bf16.msra.mxu1 %v8586_v3  ;;  %v8604_v58 = vld [vmem:[%s11978_s8 + $0x660] ss:$28 sps:$4 sm:$0xff]   ;;  %v8609_v22 = vld [vmem:[%s11978_s8 + $0x2ac] ss:$28 sps:$4 sm:$0xff]  }
 0x41c   : > { %v3496_v43 = vpop.f32.mrf.mxu0  ;;  %v3589_v18 = vpop.f32.mrf.mxu1  ;;  %5313 = vmatprep.subr.bf16.mxu0 %v8591_v49  ;;  %v3588_v50 = vadd.f32 %v3587_v21, %v10999_v13  ;;  %5406 = vmatprep.subr.bf16.mxu1 %v8594_v25  ;;  %v3634_v39 = vmax.f32 %v3493_v63, 0.0  ;;  %v3636_v16 = vmax.f32 %v3586_v62, 0.0  ;;  %v8601_v49 = vld [vmem:[%s11978_s8 + $0x2e0] ss:$28 sps:$4 sm:$0xff]   ;;  %v8607_v53 = vld [vmem:[%s11978_s8 + $0x2a8] ss:$28 sps:$4 sm:$0xff]  }
 0x41d   : > { %v3497_v57 = vadd.f32 %v3496_v43, %v11002_v29  ;;  %v3590_v30 = vadd.f32 %v3589_v18, %v11005_v48  ;;  %5183 = vmatprep.mubr.bf16.mxu0 %v11191_v11  ;;  %5276 = vmatprep.mubr.bf16.mxu1 %v11193_v51  ;;  %v3635_v36 = vmax.f32 %v3495_v12, 0.0  ;;  %v8610_v17 = vld [vmem:[%s11978_s8 + $0x628] ss:$28 sps:$4 sm:$0xff]   ;;  %v8615_v21 = vld [vmem:[%s11978_s8 + $0x274] ss:$28 sps:$4 sm:$0xff]  }
 0x41e   : > { %v3498_v31 = vpop.f32.mrf.mxu0  ;;  %v3591_v35 = vpop.f32.mrf.mxu1  ;;  %5184 = vmatmul.mubr.bf16.gmra.mxu0 %v11198_v24  ;;  %5277 = vmatmul.mubr.bf16.gmra.mxu1 %v11200_v60  ;;  %v8618_v25 = vld [vmem:[%s11978_s8 + $0x5f4] ss:$28 sps:$4 sm:$0xff]   ;;  %v8621_v43 = vld [vmem:[%s11978_s8 + $0x23c] ss:$28 sps:$4 sm:$0xff]   ;;  %v8633_v63 = vld [vmem:[%s11978_s8 + $0x1cc] ss:$28 sps:$4 sm:$0xff]  }
 0x41f   : > { %v3499_v9 = vadd.f32 %v3498_v31, %v10996_v33  ;;  %v3592_v8 = vadd.f32 %v3591_v35, %v10999_v13  ;;  %5314 = vmatpush2.bf16.msra.mxu0 %v8589_v47  ;;  %v3638_v29 = vmax.f32 %v3497_v57, 0.0  ;;  %5407 = vmatpush2.bf16.msra.mxu1 %v8592_v23  ;;  %v8603_v33 = vld [vmem:[%s11978_s8 + $0x2e4] ss:$28 sps:$4 sm:$0xff]   ;;  %v3637_v13 = vmax.f32 %v3588_v50, 0.0  ;;  %v8613_v47 = vld [vmem:[%s11978_s8 + $0x270] ss:$28 sps:$4 sm:$0xff]  }
 0x420   : > { %5315 = vmatprep.subr.bf16.mxu0 %v8597_v54  ;;  %v3640_v48 = vmax.f32 %v3590_v30, 0.0  ;;  %5408 = vmatprep.subr.bf16.mxu1 %v8600_v45  ;;  %v8616_v12 = vld [vmem:[%s11978_s8 + $0x5f0] ss:$28 sps:$4 sm:$0xff]   ;;  %v8624_v18 = vld [vmem:[%s11978_s8 + $0x5bc] ss:$28 sps:$4 sm:$0xff]  }
 0x421   : > { %v3639_v27 = vmax.f32 %v3499_v9, 0.0  ;;  %v3641_v4 = vmax.f32 %v3592_v8, 0.0  ;;  %v11242_v56 = vpack.c.bf16 %v3638_v29, %v3634_v39  ;;  %v8619_v23 = vld [vmem:[%s11978_s8 + $0x238] ss:$28 sps:$4 sm:$0xff]   ;;  %v8627_v50 = vld [vmem:[%s11978_s8 + $0x204] ss:$28 sps:$4 sm:$0xff]  }
 0x422   : > { %v11247_v59 = vpack.c.bf16 %v3640_v48, %v3636_v16  ;;  %v8622_v54 = vld [vmem:[%s11978_s8 + $0x5b8] ss:$28 sps:$4 sm:$0xff]   ;;  %v8630_v57 = vld [vmem:[%s11978_s8 + $0x584] ss:$28 sps:$4 sm:$0xff]   ;;  %v8636_v31 = vld [vmem:[%s11978_s8 + $0x54c] ss:$28 sps:$4 sm:$0xff]  }
 0x423   : > { %v11235_v44 = vpack.c.bf16 %v3639_v27, %v3635_v36  ;;  %v11237_v3 = vpack.c.bf16 %v3641_v4, %v3637_v13  ;;  %5316 = vmatpush2.bf16.msra.mxu0 %v8595_v52  ;;  %5409 = vmatpush2.bf16.msra.mxu1 %v8598_v1  ;;  %v8625_v30 = vld [vmem:[%s11978_s8 + $0x200] ss:$28 sps:$4 sm:$0xff]   ;;  %v8631_v35 = vld [vmem:[%s11978_s8 + $0x1c8] ss:$28 sps:$4 sm:$0xff]   ;;  %v8637_v52 = vld [vmem:[%s11978_s8 + $0x198] ss:$28 sps:$4 sm:$0xff]  }
 0x424   : > { %5317 = vmatprep.subr.bf16.mxu0 %v8603_v33  ;;  %5410 = vmatprep.subr.bf16.mxu1 %v8606_v2  ;;  %v8628_v45 = vld [vmem:[%s11978_s8 + $0x580] ss:$28 sps:$4 sm:$0xff]   ;;  %v8634_v62 = vld [vmem:[%s11978_s8 + $0x548] ss:$28 sps:$4 sm:$0xff]   ;;  %v8640_v36 = vld [vmem:[%s11978_s8 + $0x518] ss:$28 sps:$4 sm:$0xff]  }
 0x425   : > { %5193 = vmatprep.mubr.bf16.mxu0 %v11235_v44  ;;  %5286 = vmatprep.mubr.bf16.mxu1 %v11237_v3  ;;  %v8639_v9 = vld [vmem:[%s11978_s8 + $0x19c] ss:$28 sps:$4 sm:$0xff]   ;;  %v8645_v29 = vld [vmem:[%s11978_s8 + $0x164] ss:$28 sps:$4 sm:$0xff]   ;;  %v8651_v48 = vld [vmem:[%s11978_s8 + $0x12c] ss:$28 sps:$4 sm:$0xff]  }
 0x426   : > { %5194 = vmatmul.mubr.bf16.gmra.mxu0 %v11242_v56  ;;  %5287 = vmatmul.mubr.bf16.gmra.mxu1 %v11247_v59  ;;  %v8642_v8 = vld [vmem:[%s11978_s8 + $0x51c] ss:$28 sps:$4 sm:$0xff]   ;;  %v8648_v1 = vld [vmem:[%s11978_s8 + $0x4e4] ss:$28 sps:$4 sm:$0xff]   ;;  %v8654_v27 = vld [vmem:[%s11978_s8 + $0x4ac] ss:$28 sps:$4 sm:$0xff]  }
 0x427   : > { %5318 = vmatpush2.bf16.msra.mxu0 %v8601_v49  ;;  %5411 = vmatpush2.bf16.msra.mxu1 %v8604_v58  ;;  %v8643_v33 = vld [vmem:[%s11978_s8 + $0x160] ss:$28 sps:$4 sm:$0xff]   ;;  %v8649_v4 = vld [vmem:[%s11978_s8 + $0x128] ss:$28 sps:$4 sm:$0xff]   ;;  %v8657_v2 = vld [vmem:[%s11978_s8 + $0xf4] ss:$28 sps:$4 sm:$0xff]  }
 0x428   : > { %5329 = vmatprep.mubr.bf16.mxu0 %v11015_v32  ;;  %5422 = vmatprep.mubr.bf16.mxu1 %v11017_v46  ;;  %v8646_v13 = vld [vmem:[%s11978_s8 + $0x4e0] ss:$28 sps:$4 sm:$0xff]   ;;  %v8652_v39 = vld [vmem:[%s11978_s8 + $0x4a8] ss:$28 sps:$4 sm:$0xff]   ;;  %v8660_v16 = vld [vmem:[%s11978_s8 + $0x474] ss:$28 sps:$4 sm:$0xff]  }
 0x429   : > { %5319 = vmatprep.subr.bf16.mxu0 %v8609_v22  ;;  %5412 = vmatprep.subr.bf16.mxu1 %v8612_v0  ;;  %v8655_v49 = vld [vmem:[%s11978_s8 + $0xf0] ss:$28 sps:$4 sm:$0xff]   ;;  %v8663_v22 = vld [vmem:[%s11978_s8 + $0xbc] ss:$28 sps:$4 sm:$0xff]  }
 0x42a   : > { %v8658_v58 = vld [vmem:[%s11978_s8 + $0x470] ss:$28 sps:$4 sm:$0xff]   ;;  %v8666_v0 = vld [vmem:[%s11978_s8 + $0x43c] ss:$28 sps:$4 sm:$0xff]  }
 0x42b   : > { %5320 = vmatpush2.bf16.msra.mxu0 %v8607_v53  ;;  %5413 = vmatpush2.bf16.msra.mxu1 %v8610_v17  ;;  %v8661_v53 = vld [vmem:[%s11978_s8 + $0xb8] ss:$28 sps:$4 sm:$0xff]  }
 0x42c   : > { %5321 = vmatprep.subr.bf16.mxu0 %v8615_v21  ;;  %5414 = vmatprep.subr.bf16.mxu1 %v8618_v25  ;;  %v8664_v17 = vld [vmem:[%s11978_s8 + $0x438] ss:$28 sps:$4 sm:$0xff]   ;;  %v8669_v21 = vld [vmem:[%s11978_s8 + $0x84] ss:$28 sps:$4 sm:$0xff]  }
 0x42d   : > { %v8672_v25 = vld [vmem:[%s11978_s8 + $0x404] ss:$28 sps:$4 sm:$0xff]  }
 0x42f   : > { %5322 = vmatpush2.bf16.msra.mxu0 %v8613_v47  ;;  %5415 = vmatpush2.bf16.msra.mxu1 %v8616_v12  ;;  %v8667_v47 = vld [vmem:[%s11978_s8 + $0x80] ss:$28 sps:$4 sm:$0xff]  }
 0x430   : > { %5323 = vmatprep.subr.bf16.mxu0 %v8621_v43  ;;  %5416 = vmatprep.subr.bf16.mxu1 %v8624_v18  ;;  %v8670_v12 = vld [vmem:[%s11978_s8 + $0x400] ss:$28 sps:$4 sm:$0xff]   ;;  %v8675_v43 = vld [vmem:[%s11978_s8 + $0x4c] ss:$28 sps:$4 sm:$0xff]  }
 0x431   : > { %v8678_v18 = vld [vmem:[%s11978_s8 + $0x3cc] ss:$28 sps:$4 sm:$0xff]  }
 0x433   : > { %5324 = vmatpush2.bf16.msra.mxu0 %v8619_v23  ;;  %5417 = vmatpush2.bf16.msra.mxu1 %v8622_v54  ;;  %v8673_v23 = vld [vmem:[%s11978_s8 + $0x48] ss:$28 sps:$4 sm:$0xff]  }
 0x434   : > { %5325 = vmatprep.subr.bf16.mxu0 %v8627_v50  ;;  %5418 = vmatprep.subr.bf16.mxu1 %v8630_v57  ;;  %v8676_v54 = vld [vmem:[%s11978_s8 + $0x3c8] ss:$28 sps:$4 sm:$0xff]   ;;  %v8681_v50 = vld [vmem:[%s11978_s8 + $0x14] ss:$28 sps:$4 sm:$0xff]  }
 0x435   : > { %v8684_v57 = vld [vmem:[%s11978_s8 + $0x394] ss:$28 sps:$4 sm:$0xff]  }
 0x437   : > { %5326 = vmatpush2.bf16.msra.mxu0 %v8625_v30  ;;  %5419 = vmatpush2.bf16.msra.mxu1 %v8628_v45  ;;  %v8679_v30 = vld [vmem:[%s11978_s8 + $0x10] ss:$28 sps:$4 sm:$0xff]  }
 0x438   : > { %5327 = vmatprep.subr.bf16.mxu0 %v8633_v63  ;;  %5420 = vmatprep.subr.bf16.mxu1 %v8636_v31  ;;  %v8682_v45 = vld [vmem:[%s11978_s8 + $0x390] ss:$28 sps:$4 sm:$0xff]   ;;  %v8687_v63 = vld [vmem:[%s11978_s8 + $0x35c] ss:$28 sps:$4 sm:$0xff]  }
 0x439   : > { %v8690_v31 = vld [vmem:[%s11978_s8 + $0x6dc] ss:$28 sps:$4 sm:$0xff]  }
 0x43b   : > { %5328 = vmatpush2.bf16.msra.mxu0 %v8631_v35  ;;  %5421 = vmatpush2.bf16.msra.mxu1 %v8634_v62  ;;  %v8685_v35 = vld [vmem:[%s11978_s8 + $0x358] ss:$28 sps:$4 sm:$0xff]  }
 0x43c   : > { %5483 = vmatprep.subr.bf16.mxu0 %v8639_v9  ;;  %5576 = vmatprep.subr.bf16.mxu1 %v8642_v8  ;;  %v8688_v62 = vld [vmem:[%s11978_s8 + $0x6d8] ss:$28 sps:$4 sm:$0xff]   ;;  %v8693_v9 = vld [vmem:[%s11978_s8 + $0x324] ss:$28 sps:$4 sm:$0xff]  }
 0x43d   : > { %v8696_v8 = vld [vmem:[%s11978_s8 + $0x6a4] ss:$28 sps:$4 sm:$0xff]  }
 0x43e   : > { %5330 = vmatmul.mubr.bf16.vlgmr.msra.gmra.mxu0 %v11025_v34  ;;  %5423 = vmatmul.mubr.bf16.vlgmr.msra.gmra.mxu1 %v11027_v41 }
 0x43f   : > { %5339 = vmatprep.mubr.bf16.mxu0 %v11059_v5  ;;  %5432 = vmatprep.mubr.bf16.mxu1 %v11061_v28 }
 0x440   : > { %5484 = vmatpush1.bf16.msra.mxu0 %v8637_v52  ;;  %5577 = vmatpush1.bf16.msra.mxu1 %v8640_v36  ;;  %v8691_v52 = vld [vmem:[%s11978_s8 + $0x320] ss:$28 sps:$4 sm:$0xff]  }
 0x441   : > { %5485 = vmatprep.subr.bf16.mxu0 %v8645_v29  ;;  %5578 = vmatprep.subr.bf16.mxu1 %v8648_v1  ;;  %v8694_v36 = vld [vmem:[%s11978_s8 + $0x6a0] ss:$28 sps:$4 sm:$0xff]   ;;  %v8699_v29 = vld [vmem:[%s11978_s8 + $0x2ec] ss:$28 sps:$4 sm:$0xff]  }
 0x442   : > { %v8702_v1 = vld [vmem:[%s11978_s8 + $0x66c] ss:$28 sps:$4 sm:$0xff]  }
 0x444   : > { %5486 = vmatpush1.bf16.msra.mxu0 %v8643_v33  ;;  %5579 = vmatpush1.bf16.msra.mxu1 %v8646_v13  ;;  %v8697_v33 = vld [vmem:[%s11978_s8 + $0x2e8] ss:$28 sps:$4 sm:$0xff]  }
 0x445   : > { %5487 = vmatprep.subr.bf16.mxu0 %v8651_v48  ;;  %5580 = vmatprep.subr.bf16.mxu1 %v8654_v27  ;;  %v8700_v13 = vld [vmem:[%s11978_s8 + $0x668] ss:$28 sps:$4 sm:$0xff]   ;;  %v8705_v48 = vld [vmem:[%s11978_s8 + $0x2b4] ss:$28 sps:$4 sm:$0xff]  }
 0x446   : > { %5340 = vmatmul.mubr.bf16.gmra.mxu0 %v11066_v10  ;;  %5433 = vmatmul.mubr.bf16.gmra.mxu1 %v11068_v15  ;;  %v8708_v27 = vld [vmem:[%s11978_s8 + $0x634] ss:$28 sps:$4 sm:$0xff]  }
 0x447   : > { %5349 = vmatprep.mubr.bf16.mxu0 %v11103_v40  ;;  %5442 = vmatprep.mubr.bf16.mxu1 %v11105_v26 }
 0x448   : > { %5488 = vmatpush1.bf16.msra.mxu0 %v8649_v4  ;;  %5581 = vmatpush1.bf16.msra.mxu1 %v8652_v39  ;;  %v8703_v4 = vld [vmem:[%s11978_s8 + $0x2b0] ss:$28 sps:$4 sm:$0xff]  }
 0x449   : > { %5489 = vmatprep.subr.bf16.mxu0 %v8657_v2  ;;  %5582 = vmatprep.subr.bf16.mxu1 %v8660_v16  ;;  %v8706_v39 = vld [vmem:[%s11978_s8 + $0x630] ss:$28 sps:$4 sm:$0xff]   ;;  %v8711_v2 = vld [vmem:[%s11978_s8 + $0x27c] ss:$28 sps:$4 sm:$0xff]  }
 0x44a   : > { %v8714_v16 = vld [vmem:[%s11978_s8 + $0x5fc] ss:$28 sps:$4 sm:$0xff]  }
 0x44c   : > { %5490 = vmatpush1.bf16.msra.mxu0 %v8655_v49  ;;  %5583 = vmatpush1.bf16.msra.mxu1 %v8658_v58  ;;  %v8709_v49 = vld [vmem:[%s11978_s8 + $0x278] ss:$28 sps:$4 sm:$0xff]  }
 0x44d   : > { %5491 = vmatprep.subr.bf16.mxu0 %v8663_v22  ;;  %5584 = vmatprep.subr.bf16.mxu1 %v8666_v0  ;;  %v8712_v58 = vld [vmem:[%s11978_s8 + $0x5f8] ss:$28 sps:$4 sm:$0xff]   ;;  %v8717_v22 = vld [vmem:[%s11978_s8 + $0x244] ss:$28 sps:$4 sm:$0xff]  }
 0x44e   : > { %5350 = vmatmul.mubr.bf16.gmra.mxu0 %v11110_v38  ;;  %5443 = vmatmul.mubr.bf16.gmra.mxu1 %v11112_v7  ;;  %v8720_v0 = vld [vmem:[%s11978_s8 + $0x5c4] ss:$28 sps:$4 sm:$0xff]  }
 0x44f   : > { %5359 = vmatprep.mubr.bf16.mxu0 %v11147_v6  ;;  %5452 = vmatprep.mubr.bf16.mxu1 %v11149_v14 }
 0x450   : > { %5492 = vmatpush1.bf16.msra.mxu0 %v8661_v53  ;;  %5585 = vmatpush1.bf16.msra.mxu1 %v8664_v17  ;;  %v8715_v53 = vld [vmem:[%s11978_s8 + $0x240] ss:$28 sps:$4 sm:$0xff]  }
 0x451   : > { %5493 = vmatprep.subr.bf16.mxu0 %v8669_v21  ;;  %5586 = vmatprep.subr.bf16.mxu1 %v8672_v25  ;;  %v8718_v17 = vld [vmem:[%s11978_s8 + $0x5c0] ss:$28 sps:$4 sm:$0xff]   ;;  %v8723_v21 = vld [vmem:[%s11978_s8 + $0x20c] ss:$28 sps:$4 sm:$0xff]  }
 0x452   : > { %v8726_v25 = vld [vmem:[%s11978_s8 + $0x58c] ss:$28 sps:$4 sm:$0xff]  }
 0x454   : > { %5494 = vmatpush1.bf16.msra.mxu0 %v8667_v47  ;;  %5587 = vmatpush1.bf16.msra.mxu1 %v8670_v12  ;;  %v8721_v47 = vld [vmem:[%s11978_s8 + $0x208] ss:$28 sps:$4 sm:$0xff]  }
 0x455   : > { %5495 = vmatprep.subr.bf16.mxu0 %v8675_v43  ;;  %5588 = vmatprep.subr.bf16.mxu1 %v8678_v18  ;;  %v8724_v12 = vld [vmem:[%s11978_s8 + $0x588] ss:$28 sps:$4 sm:$0xff]   ;;  %v8729_v43 = vld [vmem:[%s11978_s8 + $0x1d4] ss:$28 sps:$4 sm:$0xff]  }
 0x456   : > { %5360 = vmatmul.mubr.bf16.gmra.mxu0 %v11154_v20  ;;  %5453 = vmatmul.mubr.bf16.gmra.mxu1 %v11156_v42  ;;  %v8732_v18 = vld [vmem:[%s11978_s8 + $0x554] ss:$28 sps:$4 sm:$0xff]  }
 0x457   : > { %5369 = vmatprep.mubr.bf16.mxu0 %v11191_v11  ;;  %5462 = vmatprep.mubr.bf16.mxu1 %v11193_v51 }
 0x458   : > { %5496 = vmatpush1.bf16.msra.mxu0 %v8673_v23  ;;  %5589 = vmatpush1.bf16.msra.mxu1 %v8676_v54  ;;  %v8727_v23 = vld [vmem:[%s11978_s8 + $0x1d0] ss:$28 sps:$4 sm:$0xff]  }
 0x459   : > { %5497 = vmatprep.subr.bf16.mxu0 %v8681_v50  ;;  %5590 = vmatprep.subr.bf16.mxu1 %v8684_v57  ;;  %v8730_v54 = vld [vmem:[%s11978_s8 + $0x550] ss:$28 sps:$4 sm:$0xff]   ;;  %v8733_v50 = vld [vmem:[%s11978_s8 + $0x360] ss:$28 sps:$4 sm:$0xff]  }
 0x45a   : > { %v8735_v57 = vld [vmem:[%s11978_s8 + $0x6e0] ss:$28 sps:$4 sm:$0xff]  }
 0x45c   : > { %5498 = vmatpush1.bf16.msra.mxu0 %v8679_v30  ;;  %5591 = vmatpush1.bf16.msra.mxu1 %v8682_v45  ;;  %v8734_v30 = vld [vmem:[%s11978_s8 + $0x1a0] ss:$28 sps:$4 sm:$0xff]  }
 0x45d   : > { %5499 = vmatprep.subr.bf16.mxu0 %v8687_v63  ;;  %5592 = vmatprep.subr.bf16.mxu1 %v8690_v31  ;;  %v8736_v45 = vld [vmem:[%s11978_s8 + $0x520] ss:$28 sps:$4 sm:$0xff]   ;;  %v8737_v63 = vld [vmem:[%s11978_s8 + $0x328] ss:$28 sps:$4 sm:$0xff]  }
 0x45e   : > { %5370 = vmatmul.mubr.bf16.gmra.mxu0 %v11198_v24  ;;  %5463 = vmatmul.mubr.bf16.gmra.mxu1 %v11200_v60  ;;  %v8739_v31 = vld [vmem:[%s11978_s8 + $0x6a8] ss:$28 sps:$4 sm:$0xff]  }
 0x45f   : > { %5379 = vmatprep.mubr.bf16.mxu0 %v11235_v44  ;;  %5472 = vmatprep.mubr.bf16.mxu1 %v11237_v3 }
 0x460   : > { %5500 = vmatpush2.bf16.msra.mxu0 %v8685_v35  ;;  %5593 = vmatpush2.bf16.msra.mxu1 %v8688_v62  ;;  %v8738_v35 = vld [vmem:[%s11978_s8 + $0x168] ss:$28 sps:$4 sm:$0xff]  }
 0x461   : > { %5501 = vmatprep.subr.bf16.mxu0 %v8693_v9  ;;  %5594 = vmatprep.subr.bf16.mxu1 %v8696_v8  ;;  %v8740_v62 = vld [vmem:[%s11978_s8 + $0x4e8] ss:$28 sps:$4 sm:$0xff]   ;;  %v8741_v9 = vld [vmem:[%s11978_s8 + $0x2f0] ss:$28 sps:$4 sm:$0xff]  }
 0x462   : > { %v8743_v8 = vld [vmem:[%s11978_s8 + $0x670] ss:$28 sps:$4 sm:$0xff]  }
 0x464   : > { %5502 = vmatpush2.bf16.msra.mxu0 %v8691_v52  ;;  %5595 = vmatpush2.bf16.msra.mxu1 %v8694_v36  ;;  %v8742_v52 = vld [vmem:[%s11978_s8 + $0x130] ss:$28 sps:$4 sm:$0xff]  }
 0x465   : > { %5503 = vmatprep.subr.bf16.mxu0 %v8699_v29  ;;  %5596 = vmatprep.subr.bf16.mxu1 %v8702_v1  ;;  %v8744_v36 = vld [vmem:[%s11978_s8 + $0x4b0] ss:$28 sps:$4 sm:$0xff]   ;;  %v8745_v29 = vld [vmem:[%s11978_s8 + $0x2b8] ss:$28 sps:$4 sm:$0xff]  }
 0x466   : > { %5380 = vmatmul.mubr.bf16.gmra.mxu0 %v11242_v56  ;;  %5473 = vmatmul.mubr.bf16.gmra.mxu1 %v11247_v59  ;;  %v8747_v1 = vld [vmem:[%s11978_s8 + $0x638] ss:$28 sps:$4 sm:$0xff]  }
 0x467   : > { %5515 = vmatprep.mubr.bf16.mxu0 %v11015_v32  ;;  %5608 = vmatprep.mubr.bf16.mxu1 %v11017_v46 }
 0x468   : > { %5504 = vmatpush2.bf16.msra.mxu0 %v8697_v33  ;;  %5597 = vmatpush2.bf16.msra.mxu1 %v8700_v13  ;;  %v8746_v33 = vld [vmem:[%s11978_s8 + $0xf8] ss:$28 sps:$4 sm:$0xff]  }
 0x469   : > { %5505 = vmatprep.subr.bf16.mxu0 %v8705_v48  ;;  %5598 = vmatprep.subr.bf16.mxu1 %v8708_v27  ;;  %v8748_v13 = vld [vmem:[%s11978_s8 + $0x478] ss:$28 sps:$4 sm:$0xff]   ;;  %v8749_v48 = vld [vmem:[%s11978_s8 + $0x280] ss:$28 sps:$4 sm:$0xff]  }
 0x46a   : > { %v8751_v27 = vld [vmem:[%s11978_s8 + $0x600] ss:$28 sps:$4 sm:$0xff]  }
 0x46c   : > { %5506 = vmatpush2.bf16.msra.mxu0 %v8703_v4  ;;  %5599 = vmatpush2.bf16.msra.mxu1 %v8706_v39  ;;  %v8750_v4 = vld [vmem:[%s11978_s8 + $0xc0] ss:$28 sps:$4 sm:$0xff]  }
 0x46d   : > { %5507 = vmatprep.subr.bf16.mxu0 %v8711_v2  ;;  %5600 = vmatprep.subr.bf16.mxu1 %v8714_v16  ;;  %v8752_v39 = vld [vmem:[%s11978_s8 + $0x440] ss:$28 sps:$4 sm:$0xff]   ;;  %v8753_v2 = vld [vmem:[%s11978_s8 + $0x248] ss:$28 sps:$4 sm:$0xff]  }
 0x46e   : > { %v8755_v16 = vld [vmem:[%s11978_s8 + $0x5c8] ss:$28 sps:$4 sm:$0xff]  }
 0x470   : > { %5508 = vmatpush2.bf16.msra.mxu0 %v8709_v49  ;;  %5601 = vmatpush2.bf16.msra.mxu1 %v8712_v58  ;;  %v8754_v49 = vld [vmem:[%s11978_s8 + $0x88] ss:$28 sps:$4 sm:$0xff]  }
 0x471   : > { %5509 = vmatprep.subr.bf16.mxu0 %v8717_v22  ;;  %5602 = vmatprep.subr.bf16.mxu1 %v8720_v0  ;;  %v8756_v58 = vld [vmem:[%s11978_s8 + $0x408] ss:$28 sps:$4 sm:$0xff]   ;;  %v8757_v22 = vld [vmem:[%s11978_s8 + $0x210] ss:$28 sps:$4 sm:$0xff]  }
 0x472   : > { %v8759_v0 = vld [vmem:[%s11978_s8 + $0x590] ss:$28 sps:$4 sm:$0xff]  }
 0x474   : > { %5510 = vmatpush2.bf16.msra.mxu0 %v8715_v53  ;;  %5603 = vmatpush2.bf16.msra.mxu1 %v8718_v17  ;;  %v8758_v53 = vld [vmem:[%s11978_s8 + $0x50] ss:$28 sps:$4 sm:$0xff]  }
 0x475   : > { %5511 = vmatprep.subr.bf16.mxu0 %v8723_v21  ;;  %5604 = vmatprep.subr.bf16.mxu1 %v8726_v25  ;;  %v8760_v17 = vld [vmem:[%s11978_s8 + $0x3d0] ss:$28 sps:$4 sm:$0xff]   ;;  %v8761_v21 = vld [vmem:[%s11978_s8 + $0x1d8] ss:$28 sps:$4 sm:$0xff]  }
 0x476   : > { %v8763_v25 = vld [vmem:[%s11978_s8 + $0x558] ss:$28 sps:$4 sm:$0xff]  }
 0x478   : > { %5512 = vmatpush2.bf16.msra.mxu0 %v8721_v47  ;;  %5605 = vmatpush2.bf16.msra.mxu1 %v8724_v12  ;;  %v8762_v47 = vld [vmem:[%s11978_s8 + $0x18] ss:$28 sps:$4 sm:$0xff]  }
 0x479   : > { %5513 = vmatprep.subr.bf16.mxu0 %v8729_v43  ;;  %5606 = vmatprep.subr.bf16.mxu1 %v8732_v18  ;;  %v8764_v12 = vld [vmem:[%s11978_s8 + $0x398] ss:$28 sps:$4 sm:$0xff]  }
 0x47c   : > { %5514 = vmatpush2.bf16.msra.mxu0 %v8727_v23  ;;  %5607 = vmatpush2.bf16.msra.mxu1 %v8730_v54 }
 0x47d   : > { %7833 = vmatprep.subr.bf16.mxu0 %v8733_v50  ;;  %7885 = vmatprep.subr.bf16.mxu1 %v8735_v57 }
 0x47f   : > { %5516 = vmatmul.mubr.bf16.vlgmr.msra.gmra.mxu0 %v11025_v34  ;;  %5609 = vmatmul.mubr.bf16.vlgmr.msra.gmra.mxu1 %v11027_v41 }
 0x480   : > { %5525 = vmatprep.mubr.bf16.mxu0 %v11059_v5  ;;  %5618 = vmatprep.mubr.bf16.mxu1 %v11061_v28 }
 0x481   : > { %7834 = vmatpush3.bf16.msra.mxu0 %v8734_v30  ;;  %7886 = vmatpush3.bf16.msra.mxu1 %v8736_v45 }
 0x482   : > { %7835 = vmatprep.subr.bf16.mxu0 %v8737_v63  ;;  %7887 = vmatprep.subr.bf16.mxu1 %v8739_v31 }
 0x485   : > { %7836 = vmatpush3.bf16.msra.mxu0 %v8738_v35  ;;  %7888 = vmatpush3.bf16.msra.mxu1 %v8740_v62 }
 0x486   : > { %7837 = vmatprep.subr.bf16.mxu0 %v8741_v9  ;;  %7889 = vmatprep.subr.bf16.mxu1 %v8743_v8 }
 0x487   : > { %5526 = vmatmul.mubr.bf16.gmra.mxu0 %v11066_v10  ;;  %5619 = vmatmul.mubr.bf16.gmra.mxu1 %v11068_v15 }
 0x488   : > { %5535 = vmatprep.mubr.bf16.mxu0 %v11103_v40  ;;  %5628 = vmatprep.mubr.bf16.mxu1 %v11105_v26 }
 0x489   : > { %7838 = vmatpush3.bf16.msra.mxu0 %v8742_v52  ;;  %7890 = vmatpush3.bf16.msra.mxu1 %v8744_v36 }
 0x48a   : > { %7839 = vmatprep.subr.bf16.mxu0 %v8745_v29  ;;  %7891 = vmatprep.subr.bf16.mxu1 %v8747_v1 }
 0x48d   : > { %7840 = vmatpush3.bf16.msra.mxu0 %v8746_v33  ;;  %7892 = vmatpush3.bf16.msra.mxu1 %v8748_v13 }
 0x48e   : > { %7841 = vmatprep.subr.bf16.mxu0 %v8749_v48  ;;  %7893 = vmatprep.subr.bf16.mxu1 %v8751_v27 }
 0x48f   : > { %5536 = vmatmul.mubr.bf16.gmra.mxu0 %v11110_v38  ;;  %5629 = vmatmul.mubr.bf16.gmra.mxu1 %v11112_v7 }
 0x490   : > { %5545 = vmatprep.mubr.bf16.mxu0 %v11147_v6  ;;  %5638 = vmatprep.mubr.bf16.mxu1 %v11149_v14 }
 0x491   : > { %7842 = vmatpush3.bf16.msra.mxu0 %v8750_v4  ;;  %7894 = vmatpush3.bf16.msra.mxu1 %v8752_v39 }
 0x492   : > { %7843 = vmatprep.subr.bf16.mxu0 %v8753_v2  ;;  %7895 = vmatprep.subr.bf16.mxu1 %v8755_v16 }
 0x495   : > { %7844 = vmatpush3.bf16.msra.mxu0 %v8754_v49  ;;  %7896 = vmatpush3.bf16.msra.mxu1 %v8756_v58 }
 0x496   : > { %7845 = vmatprep.subr.bf16.mxu0 %v8757_v22  ;;  %7897 = vmatprep.subr.bf16.mxu1 %v8759_v0 }
 0x497   : > { %5546 = vmatmul.mubr.bf16.gmra.mxu0 %v11154_v20  ;;  %5639 = vmatmul.mubr.bf16.gmra.mxu1 %v11156_v42 }
 0x498   : > { %5555 = vmatprep.mubr.bf16.mxu0 %v11191_v11  ;;  %5648 = vmatprep.mubr.bf16.mxu1 %v11193_v51 }
 0x499   : > { %7846 = vmatpush3.bf16.msra.mxu0 %v8758_v53  ;;  %7898 = vmatpush3.bf16.msra.mxu1 %v8760_v17 }
 0x49a   : > { %7847 = vmatprep.subr.bf16.mxu0 %v8761_v21  ;;  %7899 = vmatprep.subr.bf16.mxu1 %v8763_v25 }
 0x49d   : > { %7848 = vmatpush3.bf16.msra.mxu0 %v8762_v47  ;;  %7900 = vmatpush3.bf16.msra.mxu1 %v8764_v12 }
 0x49f   : > { %5556 = vmatmul.mubr.bf16.gmra.mxu0 %v11198_v24  ;;  %5649 = vmatmul.mubr.bf16.gmra.mxu1 %v11200_v60 }
 0x4a0   : > { %5565 = vmatprep.mubr.bf16.mxu0 %v11235_v44  ;;  %5658 = vmatprep.mubr.bf16.mxu1 %v11237_v3 }
 0x4a7   : > { %5566 = vmatmul.mubr.bf16.gmra.mxu0 %v11242_v56  ;;  %5659 = vmatmul.mubr.bf16.gmra.mxu1 %v11247_v59 }
 0x4a8   : > { %5701 = vmatprep.mubr.bf16.mxu0 %v11015_v32  ;;  %5782 = vmatprep.mubr.bf16.mxu1 %v11017_v46  ;;  %v11661_v32 = vld [vmem:[%s11979_s9] sm:$0x7f] }
 0x4a9   : > { %v11666_v46 = vrot.slane %v11661_v32, %v12050_v19 }
 0x4af   : > { %5702 = vmatmul.mubr.bf16.vlgmr.msra.gmra.mxu0 %v11025_v34  ;;  %5783 = vmatmul.mubr.bf16.vlgmr.msra.gmra.mxu1 %v11027_v41  ;;  %v11670_v34 = vrot.slane %v11661_v32, %v12048_v61 }
 0x4b0   : > { %5709 = vmatprep.mubr.bf16.mxu0 %v11059_v5  ;;  %5790 = vmatprep.mubr.bf16.mxu1 %v11061_v28 }
 0x4b7   : > { %5710 = vmatmul.mubr.bf16.gmra.mxu0 %v11066_v10  ;;  %5791 = vmatmul.mubr.bf16.gmra.mxu1 %v11068_v15 }
 0x4b8   : > { %5717 = vmatprep.mubr.bf16.mxu0 %v11103_v40  ;;  %5798 = vmatprep.mubr.bf16.mxu1 %v11105_v26 }
 0x4be   : > { %v5145_v41 = vpop.f32.mrf.mxu0  ;;  %v5238_v5 = vpop.f32.mrf.mxu1 }
 0x4bf   : > { %5718 = vmatmul.mubr.bf16.gmra.mxu0 %v11110_v38  ;;  %v5146_v28 = vadd.f32 %v5145_v41, %v11666_v46  ;;  %5799 = vmatmul.mubr.bf16.gmra.mxu1 %v11112_v7 }
 0x4c0   : > { %5725 = vmatprep.mubr.bf16.mxu0 %v11147_v6  ;;  %v5147_v10 = vpop.f32.mrf.mxu0  ;;  %v5240_v15 = vpop.f32.mrf.mxu1  ;;  %5806 = vmatprep.mubr.bf16.mxu1 %v11149_v14 }
 0x4c1   : > { %v5239_v40 = vadd.f32 %v5238_v5, %v5146_v28  ;;  %v5148_v19 = vadd.f32 %v5147_v10, %v11670_v34 }
 0x4c2   : > { %v5149_v26 = vpop.f32.mrf.mxu0  ;;  %v5242_v61 = vpop.f32.mrf.mxu1 }
 0x4c3   : > { %v7531_v43 = vmul.f32 -1.442695, %v5239_v40  ;;  %v5241_v18 = vadd.f32 %v5240_v15, %v5148_v19  ;;  %v5150_v23 = vadd.f32 %v5149_v26, %v11666_v46 }
 0x4c4   : > { %v5151_v38 = vpop.f32.mrf.mxu0  ;;  %v5244_v54 = vpop.f32.mrf.mxu1 }
 0x4c5   : > { %8789 = vpow2.f32 %v7531_v43  ;;  %v7532_v50 = vmul.f32 -1.442695, %v5241_v18  ;;  %v5243_v7 = vadd.f32 %v5242_v61, %v5150_v23  ;;  %v5152_v6 = vadd.f32 %v5151_v38, %v11670_v34 }
 0x4c6   : > { %v5155_v57 = vpop.f32.mrf.mxu0  ;;  %v5248_v63 = vpop.f32.mrf.mxu1 }
 0x4c7   : > { %8791 = vpow2.f32 %v7532_v50  ;;  %v7538_v30 = vmul.f32 -1.442695, %v5243_v7  ;;  %v5245_v45 = vadd.f32 %v5244_v54, %v5152_v6  ;;  %5726 = vmatmul.mubr.bf16.gmra.mxu0 %v11154_v20  ;;  %v5156_v14 = vadd.f32 %v5155_v57, %v11666_v46  ;;  %5807 = vmatmul.mubr.bf16.gmra.mxu1 %v11156_v42 }
 0x4c8   : > { %5733 = vmatprep.mubr.bf16.mxu0 %v11191_v11  ;;  %v5157_v31 = vpop.f32.mrf.mxu0  ;;  %5814 = vmatprep.mubr.bf16.mxu1 %v11193_v51  ;;  %v5250_v8 = vpop.f32.mrf.mxu1 }
 0x4c9   : > { %8793 = vpow2.f32 %v7538_v30  ;;  %v7539_v35 = vmul.f32 -1.442695, %v5245_v45  ;;  %v5249_v62 = vadd.f32 %v5248_v63, %v5156_v14  ;;  %v5158_v9 = vadd.f32 %v5157_v31, %v11670_v34 }
 0x4ca   : > { %v5159_v52 = vpop.f32.mrf.mxu0  ;;  %v5252_v1 = vpop.f32.mrf.mxu1 }
 0x4cb   : > { %8795 = vpow2.f32 %v7539_v35  ;;  %v7545_v36 = vmul.f32 -1.442695, %v5249_v62  ;;  %v5251_v20 = vadd.f32 %v5250_v8, %v5158_v9  ;;  %v5160_v29 = vadd.f32 %v5159_v52, %v11666_v46 }
 0x4cc   : > { %v5161_v33 = vpop.f32.mrf.mxu0  ;;  %v5254_v48 = vpop.f32.mrf.mxu1 }
 0x4cd   : > { %8797 = vpow2.f32 %v7545_v36  ;;  %v7546_v42 = vmul.f32 -1.442695, %v5251_v20  ;;  %v5253_v11 = vadd.f32 %v5252_v1, %v5160_v29  ;;  %v5162_v13 = vadd.f32 %v5161_v33, %v11670_v34 }
 0x4ce   : > { %v5165_v27 = vpop.f32.mrf.mxu0  ;;  %v5258_v2 = vpop.f32.mrf.mxu1 }
 0x4cf   : > { %8799 = vpow2.f32 %v7546_v42  ;;  %v7552_v51 = vmul.f32 -1.442695, %v5253_v11  ;;  %v5255_v4 = vadd.f32 %v5254_v48, %v5162_v13  ;;  %5734 = vmatmul.mubr.bf16.gmra.mxu0 %v11198_v24  ;;  %v5166_v39 = vadd.f32 %v5165_v27, %v11666_v46  ;;  %5815 = vmatmul.mubr.bf16.gmra.mxu1 %v11200_v60 }
 0x4d0   : > { %5741 = vmatprep.mubr.bf16.mxu0 %v11235_v44  ;;  %v5167_v16 = vpop.f32.mrf.mxu0  ;;  %5822 = vmatprep.mubr.bf16.mxu1 %v11237_v3  ;;  %v5260_v0 = vpop.f32.mrf.mxu1 }
 0x4d1   : > { %8801 = vpow2.f32 %v7552_v51  ;;  %v7553_v49 = vmul.f32 -1.442695, %v5255_v4  ;;  %v5259_v58 = vadd.f32 %v5258_v2, %v5166_v39  ;;  %v5168_v22 = vadd.f32 %v5167_v16, %v11670_v34 }
 0x4d2   : > { %v8790_v53 = vpop.eup %8789  ;;  %v5169_v17 = vpop.f32.mrf.mxu0 }
 0x4d3   : > { %v6083_v21 = vadd.f32 1.0, %v8790_v53  ;;  %8803 = vpow2.f32 %v7553_v49  ;;  %v7559_v24 = vmul.f32 -1.442695, %v5259_v58  ;;  %v5261_v25 = vadd.f32 %v5260_v0, %v5168_v22  ;;  %v5262_v47 = vpop.f32.mrf.mxu1 }
 0x4d4   : > { %v8792_v12 = vpop.eup %8791  ;;  %v5170_v60 = vadd.f32 %v5169_v17, %v11666_v46  ;;  %v5171_v44 = vpop.f32.mrf.mxu0 }
 0x4d5   : > { %8805 = vrcp.f32 %v6083_v21  ;;  %v6084_v41 = vadd.f32 1.0, %v8792_v12  ;;  %v7560_v5 = vmul.f32 -1.442695, %v5261_v25  ;;  %v5172_v28 = vadd.f32 %v5171_v44, %v11670_v34  ;;  %v5264_v3 = vpop.f32.mrf.mxu1 }
 0x4d6   : > { %v8794_v10 = vpop.eup %8793  ;;  %8807 = vpow2.f32 %v7559_v24  ;;  %v5263_v15 = vadd.f32 %v5262_v47, %v5170_v60  ;;  %v5175_v40 = vpop.f32.mrf.mxu0 }
 0x4d7   : > { %8809 = vrcp.f32 %v6084_v41  ;;  %v6090_v19 = vadd.f32 1.0, %v8794_v10  ;;  %v5265_v26 = vadd.f32 %v5264_v3, %v5172_v28  ;;  %5742 = vmatmul.mubr.bf16.gmra.mxu0 %v11242_v56  ;;  %v5176_v61 = vadd.f32 %v5175_v40, %v11666_v46  ;;  %v5268_v43 = vpop.f32.mrf.mxu1  ;;  %5823 = vmatmul.mubr.bf16.gmra.mxu1 %v11247_v59 }
 0x4d8   : > { %v8796_v18 = vpop.eup %8795  ;;  %8811 = vpow2.f32 %v7560_v5  ;;  %v7566_v23 = vmul.f32 -1.442695, %v5263_v15  ;;  %v5177_v38 = vpop.f32.mrf.mxu0 }
 0x4d9   : > { %8813 = vrcp.f32 %v6090_v19  ;;  %v6091_v54 = vadd.f32 1.0, %v8796_v18  ;;  %v7567_v50 = vmul.f32 -1.442695, %v5265_v26  ;;  %v5269_v7 = vadd.f32 %v5268_v43, %v5176_v61  ;;  %v5270_v6 = vpop.f32.mrf.mxu1 }
 0x4da   : > { %v8798_v57 = vpop.eup %8797  ;;  %8815 = vpow2.f32 %v7566_v23  ;;  %v5178_v30 = vadd.f32 %v5177_v38, %v11670_v34  ;;  %v5179_v45 = vpop.f32.mrf.mxu0 }
 0x4db   : > { %8817 = vrcp.f32 %v6091_v54  ;;  %v6097_v56 = vadd.f32 1.0, %v8798_v57  ;;  %v7573_v14 = vmul.f32 -1.442695, %v5269_v7  ;;  %v5180_v63 = vadd.f32 %v5179_v45, %v11666_v46  ;;  %v5272_v31 = vpop.f32.mrf.mxu1 }
 0x4dc   : > { %v8800_v35 = vpop.eup %8799  ;;  %8819 = vpow2.f32 %v7567_v50  ;;  %v5271_v59 = vadd.f32 %v5270_v6, %v5178_v30  ;;  %v5181_v62 = vpop.f32.mrf.mxu0 }
 0x4dd   : > { %8821 = vrcp.f32 %v6097_v56  ;;  %v6098_v9 = vadd.f32 1.0, %v8800_v35  ;;  %v5273_v8 = vadd.f32 %v5272_v31, %v5180_v63  ;;  %v5182_v52 = vadd.f32 %v5181_v62, %v11670_v34  ;;  %v5274_v36 = vpop.f32.mrf.mxu1 }
 0x4de   : > { %v8802_v20 = vpop.eup %8801  ;;  %8823 = vpow2.f32 %v7573_v14  ;;  %v7574_v29 = vmul.f32 -1.442695, %v5271_v59  ;;  %v5185_v1 = vpop.f32.mrf.mxu0 }
 0x4df   : > { %8825 = vrcp.f32 %v6098_v9  ;;  %v6104_v33 = vadd.f32 1.0, %v8802_v20  ;;  %v7580_v42 = vmul.f32 -1.442695, %v5273_v8  ;;  %v5275_v11 = vadd.f32 %v5274_v36, %v5182_v52  ;;  %v5278_v13 = vpop.f32.mrf.mxu1 }
 0x4e0   : > { %v8804_v48 = vpop.eup %8803  ;;  %8827 = vpow2.f32 %v7574_v29  ;;  %v5186_v27 = vadd.f32 %v5185_v1, %v11666_v46  ;;  %v5187_v51 = vpop.f32.mrf.mxu0 }
 0x4e1   : > { %8829 = vrcp.f32 %v6104_v33  ;;  %v6105_v4 = vadd.f32 1.0, %v8804_v48  ;;  %v7581_v39 = vmul.f32 -1.442695, %v5275_v11  ;;  %v5188_v2 = vadd.f32 %v5187_v51, %v11670_v34  ;;  %v5280_v16 = vpop.f32.mrf.mxu1 }
 0x4e2   : > { %v8806_v49 = vpop.eup %8805  ;;  %8831 = vpow2.f32 %v7580_v42  ;;  %v5279_v58 = vadd.f32 %v5278_v13, %v5186_v27  ;;  %v5189_v22 = vpop.f32.mrf.mxu0 }
 0x4e3   : > { %v8808_v0 = vpop.eup %8807  ;;  %8833 = vrcp.f32 %v6105_v4  ;;  %v5281_v53 = vadd.f32 %v5280_v16, %v5188_v2  ;;  %v5190_v17 = vadd.f32 %v5189_v22, %v11666_v46  ;;  %v5282_v21 = vpop.f32.mrf.mxu1 }
 0x4e4   : > { %v8810_v24 = vpop.eup %8809  ;;  %v6111_v25 = vadd.f32 1.0, %v8808_v0  ;;  %8835 = vpow2.f32 %v7581_v39  ;;  %v7587_v47 = vmul.f32 -1.442695, %v5279_v58  ;;  %v5191_v12 = vpop.f32.mrf.mxu0 }
 0x4e5   : > { %v8812_v60 = vpop.eup %8811  ;;  %v7680_v44 = vpack.c.bf16 %v8810_v24, %v8806_v49  ;;  %v7588_v41 = vmul.f32 -1.442695, %v5281_v53  ;;  %v5283_v5 = vadd.f32 %v5282_v21, %v5190_v17  ;;  %v5192_v28 = vadd.f32 %v5191_v12, %v11670_v34  ;;  %v5284_v3 = vpop.f32.mrf.mxu1 }
 0x4e6   : > { %v8814_v10 = vpop.eup %8813  ;;  %8837 = vrcp.f32 %v6111_v25  ;;  %v6112_v15 = vadd.f32 1.0, %v8812_v60  ;;  %v5195_v40 = vpop.f32.mrf.mxu0 }
 0x4e7   : > { %v8816_v19 = vpop.eup %8815  ;;  %6599 = vst [vmem:[%s11709_s13] sm:$0xff] %v7680_v44  ;;  %8839 = vpow2.f32 %v7587_v47  ;;  %v7594_v26 = vmul.f32 -1.442695, %v5283_v5  ;;  %v5285_v61 = vadd.f32 %v5284_v3, %v5192_v28  ;;  %v5196_v43 = vadd.f32 %v5195_v40, %v11666_v46  ;;  %v5288_v18 = vpop.f32.mrf.mxu1 }
 0x4e8   : > { %v8818_v23 = vpop.eup %8817  ;;  %8841 = vrcp.f32 %v6112_v15  ;;  %v6118_v38 = vadd.f32 1.0, %v8816_v19  ;;  %v5197_v54 = vpop.f32.mrf.mxu0  ;;  %v11722_v3 = vrot.slane %v11661_v32, %v12051_v55  ;;  %v11727_v19 = vrot.slane %v11661_v32, %v12049_v37 }
 0x4e9   : > { %v8820_v50 = vpop.eup %8819  ;;  %v7684_v7 = vpack.c.bf16 %v8818_v23, %v8814_v10  ;;  %8843 = vpow2.f32 %v7588_v41  ;;  %v7595_v6 = vmul.f32 -1.442695, %v5285_v61  ;;  %v5289_v57 = vadd.f32 %v5288_v18, %v5196_v43  ;;  %v5290_v30 = vpop.f32.mrf.mxu1 }
 0x4ea   : > { %v8822_v45 = vpop.eup %8821  ;;  %8845 = vrcp.f32 %v6118_v38  ;;  %v6119_v56 = vadd.f32 1.0, %v8820_v50  ;;  %v5198_v14 = vadd.f32 %v5197_v54, %v11670_v34  ;;  %v5199_v63 = vpop.f32.mrf.mxu0 }
 0x4eb   : > { %v8824_v31 = vpop.eup %8823  ;;  %6604 = vst [vmem:[%s11709_s13 + $0x1c] sm:$0xff] %v7684_v7  ;;  %8847 = vpow2.f32 %v7594_v26  ;;  %v7601_v35 = vmul.f32 -1.442695, %v5289_v57  ;;  %v5200_v59 = vadd.f32 %v5199_v63, %v11666_v46  ;;  %v5292_v62 = vpop.f32.mrf.mxu1 }
 0x4ec   : > { %v8826_v9 = vpop.eup %8825  ;;  %8849 = vrcp.f32 %v6119_v56  ;;  %v6125_v8 = vadd.f32 1.0, %v8824_v31  ;;  %v5291_v52 = vadd.f32 %v5290_v30, %v5198_v14  ;;  %v5201_v36 = vpop.f32.mrf.mxu0 }
 0x4ed   : > { %v8828_v20 = vpop.eup %8827  ;;  %v7688_v29 = vpack.c.bf16 %v8826_v9, %v8822_v45  ;;  %8851 = vpow2.f32 %v7595_v6  ;;  %v5293_v1 = vadd.f32 %v5292_v62, %v5200_v59  ;;  %v5202_v33 = vadd.f32 %v5201_v36, %v11670_v34  ;;  %v5294_v48 = vpop.f32.mrf.mxu1 }
 0x4ee   : > { %v8830_v42 = vpop.eup %8829  ;;  %8853 = vrcp.f32 %v6125_v8  ;;  %v6126_v11 = vadd.f32 1.0, %v8828_v20  ;;  %v7602_v13 = vmul.f32 -1.442695, %v5291_v52 }
 0x4ef   : > { %v8832_v46 = vpop.eup %8831  ;;  %6608 = vst [vmem:[%s11709_s13 + $0x38] sm:$0xff] %v7688_v29  ;;  %8855 = vpow2.f32 %v7601_v35  ;;  %v7608_v27 = vmul.f32 -1.442695, %v5293_v1  ;;  %v5295_v51 = vadd.f32 %v5294_v48, %v5202_v33 }
 0x4f0   : > { %v8834_v4 = vpop.eup %8833  ;;  %8857 = vrcp.f32 %v6126_v11  ;;  %v6132_v39 = vadd.f32 1.0, %v8832_v46 }
 0x4f1   : > { %v8836_v2 = vpop.eup %8835  ;;  %v7692_v16 = vpack.c.bf16 %v8834_v4, %v8830_v42  ;;  %8859 = vpow2.f32 %v7602_v13  ;;  %v7609_v49 = vmul.f32 -1.442695, %v5295_v51 }
 0x4f2   : > { %8861 = vrcp.f32 %v6132_v39  ;;  %v6133_v34 = vadd.f32 1.0, %v8836_v2 }
 0x4f3   : > { %v8838_v58 = vpop.eup %8837  ;;  %6612 = vst [vmem:[%s11709_s13 + $0x54] sm:$0xff] %v7692_v16  ;;  %8863 = vpow2.f32 %v7608_v27 }
 0x4f4   : > { %v8840_v22 = vpop.eup %8839  ;;  %8865 = vrcp.f32 %v6133_v34 }
 0x4f5   : > { %v8842_v0 = vpop.eup %8841  ;;  %v6139_v53 = vadd.f32 1.0, %v8840_v22  ;;  %8867 = vpow2.f32 %v7609_v49 }
 0x4f6   : > { %v8844_v17 = vpop.eup %8843  ;;  %v7696_v21 = vpack.c.bf16 %v8842_v0, %v8838_v58 }
 0x4f7   : > { %v8846_v24 = vpop.eup %8845  ;;  %v6140_v25 = vadd.f32 1.0, %v8844_v17  ;;  %8869 = vrcp.f32 %v6139_v53 }
 0x4f8   : > { %v8848_v47 = vpop.eup %8847  ;;  %6616 = vst [vmem:[%s11709_s13 + $0x70] sm:$0xff] %v7696_v21 }
 0x4f9   : > { %v8850_v12 = vpop.eup %8849  ;;  %8871 = vrcp.f32 %v6140_v25  ;;  %v6146_v60 = vadd.f32 1.0, %v8848_v47 }
 0x4fa   : > { %v8852_v44 = vpop.eup %8851  ;;  %v7700_v41 = vpack.c.bf16 %v8850_v12, %v8846_v24 }
 0x4fb   : > { %v8854_v5 = vpop.eup %8853  ;;  %v6147_v28 = vadd.f32 1.0, %v8852_v44  ;;  %8873 = vrcp.f32 %v6146_v60 }
 0x4fc   : > { %v8856_v10 = vpop.eup %8855  ;;  %6620 = vst [vmem:[%s11709_s13 + $0x8c] sm:$0xff] %v7700_v41 }
 0x4fd   : > { %v8858_v15 = vpop.eup %8857  ;;  %8875 = vrcp.f32 %v6147_v28  ;;  %v6153_v40 = vadd.f32 1.0, %v8856_v10 }
 0x4fe   : > { %v8860_v26 = vpop.eup %8859  ;;  %v7704_v61 = vpack.c.bf16 %v8858_v15, %v8854_v5  ;;  %v5331_v43 = vpop.f32.mrf.mxu0 }
 0x4ff   : > { %v8862_v18 = vpop.eup %8861  ;;  %v6154_v23 = vadd.f32 1.0, %v8860_v26  ;;  %v5332_v38 = vadd.f32 %v5331_v43, %v11722_v3  ;;  %v5424_v55 = vpop.f32.mrf.mxu1  ;;  %8877 = vrcp.f32 %v6153_v40 }
 0x500   : > { %v8864_v54 = vpop.eup %8863  ;;  %6624 = vst [vmem:[%s11709_s13 + $0xa8] sm:$0xff] %v7704_v61  ;;  %v5333_v50 = vpop.f32.mrf.mxu0 }
 0x501   : > { %v8866_v7 = vpop.eup %8865  ;;  %8879 = vrcp.f32 %v6154_v23  ;;  %v6160_v6 = vadd.f32 1.0, %v8864_v54  ;;  %v5425_v57 = vadd.f32 %v5424_v55, %v5332_v38  ;;  %v5334_v37 = vadd.f32 %v5333_v50, %v11727_v19  ;;  %v5426_v32 = vpop.f32.mrf.mxu1 }
 0x502   : > { %v8868_v30 = vpop.eup %8867  ;;  %v7708_v45 = vpack.c.bf16 %v8866_v7, %v8862_v18  ;;  %v5335_v56 = vpop.f32.mrf.mxu0 }
 0x503   : > { %v6161_v14 = vadd.f32 1.0, %v8868_v30  ;;  %v7533_v63 = vmul.f32 -1.442695, %v5425_v57  ;;  %v5427_v31 = vadd.f32 %v5426_v32, %v5334_v37  ;;  %v5428_v35 = vpop.f32.mrf.mxu1  ;;  %8881 = vrcp.f32 %v6160_v6 }
 0x504   : > { %6628 = vst [vmem:[%s11709_s13 + $0xc4] sm:$0xff] %v7708_v45  ;;  %v5336_v59 = vadd.f32 %v5335_v56, %v11722_v3  ;;  %v5337_v62 = vpop.f32.mrf.mxu0  ;;  %v8870_v9 = vpop.eup %8869 }
 0x505   : > { %8883 = vrcp.f32 %v6161_v14  ;;  %v7534_v8 = vmul.f32 -1.442695, %v5427_v31  ;;  %v5338_v52 = vadd.f32 %v5337_v62, %v11727_v19  ;;  %v5430_v36 = vpop.f32.mrf.mxu1 }
 0x506   : > { %v8872_v20 = vpop.eup %8871  ;;  %8885 = vpow2.f32 %v7533_v63  ;;  %v5429_v29 = vadd.f32 %v5428_v35, %v5336_v59  ;;  %v5341_v1 = vpop.f32.mrf.mxu0 }
 0x507   : > { %v7712_v33 = vpack.c.bf16 %v8872_v20, %v8870_v9  ;;  %8887 = vpow2.f32 %v7534_v8  ;;  %v5431_v42 = vadd.f32 %v5430_v36, %v5338_v52  ;;  %v5342_v11 = vadd.f32 %v5341_v1, %v11722_v3  ;;  %v5434_v13 = vpop.f32.mrf.mxu1 }
 0x508   : > { %v7540_v48 = vmul.f32 -1.442695, %v5429_v29  ;;  %v5343_v46 = vpop.f32.mrf.mxu0  ;;  %v8874_v27 = vpop.eup %8873 }
 0x509   : > { %6632 = vst [vmem:[%s11709_s13 + $0xe0] sm:$0xff] %v7712_v33  ;;  %v7541_v51 = vmul.f32 -1.442695, %v5431_v42  ;;  %v5435_v4 = vadd.f32 %v5434_v13, %v5342_v11  ;;  %v5344_v39 = vadd.f32 %v5343_v46, %v11727_v19  ;;  %v5436_v2 = vpop.f32.mrf.mxu1 }
 0x50a   : > { %v8876_v16 = vpop.eup %8875  ;;  %8889 = vpow2.f32 %v7540_v48  ;;  %v5345_v49 = vpop.f32.mrf.mxu0 }
 0x50b   : > { %v7716_v34 = vpack.c.bf16 %v8876_v16, %v8874_v27  ;;  %8891 = vpow2.f32 %v7541_v51  ;;  %v7547_v58 = vmul.f32 -1.442695, %v5435_v4  ;;  %v5437_v22 = vadd.f32 %v5436_v2, %v5344_v39  ;;  %v5438_v0 = vpop.f32.mrf.mxu1 }
 0x50c   : > { %v5346_v53 = vadd.f32 %v5345_v49, %v11722_v3  ;;  %v5347_v17 = vpop.f32.mrf.mxu0  ;;  %v8878_v21 = vpop.eup %8877 }
 0x50d   : > { %6636 = vst [vmem:[%s11709_s13 + $0xfc] sm:$0xff] %v7716_v34  ;;  %8893 = vpow2.f32 %v7547_v58  ;;  %v7548_v24 = vmul.f32 -1.442695, %v5437_v22  ;;  %v5348_v25 = vadd.f32 %v5347_v17, %v11727_v19  ;;  %v5440_v47 = vpop.f32.mrf.mxu1 }
 0x50e   : > { %v8880_v12 = vpop.eup %8879  ;;  %v5439_v60 = vadd.f32 %v5438_v0, %v5346_v53  ;;  %v5351_v44 = vpop.f32.mrf.mxu0 }
 0x50f   : > { %v7720_v41 = vpack.c.bf16 %v8880_v12, %v8878_v21  ;;  %8895 = vpow2.f32 %v7548_v24  ;;  %v5441_v5 = vadd.f32 %v5440_v47, %v5348_v25  ;;  %v5352_v28 = vadd.f32 %v5351_v44, %v11722_v3  ;;  %v5444_v10 = vpop.f32.mrf.mxu1 }
 0x510   : > { %v7554_v15 = vmul.f32 -1.442695, %v5439_v60  ;;  %v5353_v40 = vpop.f32.mrf.mxu0  ;;  %v8882_v26 = vpop.eup %8881 }
 0x511   : > { %6640 = vst [vmem:[%s11709_s13 + $0x118] sm:$0xff] %v7720_v41  ;;  %v7555_v61 = vmul.f32 -1.442695, %v5441_v5  ;;  %v5445_v43 = vadd.f32 %v5444_v10, %v5352_v28  ;;  %v5354_v18 = vadd.f32 %v5353_v40, %v11727_v19  ;;  %v5446_v23 = vpop.f32.mrf.mxu1 }
 0x512   : > { %v8884_v38 = vpop.eup %8883  ;;  %8897 = vpow2.f32 %v7554_v15  ;;  %v5355_v55 = vpop.f32.mrf.mxu0 }
 0x513   : > { %v8886_v54 = vpop.eup %8885  ;;  %v7724_v50 = vpack.c.bf16 %v8884_v38, %v8882_v26  ;;  %8899 = vpow2.f32 %v7555_v61  ;;  %v7561_v7 = vmul.f32 -1.442695, %v5445_v43  ;;  %v5447_v6 = vadd.f32 %v5446_v23, %v5354_v18  ;;  %v5448_v57 = vpop.f32.mrf.mxu1 }
 0x514   : > { %v8888_v37 = vpop.eup %8887  ;;  %v6085_v32 = vadd.f32 1.0, %v8886_v54  ;;  %v5356_v30 = vadd.f32 %v5355_v55, %v11722_v3  ;;  %v5357_v45 = vpop.f32.mrf.mxu0 }
 0x515   : > { %6644 = vst [vmem:[%s11709_s13 + $0x134] sm:$0xff] %v7724_v50  ;;  %v6086_v56 = vadd.f32 1.0, %v8888_v37  ;;  %8901 = vpow2.f32 %v7561_v7  ;;  %v7562_v14 = vmul.f32 -1.442695, %v5447_v6  ;;  %v5358_v63 = vadd.f32 %v5357_v45, %v11727_v19  ;;  %v5450_v31 = vpop.f32.mrf.mxu1 }
 0x516   : > { %8903 = vrcp.f32 %v6085_v32  ;;  %v5449_v35 = vadd.f32 %v5448_v57, %v5356_v30  ;;  %v5361_v59 = vpop.f32.mrf.mxu0 }
 0x517   : > { %v8890_v62 = vpop.eup %8889  ;;  %8905 = vrcp.f32 %v6086_v56  ;;  %v5451_v9 = vadd.f32 %v5450_v31, %v5358_v63  ;;  %v5362_v8 = vadd.f32 %v5361_v59, %v11722_v3  ;;  %v5454_v52 = vpop.f32.mrf.mxu1 }
 0x518   : > { %v8892_v36 = vpop.eup %8891  ;;  %v6092_v20 = vadd.f32 1.0, %v8890_v62  ;;  %8907 = vpow2.f32 %v7562_v14  ;;  %v7568_v29 = vmul.f32 -1.442695, %v5449_v35  ;;  %v5363_v1 = vpop.f32.mrf.mxu0 }
 0x519   : > { %v6093_v33 = vadd.f32 1.0, %v8892_v36  ;;  %v5455_v42 = vadd.f32 %v5454_v52, %v5362_v8  ;;  %v5364_v11 = vadd.f32 %v5363_v1, %v11727_v19  ;;  %v5456_v13 = vpop.f32.mrf.mxu1  ;;  %v7569_v46 = vmul.f32 -1.442695, %v5451_v9 }
 0x51a   : > { %v8894_v48 = vpop.eup %8893  ;;  %8909 = vrcp.f32 %v6092_v20  ;;  %v5365_v27 = vpop.f32.mrf.mxu0 }
 0x51b   : > { %8911 = vrcp.f32 %v6093_v33  ;;  %v6099_v51 = vadd.f32 1.0, %v8894_v48  ;;  %v5457_v4 = vadd.f32 %v5456_v13, %v5364_v11  ;;  %v5458_v39 = vpop.f32.mrf.mxu1  ;;  %v7575_v16 = vmul.f32 -1.442695, %v5455_v42 }
 0x51c   : > { %v8896_v2 = vpop.eup %8895  ;;  %8913 = vpow2.f32 %v7568_v29  ;;  %v5366_v49 = vadd.f32 %v5365_v27, %v11722_v3  ;;  %v5367_v34 = vpop.f32.mrf.mxu0 }
 0x51d   : > { %8915 = vrcp.f32 %v6099_v51  ;;  %v6100_v58 = vadd.f32 1.0, %v8896_v2  ;;  %v7576_v22 = vmul.f32 -1.442695, %v5457_v4  ;;  %v5368_v0 = vadd.f32 %v5367_v34, %v11727_v19  ;;  %v5460_v53 = vpop.f32.mrf.mxu1 }
 0x51e   : > { %8917 = vpow2.f32 %v7569_v46  ;;  %v5459_v17 = vadd.f32 %v5458_v39, %v5366_v49  ;;  %v5371_v21 = vpop.f32.mrf.mxu0 }
 0x51f   : > { %v8898_v24 = vpop.eup %8897  ;;  %8919 = vrcp.f32 %v6100_v58  ;;  %v5461_v25 = vadd.f32 %v5460_v53, %v5368_v0  ;;  %v5372_v47 = vadd.f32 %v5371_v21, %v11722_v3  ;;  %v5464_v12 = vpop.f32.mrf.mxu1 }
 0x520   : > { %v8900_v60 = vpop.eup %8899  ;;  %v6106_v44 = vadd.f32 1.0, %v8898_v24  ;;  %8921 = vpow2.f32 %v7575_v16  ;;  %v7582_v41 = vmul.f32 -1.442695, %v5459_v17  ;;  %v5373_v5 = vpop.f32.mrf.mxu0 }
 0x521   : > { %v6107_v28 = vadd.f32 1.0, %v8900_v60  ;;  %8923 = vpow2.f32 %v7576_v22  ;;  %v5465_v10 = vadd.f32 %v5464_v12, %v5372_v47  ;;  %v5466_v15 = vpop.f32.mrf.mxu1  ;;  %v7583_v26 = vmul.f32 -1.442695, %v5461_v25 }
 0x522   : > { %v8902_v40 = vpop.eup %8901  ;;  %8925 = vrcp.f32 %v6106_v44  ;;  %v5374_v61 = vadd.f32 %v5373_v5, %v11727_v19  ;;  %v5375_v43 = vpop.f32.mrf.mxu0 }
 0x523   : > { %v8904_v18 = vpop.eup %8903  ;;  %8927 = vrcp.f32 %v6107_v28  ;;  %v6113_v23 = vadd.f32 1.0, %v8902_v40  ;;  %v7589_v38 = vmul.f32 -1.442695, %v5465_v10  ;;  %v5376_v55 = vadd.f32 %v5375_v43, %v11722_v3  ;;  %v5468_v54 = vpop.f32.mrf.mxu1 }
 0x524   : > { %v8906_v50 = vpop.eup %8905  ;;  %8929 = vpow2.f32 %v7582_v41  ;;  %v5467_v7 = vadd.f32 %v5466_v15, %v5374_v61  ;;  %v5377_v6 = vpop.f32.mrf.mxu0 }
 0x525   : > { %v8908_v57 = vpop.eup %8907  ;;  %v7681_v37 = vpack.c.bf16 %v8906_v50, %v8904_v18  ;;  %8931 = vrcp.f32 %v6113_v23  ;;  %v5469_v32 = vadd.f32 %v5468_v54, %v5376_v55  ;;  %v5378_v30 = vadd.f32 %v5377_v6, %v11727_v19  ;;  %v5470_v45 = vpop.f32.mrf.mxu1  ;;  %v12052_v50 = vld [vmem:[#allocation15_spill] sm:$0xff] }
 0x526   : > { %v6114_v56 = vadd.f32 1.0, %v8908_v57  ;;  %8933 = vpow2.f32 %v7583_v26  ;;  %v7590_v14 = vmul.f32 -1.442695, %v5467_v7  ;;  %v5381_v63 = vpop.f32.mrf.mxu0  ;;  %v3942_v7 = vsub.s32 4, %v12052_v50 }
 0x527   : > { %v8910_v31 = vpop.eup %8909  ;;  %6600 = vst [vmem:[%s11709_s13 + $0x8] sm:$0xff] %v7681_v37  ;;  %8935 = vpow2.f32 %v7589_v38  ;;  %v7596_v35 = vmul.f32 -1.442695, %v5469_v32  ;;  %v5471_v59 = vadd.f32 %v5470_v45, %v5378_v30  ;;  %v5382_v62 = vadd.f32 %v5381_v63, %v11722_v3  ;;  %v5474_v9 = vpop.f32.mrf.mxu1 }
 0x528   : > { %v8912_v8 = vpop.eup %8911  ;;  %8937 = vrcp.f32 %v6114_v56  ;;  %v5383_v52 = vpop.f32.mrf.mxu0  ;;  %v3946_v32 = vsub.s32 5, %v12052_v50  ;;  %v11769_v56 = vld [vmem:[%s11979_s9] sm:$0x7f] }
 0x529   : > { %v8914_v36 = vpop.eup %8913  ;;  %v7685_v20 = vpack.c.bf16 %v8912_v8, %v8910_v31  ;;  %8939 = vpow2.f32 %v7590_v14  ;;  %v7597_v29 = vmul.f32 -1.442695, %v5471_v59  ;;  %v5475_v1 = vadd.f32 %v5474_v9, %v5382_v62  ;;  %v5476_v33 = vpop.f32.mrf.mxu1 }
 0x52a   : > { %v8916_v42 = vpop.eup %8915  ;;  %v6120_v11 = vadd.f32 1.0, %v8914_v36  ;;  %8941 = vpow2.f32 %v7596_v35  ;;  %v5384_v13 = vadd.f32 %v5383_v52, %v11727_v19  ;;  %v5385_v48 = vpop.f32.mrf.mxu0  ;;  %v11772_v14 = vrot.slane %v11769_v56, %v3942_v7 }
 0x52b   : > { %v8918_v46 = vpop.eup %8917  ;;  %6605 = vst [vmem:[%s11709_s13 + $0x24] sm:$0xff] %v7685_v20  ;;  %8943 = vpow2.f32 %v7597_v29  ;;  %v7603_v27 = vmul.f32 -1.442695, %v5475_v1  ;;  %v5386_v51 = vadd.f32 %v5385_v48, %v11722_v3  ;;  %v5478_v4 = vpop.f32.mrf.mxu1  ;;  %v11776_v59 = vrot.slane %v11769_v56, %v3946_v32 }
 0x52c   : > { %v8920_v39 = vpop.eup %8919  ;;  %8945 = vrcp.f32 %v6120_v11  ;;  %v6121_v2 = vadd.f32 1.0, %v8918_v46  ;;  %v5477_v16 = vadd.f32 %v5476_v33, %v5384_v13  ;;  %v5387_v49 = vpop.f32.mrf.mxu0 }
 0x52d   : > { %v8922_v34 = vpop.eup %8921  ;;  %v7689_v58 = vpack.c.bf16 %v8920_v39, %v8916_v42  ;;  %8947 = vpow2.f32 %v7603_v27  ;;  %v5479_v22 = vadd.f32 %v5478_v4, %v5386_v51  ;;  %v5388_v0 = vadd.f32 %v5387_v49, %v11727_v19  ;;  %v5480_v24 = vpop.f32.mrf.mxu1 }
 0x52e   : > { %v8924_v53 = vpop.eup %8923  ;;  %8949 = vrcp.f32 %v6121_v2  ;;  %v6127_v17 = vadd.f32 1.0, %v8922_v34  ;;  %v7604_v21 = vmul.f32 -1.442695, %v5477_v16 }
 0x52f   : > { %v8926_v3 = vpop.eup %8925  ;;  %6609 = vst [vmem:[%s11709_s13 + $0x40] sm:$0xff] %v7689_v58  ;;  %v6128_v25 = vadd.f32 1.0, %v8924_v53  ;;  %v7610_v47 = vmul.f32 -1.442695, %v5479_v22  ;;  %v5481_v12 = vadd.f32 %v5480_v24, %v5388_v0 }
 0x530   : > { %v8928_v60 = vpop.eup %8927  ;;  %8951 = vrcp.f32 %v6127_v17 }
 0x531   : > { %v8930_v44 = vpop.eup %8929  ;;  %v7693_v41 = vpack.c.bf16 %v8928_v60, %v8926_v3  ;;  %8953 = vrcp.f32 %v6128_v25  ;;  %v7611_v5 = vmul.f32 -1.442695, %v5481_v12 }
 0x532   : > { %v8932_v28 = vpop.eup %8931  ;;  %v6134_v10 = vadd.f32 1.0, %v8930_v44  ;;  %8955 = vpow2.f32 %v7604_v21 }
 0x533   : > { %v8934_v19 = vpop.eup %8933  ;;  %6613 = vst [vmem:[%s11709_s13 + $0x5c] sm:$0xff] %v7693_v41  ;;  %8957 = vpow2.f32 %v7610_v47 }
 0x534   : > { %v8936_v15 = vpop.eup %8935  ;;  %8959 = vrcp.f32 %v6134_v10  ;;  %v6135_v40 = vadd.f32 1.0, %v8934_v19 }
 0x535   : > { %v8938_v26 = vpop.eup %8937  ;;  %v6141_v61 = vadd.f32 1.0, %v8936_v15  ;;  %8961 = vpow2.f32 %v7611_v5 }
 0x536   : > { %v8940_v43 = vpop.eup %8939  ;;  %v7697_v18 = vpack.c.bf16 %v8938_v26, %v8932_v28  ;;  %8963 = vrcp.f32 %v6135_v40 }
 0x537   : > { %v8942_v23 = vpop.eup %8941  ;;  %v6142_v38 = vadd.f32 1.0, %v8940_v43  ;;  %8965 = vrcp.f32 %v6141_v61 }
 0x538   : > { %v8944_v55 = vpop.eup %8943  ;;  %6617 = vst [vmem:[%s11709_s13 + $0x78] sm:$0xff] %v7697_v18  ;;  %v6148_v54 = vadd.f32 1.0, %v8942_v23 }
 0x539   : > { %v8946_v6 = vpop.eup %8945  ;;  %8967 = vrcp.f32 %v6142_v38  ;;  %v6149_v57 = vadd.f32 1.0, %v8944_v55 }
 0x53a   : > { %v8948_v37 = vpop.eup %8947  ;;  %8969 = vrcp.f32 %v6148_v54 }
 0x53b   : > { %v8950_v30 = vpop.eup %8949  ;;  %8971 = vrcp.f32 %v6149_v57  ;;  %v6155_v31 = vadd.f32 1.0, %v8948_v37 }
 0x53c   : > { %v7701_v45 = vpack.c.bf16 %v8950_v30, %v8946_v6 }
 0x53d   : > { %v8952_v63 = vpop.eup %8951  ;;  %8973 = vrcp.f32 %v6155_v31 }
 0x53e   : > { %v8954_v35 = vpop.eup %8953  ;;  %6621 = vst [vmem:[%s11709_s13 + $0x94] sm:$0xff] %v7701_v45 }
 0x53f   : > { %v8956_v62 = vpop.eup %8955  ;;  %v7705_v9 = vpack.c.bf16 %v8954_v35, %v8952_v63  ;;  %v5517_v8 = vpop.f32.mrf.mxu0 }
 0x540   : > { %v8958_v52 = vpop.eup %8957  ;;  %v6156_v36 = vadd.f32 1.0, %v8956_v62  ;;  %v5518_v20 = vadd.f32 %v5517_v8, %v11772_v14  ;;  %v5610_v29 = vpop.f32.mrf.mxu1 }
 0x541   : > { %v8960_v1 = vpop.eup %8959  ;;  %6625 = vst [vmem:[%s11709_s13 + $0xb0] sm:$0xff] %v7705_v9  ;;  %v6162_v33 = vadd.f32 1.0, %v8958_v52  ;;  %v5519_v42 = vpop.f32.mrf.mxu0 }
 0x542   : > { %v8962_v11 = vpop.eup %8961  ;;  %8975 = vrcp.f32 %v6156_v36  ;;  %v5611_v13 = vadd.f32 %v5610_v29, %v5518_v20  ;;  %v5520_v48 = vadd.f32 %v5519_v42, %v11776_v59  ;;  %v5612_v46 = vpop.f32.mrf.mxu1 }
 0x543   : > { %v8964_v27 = vpop.eup %8963  ;;  %8977 = vrcp.f32 %v6162_v33  ;;  %v6163_v51 = vadd.f32 1.0, %v8962_v11  ;;  %v5521_v4 = vpop.f32.mrf.mxu0 }
 0x544   : > { %v7709_v39 = vpack.c.bf16 %v8964_v27, %v8960_v1  ;;  %v7535_v2 = vmul.f32 -1.442695, %v5611_v13  ;;  %v5613_v16 = vadd.f32 %v5612_v46, %v5520_v48  ;;  %v5522_v49 = vadd.f32 %v5521_v4, %v11772_v14  ;;  %v5614_v34 = vpop.f32.mrf.mxu1  ;;  %v8966_v58 = vpop.eup %8965 }
 0x545   : > { %8979 = vrcp.f32 %v6163_v51  ;;  %v5523_v22 = vpop.f32.mrf.mxu0 }
 0x546   : > { %v8968_v0 = vpop.eup %8967  ;;  %6629 = vst [vmem:[%s11709_s13 + $0xcc] sm:$0xff] %v7709_v39  ;;  %8981 = vpow2.f32 %v7535_v2  ;;  %v7536_v53 = vmul.f32 -1.442695, %v5613_v16  ;;  %v5615_v17 = vadd.f32 %v5614_v34, %v5522_v49  ;;  %v5524_v21 = vadd.f32 %v5523_v22, %v11776_v59  ;;  %v5616_v24 = vpop.f32.mrf.mxu1 }
 0x547   : > { %v8970_v3 = vpop.eup %8969  ;;  %v7713_v25 = vpack.c.bf16 %v8968_v0, %v8966_v58  ;;  %v5527_v47 = vpop.f32.mrf.mxu0 }
 0x548   : > { %v8972_v12 = vpop.eup %8971  ;;  %8983 = vpow2.f32 %v7536_v53  ;;  %v7542_v60 = vmul.f32 -1.442695, %v5615_v17  ;;  %v5617_v44 = vadd.f32 %v5616_v24, %v5524_v21  ;;  %v5528_v41 = vadd.f32 %v5527_v47, %v11772_v14  ;;  %v5620_v5 = vpop.f32.mrf.mxu1 }
 0x549   : > { %6633 = vst [vmem:[%s11709_s13 + $0xe8] sm:$0xff] %v7713_v25  ;;  %v7717_v28 = vpack.c.bf16 %v8972_v12, %v8970_v3  ;;  %v5529_v10 = vpop.f32.mrf.mxu0 }
 0x54a   : > { %8985 = vpow2.f32 %v7542_v60  ;;  %v7543_v19 = vmul.f32 -1.442695, %v5617_v44  ;;  %v5621_v15 = vadd.f32 %v5620_v5, %v5528_v41  ;;  %v5530_v40 = vadd.f32 %v5529_v10, %v11776_v59  ;;  %v5622_v26 = vpop.f32.mrf.mxu1  ;;  %v8974_v54 = vpop.eup %8973 }
 0x54b   : > { %6637 = vst [vmem:[%s11709_s13 + $0x104] sm:$0xff] %v7717_v28  ;;  %v5531_v61 = vpop.f32.mrf.mxu0 }
 0x54c   : > { %8987 = vpow2.f32 %v7543_v19  ;;  %v7549_v43 = vmul.f32 -1.442695, %v5621_v15  ;;  %v5623_v18 = vadd.f32 %v5622_v26, %v5530_v40  ;;  %v5532_v23 = vadd.f32 %v5531_v61, %v11772_v14  ;;  %v5624_v38 = vpop.f32.mrf.mxu1 }
 0x54d   : > { %v5533_v55 = vpop.f32.mrf.mxu0 }
 0x54e   : > { %8989 = vpow2.f32 %v7549_v43  ;;  %v7550_v7 = vmul.f32 -1.442695, %v5623_v18  ;;  %v5625_v6 = vadd.f32 %v5624_v38, %v5532_v23  ;;  %v5534_v57 = vadd.f32 %v5533_v55, %v11776_v59  ;;  %v5626_v37 = vpop.f32.mrf.mxu1 }
 0x54f   : > { %v8976_v32 = vpop.eup %8975  ;;  %v5537_v30 = vpop.f32.mrf.mxu0 }
 0x550   : > { %v8978_v45 = vpop.eup %8977  ;;  %v7721_v63 = vpack.c.bf16 %v8976_v32, %v8974_v54  ;;  %8991 = vpow2.f32 %v7550_v7  ;;  %v7556_v31 = vmul.f32 -1.442695, %v5625_v6  ;;  %v5627_v35 = vadd.f32 %v5626_v37, %v5534_v57  ;;  %v5630_v62 = vpop.f32.mrf.mxu1 }
 0x551   : > { %v5538_v9 = vadd.f32 %v5537_v30, %v11772_v14  ;;  %v5539_v8 = vpop.f32.mrf.mxu0 }
 0x552   : > { %v8980_v52 = vpop.eup %8979  ;;  %6641 = vst [vmem:[%s11709_s13 + $0x120] sm:$0xff] %v7721_v63  ;;  %8993 = vpow2.f32 %v7556_v31  ;;  %v7557_v36 = vmul.f32 -1.442695, %v5627_v35  ;;  %v5540_v20 = vadd.f32 %v5539_v8, %v11776_v59  ;;  %v5632_v29 = vpop.f32.mrf.mxu1 }
 0x553   : > { %v8982_v1 = vpop.eup %8981  ;;  %v7725_v33 = vpack.c.bf16 %v8980_v52, %v8978_v45  ;;  %v5631_v42 = vadd.f32 %v5630_v62, %v5538_v9  ;;  %v5541_v11 = vpop.f32.mrf.mxu0 }
 0x554   : > { %v6087_v13 = vadd.f32 1.0, %v8982_v1  ;;  %8995 = vpow2.f32 %v7557_v36  ;;  %v5633_v48 = vadd.f32 %v5632_v29, %v5540_v20  ;;  %v5542_v46 = vadd.f32 %v5541_v11, %v11772_v14  ;;  %v5634_v27 = vpop.f32.mrf.mxu1 }
 0x555   : > { %v8984_v51 = vpop.eup %8983  ;;  %6645 = vst [vmem:[%s11709_s13 + $0x13c] sm:$0xff] %v7725_v33  ;;  %v7563_v4 = vmul.f32 -1.442695, %v5631_v42  ;;  %v5543_v39 = vpop.f32.mrf.mxu0 }
 0x556   : > { %8997 = vrcp.f32 %v6087_v13  ;;  %v6088_v2 = vadd.f32 1.0, %v8984_v51  ;;  %v7564_v16 = vmul.f32 -1.442695, %v5633_v48  ;;  %v5635_v49 = vadd.f32 %v5634_v27, %v5542_v46  ;;  %v5636_v34 = vpop.f32.mrf.mxu1 }
 0x557   : > { %v8986_v58 = vpop.eup %8985  ;;  %8999 = vpow2.f32 %v7563_v4  ;;  %v5544_v22 = vadd.f32 %v5543_v39, %v11776_v59  ;;  %v5547_v0 = vpop.f32.mrf.mxu0 }
 0x558   : > { %9001 = vrcp.f32 %v6088_v2  ;;  %v6094_v53 = vadd.f32 1.0, %v8986_v58  ;;  %v7570_v17 = vmul.f32 -1.442695, %v5635_v49  ;;  %v5548_v21 = vadd.f32 %v5547_v0, %v11772_v14  ;;  %v5640_v24 = vpop.f32.mrf.mxu1 }
 0x559   : > { %v8988_v3 = vpop.eup %8987  ;;  %9003 = vpow2.f32 %v7564_v16  ;;  %v5637_v25 = vadd.f32 %v5636_v34, %v5544_v22  ;;  %v5549_v47 = vpop.f32.mrf.mxu0 }
 0x55a   : > { %9005 = vrcp.f32 %v6094_v53  ;;  %v6095_v12 = vadd.f32 1.0, %v8988_v3  ;;  %v5641_v60 = vadd.f32 %v5640_v24, %v5548_v21  ;;  %v5550_v44 = vadd.f32 %v5549_v47, %v11776_v59  ;;  %v5642_v41 = vpop.f32.mrf.mxu1 }
 0x55b   : > { %v8990_v5 = vpop.eup %8989  ;;  %9007 = vpow2.f32 %v7570_v17  ;;  %v7571_v28 = vmul.f32 -1.442695, %v5637_v25  ;;  %v5551_v10 = vpop.f32.mrf.mxu0 }
 0x55c   : > { %9009 = vrcp.f32 %v6095_v12  ;;  %v6101_v19 = vadd.f32 1.0, %v8990_v5  ;;  %v7577_v15 = vmul.f32 -1.442695, %v5641_v60  ;;  %v5643_v40 = vadd.f32 %v5642_v41, %v5550_v44  ;;  %v5644_v26 = vpop.f32.mrf.mxu1 }
 0x55d   : > { %v8992_v61 = vpop.eup %8991  ;;  %9011 = vpow2.f32 %v7571_v28  ;;  %v5552_v43 = vadd.f32 %v5551_v10, %v11772_v14  ;;  %v5553_v18 = vpop.f32.mrf.mxu0 }
 0x55e   : > { %9013 = vrcp.f32 %v6101_v19  ;;  %v6102_v23 = vadd.f32 1.0, %v8992_v61  ;;  %v7578_v38 = vmul.f32 -1.442695, %v5643_v40  ;;  %v5554_v55 = vadd.f32 %v5553_v18, %v11776_v59  ;;  %v5646_v54 = vpop.f32.mrf.mxu1 }
 0x55f   : > { %v8994_v7 = vpop.eup %8993  ;;  %9015 = vpow2.f32 %v7577_v15  ;;  %v5645_v6 = vadd.f32 %v5644_v26, %v5552_v43  ;;  %v5557_v57 = vpop.f32.mrf.mxu0  ;;  %v3950_v18 = vsub.s32 6, %v12052_v50 }
 0x560   : > { %9017 = vrcp.f32 %v6102_v23  ;;  %v6108_v37 = vadd.f32 1.0, %v8994_v7  ;;  %v5647_v32 = vadd.f32 %v5646_v54, %v5554_v55  ;;  %v5558_v30 = vadd.f32 %v5557_v57, %v11772_v14  ;;  %v5650_v45 = vpop.f32.mrf.mxu1 }
 0x561   : > { %v8996_v63 = vpop.eup %8995  ;;  %9019 = vpow2.f32 %v7578_v38  ;;  %v7584_v31 = vmul.f32 -1.442695, %v5645_v6  ;;  %v5559_v35 = vpop.f32.mrf.mxu0 }
 0x562   : > { %9021 = vrcp.f32 %v6108_v37  ;;  %v6109_v62 = vadd.f32 1.0, %v8996_v63  ;;  %v7585_v9 = vmul.f32 -1.442695, %v5647_v32  ;;  %v5651_v8 = vadd.f32 %v5650_v45, %v5558_v30  ;;  %v5652_v52 = vpop.f32.mrf.mxu1 }
 0x563   : > { %v8998_v36 = vpop.eup %8997  ;;  %9023 = vpow2.f32 %v7584_v31  ;;  %v5560_v20 = vadd.f32 %v5559_v35, %v11776_v59  ;;  %v5561_v29 = vpop.f32.mrf.mxu0 }
 0x564   : > { %v9000_v1 = vpop.eup %8999  ;;  %9025 = vrcp.f32 %v6109_v62  ;;  %v7591_v33 = vmul.f32 -1.442695, %v5651_v8  ;;  %v5562_v42 = vadd.f32 %v5561_v29, %v11772_v14  ;;  %v5654_v11 = vpop.f32.mrf.mxu1 }
 0x565   : > { %v9002_v13 = vpop.eup %9001  ;;  %v6115_v48 = vadd.f32 1.0, %v9000_v1  ;;  %9027 = vpow2.f32 %v7585_v9  ;;  %v5653_v46 = vadd.f32 %v5652_v52, %v5560_v20  ;;  %v5563_v27 = vpop.f32.mrf.mxu0  ;;  %v11813_v9 = vrot.slane %v11769_v56, %v3950_v18 }
 0x566   : > { %v9004_v51 = vpop.eup %9003  ;;  %v7682_v4 = vpack.c.bf16 %v9002_v13, %v8998_v36  ;;  %9029 = vpow2.f32 %v7591_v33  ;;  %v5655_v39 = vadd.f32 %v5654_v11, %v5562_v42  ;;  %v5564_v2 = vadd.f32 %v5563_v27, %v11776_v59  ;;  %v5656_v16 = vpop.f32.mrf.mxu1 }
 0x567   : > { %v9006_v49 = vpop.eup %9005  ;;  %v6116_v34 = vadd.f32 1.0, %v9004_v51  ;;  %v7592_v58 = vmul.f32 -1.442695, %v5653_v46  ;;  %v5567_v22 = vpop.f32.mrf.mxu0  ;;  %9031 = vrcp.f32 %v6115_v48 }
 0x568   : > { %v9008_v0 = vpop.eup %9007  ;;  %6601 = vst [vmem:[%s11709_s13 + $0x10] sm:$0xff] %v7682_v4  ;;  %v7598_v53 = vmul.f32 -1.442695, %v5655_v39  ;;  %v5657_v17 = vadd.f32 %v5656_v16, %v5564_v2  ;;  %v5568_v21 = vadd.f32 %v5567_v22, %v11772_v14  ;;  %v5660_v24 = vpop.f32.mrf.mxu1 }
 0x569   : > { %v9010_v3 = vpop.eup %9009  ;;  %9033 = vrcp.f32 %v6116_v34  ;;  %v6122_v25 = vadd.f32 1.0, %v9008_v0  ;;  %v5569_v47 = vpop.f32.mrf.mxu0 }
 0x56a   : > { %v9012_v12 = vpop.eup %9011  ;;  %v7686_v60 = vpack.c.bf16 %v9010_v3, %v9006_v49  ;;  %9035 = vpow2.f32 %v7592_v58  ;;  %v7599_v44 = vmul.f32 -1.442695, %v5657_v17  ;;  %v5661_v41 = vadd.f32 %v5660_v24, %v5568_v21  ;;  %v5662_v5 = vpop.f32.mrf.mxu1 }
 0x56b   : > { %v9014_v28 = vpop.eup %9013  ;;  %9037 = vrcp.f32 %v6122_v25  ;;  %v6123_v10 = vadd.f32 1.0, %v9012_v12  ;;  %v5570_v19 = vadd.f32 %v5569_v47, %v11776_v59  ;;  %v5571_v15 = vpop.f32.mrf.mxu0 }
 0x56c   : > { %v9016_v40 = vpop.eup %9015  ;;  %6606 = vst [vmem:[%s11709_s13 + $0x2c] sm:$0xff] %v7686_v60  ;;  %9039 = vpow2.f32 %v7598_v53  ;;  %v7605_v26 = vmul.f32 -1.442695, %v5661_v41  ;;  %v5572_v61 = vadd.f32 %v5571_v15, %v11772_v14  ;;  %v5664_v43 = vpop.f32.mrf.mxu1 }
 0x56d   : > { %v9018_v23 = vpop.eup %9017  ;;  %9041 = vrcp.f32 %v6123_v10  ;;  %v6129_v38 = vadd.f32 1.0, %v9016_v40  ;;  %v5663_v55 = vadd.f32 %v5662_v5, %v5570_v19  ;;  %v5573_v54 = vpop.f32.mrf.mxu0 }
 0x56e   : > { %v9020_v7 = vpop.eup %9019  ;;  %v7690_v6 = vpack.c.bf16 %v9018_v23, %v9014_v28  ;;  %9043 = vpow2.f32 %v7599_v44  ;;  %v5665_v57 = vadd.f32 %v5664_v43, %v5572_v61  ;;  %v5574_v37 = vadd.f32 %v5573_v54, %v11776_v59  ;;  %v5666_v32 = vpop.f32.mrf.mxu1 }
 0x56f   : > { %v9022_v30 = vpop.eup %9021  ;;  %9045 = vrcp.f32 %v6129_v38  ;;  %v6130_v45 = vadd.f32 1.0, %v9020_v7  ;;  %v7606_v14 = vmul.f32 -1.442695, %v5663_v55  ;;  %v7849_v63 = vpop.f32.mrf.mxu0 }
 0x570   : > { %v9024_v31 = vpop.eup %9023  ;;  %6610 = vst [vmem:[%s11709_s13 + $0x48] sm:$0xff] %v7690_v6  ;;  %9047 = vpow2.f32 %v7605_v26  ;;  %v7612_v50 = vmul.f32 -1.442695, %v5665_v57  ;;  %v5667_v35 = vadd.f32 %v5666_v32, %v5574_v37  ;;  %v7901_v62 = vpop.f32.mrf.mxu1 }
 0x571   : > { %v9026_v8 = vpop.eup %9025  ;;  %9049 = vrcp.f32 %v6130_v45  ;;  %v6136_v52 = vadd.f32 1.0, %v9024_v31  ;;  %v7850_v59 = vpop.f32.mrf.mxu0 }
 0x572   : > { %v9028_v36 = vpop.eup %9027  ;;  %v7694_v20 = vpack.c.bf16 %v9026_v8, %v9022_v30  ;;  %9051 = vpow2.f32 %v7606_v14  ;;  %v7851_v29 = vadd.f32 %v7850_v59, %v7849_v63  ;;  %v7902_v1 = vpop.f32.mrf.mxu1  ;;  %v7613_v11 = vmul.f32 -1.442695, %v5667_v35 }
 0x573   : > { %v9030_v33 = vpop.eup %9029  ;;  %9053 = vrcp.f32 %v6136_v52  ;;  %v6137_v42 = vadd.f32 1.0, %v9028_v36  ;;  %v7852_v13 = vpop.f32.mrf.mxu0  ;;  %v7903_v56 = vadd.f32 %v7902_v1, %v7901_v62 }
 0x574   : > { %6614 = vst [vmem:[%s11709_s13 + $0x64] sm:$0xff] %v7694_v20  ;;  %9055 = vpow2.f32 %v7612_v50  ;;  %v5704_v48 = vadd.f32 %v7851_v29, %v11813_v9  ;;  %v7904_v46 = vpop.f32.mrf.mxu1  ;;  %v9032_v27 = vpop.eup %9031  ;;  %v6143_v51 = vadd.f32 1.0, %v9030_v33 }
 0x575   : > { %9057 = vrcp.f32 %v6137_v42  ;;  %v7853_v4 = vpop.f32.mrf.mxu0 }
 0x576   : > { %v9034_v39 = vpop.eup %9033  ;;  %v5785_v2 = vadd.f32 %v7903_v56, %v5704_v48  ;;  %v7854_v16 = vadd.f32 %v7853_v4, %v7852_v13  ;;  %v7905_v49 = vpop.f32.mrf.mxu1  ;;  %9059 = vpow2.f32 %v7613_v11 }
 0x577   : > { %v9036_v34 = vpop.eup %9035  ;;  %v7698_v58 = vpack.c.bf16 %v9034_v39, %v9032_v27  ;;  %v7855_v22 = vpop.f32.mrf.mxu0  ;;  %v7906_v24 = vadd.f32 %v7905_v49, %v7904_v46  ;;  %9061 = vrcp.f32 %v6143_v51 }
 0x578   : > { %v9038_v0 = vpop.eup %9037  ;;  %v6144_v53 = vadd.f32 1.0, %v9036_v34  ;;  %v7537_v17 = vmul.f32 -1.442695, %v5785_v2  ;;  %v5707_v21 = vadd.f32 %v7854_v16, %v11813_v9  ;;  %v7907_v3 = vpop.f32.mrf.mxu1 }
 0x579   : > { %v9040_v25 = vpop.eup %9039  ;;  %6618 = vst [vmem:[%s11709_s13 + $0x80] sm:$0xff] %v7698_v58  ;;  %v7856_v47 = vpop.f32.mrf.mxu0 }
 0x57a   : > { %v9042_v12 = vpop.eup %9041  ;;  %9063 = vrcp.f32 %v6144_v53  ;;  %v6150_v60 = vadd.f32 1.0, %v9040_v25  ;;  %v5788_v44 = vadd.f32 %v7906_v24, %v5707_v21  ;;  %v7857_v41 = vadd.f32 %v7856_v47, %v7855_v22  ;;  %v7908_v5 = vpop.f32.mrf.mxu1 }
 0x57b   : > { %v9044_v28 = vpop.eup %9043  ;;  %v7702_v10 = vpack.c.bf16 %v9042_v12, %v9038_v0  ;;  %9065 = vpow2.f32 %v7537_v17  ;;  %v7858_v19 = vpop.f32.mrf.mxu0  ;;  %v7909_v43 = vadd.f32 %v7908_v5, %v7907_v3 }
 0x57c   : > { %v9046_v15 = vpop.eup %9045  ;;  %v6151_v40 = vadd.f32 1.0, %v9044_v28  ;;  %v7544_v26 = vmul.f32 -1.442695, %v5788_v44  ;;  %v5712_v61 = vadd.f32 %v7857_v41, %v11813_v9  ;;  %v7910_v18 = vpop.f32.mrf.mxu1  ;;  %9067 = vrcp.f32 %v6150_v60 }
 0x57d   : > { %v9048_v23 = vpop.eup %9047  ;;  %6622 = vst [vmem:[%s11709_s13 + $0x9c] sm:$0xff] %v7702_v10  ;;  %v7859_v38 = vpop.f32.mrf.mxu0 }
 0x57e   : > { %v9050_v55 = vpop.eup %9049  ;;  %9069 = vrcp.f32 %v6151_v40  ;;  %v6157_v54 = vadd.f32 1.0, %v9048_v23  ;;  %v5793_v7 = vadd.f32 %v7909_v43, %v5712_v61  ;;  %v7860_v6 = vadd.f32 %v7859_v38, %v7858_v19  ;;  %v7911_v57 = vpop.f32.mrf.mxu1 }
 0x57f   : > { %v9052_v37 = vpop.eup %9051  ;;  %v7706_v32 = vpack.c.bf16 %v9050_v55, %v9046_v15  ;;  %9071 = vpow2.f32 %v7544_v26  ;;  %v7861_v30 = vpop.f32.mrf.mxu0  ;;  %v7912_v50 = vadd.f32 %v7911_v57, %v7910_v18 }
 0x580   : > { %v9054_v45 = vpop.eup %9053  ;;  %v6158_v14 = vadd.f32 1.0, %v9052_v37  ;;  %v7551_v63 = vmul.f32 -1.442695, %v5793_v7  ;;  %v5715_v31 = vadd.f32 %v7860_v6, %v11813_v9  ;;  %v7913_v35 = vpop.f32.mrf.mxu1  ;;  %9073 = vrcp.f32 %v6157_v54 }
 0x581   : > { %v9056_v62 = vpop.eup %9055  ;;  %6626 = vst [vmem:[%s11709_s13 + $0xb8] sm:$0xff] %v7706_v32  ;;  %v7862_v8 = vpop.f32.mrf.mxu0 }
 0x582   : > { %v9058_v52 = vpop.eup %9057  ;;  %9075 = vrcp.f32 %v6158_v14  ;;  %v6164_v59 = vadd.f32 1.0, %v9056_v62  ;;  %v5796_v36 = vadd.f32 %v7912_v50, %v5715_v31  ;;  %v7863_v20 = vadd.f32 %v7862_v8, %v7861_v30  ;;  %v7914_v29 = vpop.f32.mrf.mxu1 }
 0x583   : > { %v7710_v1 = vpack.c.bf16 %v9058_v52, %v9054_v45  ;;  %9077 = vpow2.f32 %v7551_v63  ;;  %v7864_v33 = vpop.f32.mrf.mxu0  ;;  %v9060_v42 = vpop.eup %9059  ;;  %v7915_v48 = vadd.f32 %v7914_v29, %v7913_v35 }
 0x584   : > { %v7558_v11 = vmul.f32 -1.442695, %v5796_v36  ;;  %v5720_v13 = vadd.f32 %v7863_v20, %v11813_v9  ;;  %v7916_v56 = vpop.f32.mrf.mxu1  ;;  %9079 = vrcp.f32 %v6164_v59  ;;  %v6165_v46 = vadd.f32 1.0, %v9060_v42  ;;  %v9062_v51 = vpop.eup %9061 }
 0x585   : > { %6630 = vst [vmem:[%s11709_s13 + $0xd4] sm:$0xff] %v7710_v1  ;;  %v7865_v27 = vpop.f32.mrf.mxu0 }
 0x586   : > { %9081 = vpow2.f32 %v7558_v11  ;;  %v5801_v4 = vadd.f32 %v7915_v48, %v5720_v13  ;;  %v7866_v39 = vadd.f32 %v7865_v27, %v7864_v33  ;;  %v7917_v2 = vpop.f32.mrf.mxu1 }
 0x587   : > { %v9064_v16 = vpop.eup %9063  ;;  %9083 = vrcp.f32 %v6165_v46  ;;  %v7867_v49 = vpop.f32.mrf.mxu0  ;;  %v7918_v53 = vadd.f32 %v7917_v2, %v7916_v56 }
 0x588   : > { %v9066_v34 = vpop.eup %9065  ;;  %v7714_v58 = vpack.c.bf16 %v9064_v16, %v9062_v51  ;;  %v7565_v22 = vmul.f32 -1.442695, %v5801_v4  ;;  %v5723_v0 = vadd.f32 %v7866_v39, %v11813_v9  ;;  %v7919_v17 = vpop.f32.mrf.mxu1 }
 0x589   : > { %v6089_v21 = vadd.f32 1.0, %v9066_v34  ;;  %v7868_v24 = vpop.f32.mrf.mxu0  ;;  %v9068_v3 = vpop.eup %9067 }
 0x58a   : > { %6634 = vst [vmem:[%s11709_s13 + $0xf0] sm:$0xff] %v7714_v58  ;;  %9085 = vpow2.f32 %v7565_v22  ;;  %v5804_v25 = vadd.f32 %v7918_v53, %v5723_v0  ;;  %v7869_v47 = vadd.f32 %v7868_v24, %v7867_v49  ;;  %v7920_v12 = vpop.f32.mrf.mxu1 }
 0x58b   : > { %v9070_v60 = vpop.eup %9069  ;;  %9087 = vrcp.f32 %v6089_v21  ;;  %v7870_v44 = vpop.f32.mrf.mxu0  ;;  %v7921_v19 = vadd.f32 %v7920_v12, %v7919_v17 }
 0x58c   : > { %v9072_v41 = vpop.eup %9071  ;;  %v7718_v5 = vpack.c.bf16 %v9070_v60, %v9068_v3  ;;  %v7572_v28 = vmul.f32 -1.442695, %v5804_v25  ;;  %v5728_v10 = vadd.f32 %v7869_v47, %v11813_v9  ;;  %v7922_v15 = vpop.f32.mrf.mxu1 }
 0x58d   : > { %v6096_v40 = vadd.f32 1.0, %v9072_v41  ;;  %v7871_v26 = vpop.f32.mrf.mxu0  ;;  %v9074_v61 = vpop.eup %9073 }
 0x58e   : > { %6638 = vst [vmem:[%s11709_s13 + $0x10c] sm:$0xff] %v7718_v5  ;;  %9089 = vpow2.f32 %v7572_v28  ;;  %v5809_v43 = vadd.f32 %v7921_v19, %v5728_v10  ;;  %v7872_v18 = vadd.f32 %v7871_v26, %v7870_v44  ;;  %v7923_v23 = vpop.f32.mrf.mxu1 }
 0x58f   : > { %v9076_v38 = vpop.eup %9075  ;;  %9091 = vrcp.f32 %v6096_v40  ;;  %v7873_v55 = vpop.f32.mrf.mxu0  ;;  %v7924_v37 = vadd.f32 %v7923_v23, %v7922_v15 }
 0x590   : > { %v9078_v54 = vpop.eup %9077  ;;  %v7722_v7 = vpack.c.bf16 %v9076_v38, %v9074_v61  ;;  %v7579_v6 = vmul.f32 -1.442695, %v5809_v43  ;;  %v5731_v57 = vadd.f32 %v7872_v18, %v11813_v9  ;;  %v7925_v32 = vpop.f32.mrf.mxu1 }
 0x591   : > { %v6103_v30 = vadd.f32 1.0, %v9078_v54  ;;  %v7874_v45 = vpop.f32.mrf.mxu0  ;;  %v9080_v14 = vpop.eup %9079 }
 0x592   : > { %6642 = vst [vmem:[%s11709_s13 + $0x128] sm:$0xff] %v7722_v7  ;;  %9093 = vpow2.f32 %v7579_v6  ;;  %v5812_v63 = vadd.f32 %v7924_v37, %v5731_v57  ;;  %v7875_v31 = vadd.f32 %v7874_v45, %v7873_v55  ;;  %v7926_v50 = vpop.f32.mrf.mxu1 }
 0x593   : > { %v9082_v35 = vpop.eup %9081  ;;  %9095 = vrcp.f32 %v6103_v30  ;;  %v7876_v62 = vpop.f32.mrf.mxu0  ;;  %v7927_v20 = vadd.f32 %v7926_v50, %v7925_v32 }
 0x594   : > { %v9084_v8 = vpop.eup %9083  ;;  %v6110_v52 = vadd.f32 1.0, %v9082_v35  ;;  %v7586_v59 = vmul.f32 -1.442695, %v5812_v63  ;;  %v5736_v36 = vadd.f32 %v7875_v31, %v11813_v9  ;;  %v7928_v29 = vpop.f32.mrf.mxu1 }
 0x595   : > { %v7726_v1 = vpack.c.bf16 %v9084_v8, %v9080_v14  ;;  %v7877_v33 = vpop.f32.mrf.mxu0 }
 0x596   : > { %9097 = vrcp.f32 %v6110_v52  ;;  %v5817_v42 = vadd.f32 %v7927_v20, %v5736_v36  ;;  %v7878_v11 = vadd.f32 %v7877_v33, %v7876_v62  ;;  %v7929_v13 = vpop.f32.mrf.mxu1 }
 0x597   : > { %v9086_v48 = vpop.eup %9085  ;;  %6646 = vst [vmem:[%s11709_s13 + $0x144] sm:$0xff] %v7726_v1  ;;  %9099 = vpow2.f32 %v7586_v59  ;;  %v7879_v56 = vpop.f32.mrf.mxu0  ;;  %v7930_v39 = vadd.f32 %v7929_v13, %v7928_v29 }
 0x598   : > { %v9088_v46 = vpop.eup %9087  ;;  %v6117_v27 = vadd.f32 1.0, %v9086_v48  ;;  %v7593_v51 = vmul.f32 -1.442695, %v5817_v42  ;;  %v5739_v4 = vadd.f32 %v7878_v11, %v11813_v9  ;;  %v7931_v2 = vpop.f32.mrf.mxu1 }
 0x599   : > { %v7683_v16 = vpack.c.bf16 %v9088_v46, %v9088_v46  ;;  %v7880_v49 = vpop.f32.mrf.mxu0 }
 0x59a   : > { %9101 = vrcp.f32 %v6117_v27  ;;  %v5820_v34 = vadd.f32 %v7930_v39, %v5739_v4  ;;  %v7881_v58 = vadd.f32 %v7880_v49, %v7879_v56  ;;  %v7932_v22 = vpop.f32.mrf.mxu1 }
 0x59b   : > { %v9090_v0 = vpop.eup %9089  ;;  %6603 = vst.msk [vmem:[%s11709_s13 + $0x18] sm:$0xf] %vm6602_vm4, %v7683_v16  ;;  %9103 = vpow2.f32 %v7593_v51  ;;  %v7882_v53 = vpop.f32.mrf.mxu0  ;;  %v7933_v25 = vadd.f32 %v7932_v22, %v7931_v2 }
 0x59c   : > { %v9092_v17 = vpop.eup %9091  ;;  %v6124_v21 = vadd.f32 1.0, %v9090_v0  ;;  %v7600_v24 = vmul.f32 -1.442695, %v5820_v34  ;;  %v5744_v3 = vadd.f32 %v7881_v58, %v11813_v9  ;;  %v7934_v47 = vpop.f32.mrf.mxu1 }
 0x59d   : > { %v7687_v12 = vpack.c.bf16 %v9092_v17, %v9092_v17  ;;  %v7883_v60 = vpop.f32.mrf.mxu0 }
 0x59e   : > { %9105 = vrcp.f32 %v6124_v21  ;;  %v5825_v44 = vadd.f32 %v7933_v25, %v5744_v3  ;;  %v7884_v41 = vadd.f32 %v7883_v60, %v7882_v53  ;;  %v7935_v5 = vpop.f32.mrf.mxu1 }
 0x59f   : > { %v9094_v28 = vpop.eup %9093  ;;  %6607 = vst.msk [vmem:[%s11709_s13 + $0x34] sm:$0xf] %vm6602_vm4, %v7687_v12  ;;  %9107 = vpow2.f32 %v7600_v24  ;;  %v7936_v26 = vadd.f32 %v7935_v5, %v7934_v47 }
 0x5a0   : > { %v9096_v10 = vpop.eup %9095  ;;  %v6131_v19 = vadd.f32 1.0, %v9094_v28  ;;  %v7607_v15 = vmul.f32 -1.442695, %v5825_v44  ;;  %v5747_v40 = vadd.f32 %v7884_v41, %v11813_v9 }
 0x5a1   : > { %v7691_v61 = vpack.c.bf16 %v9096_v10, %v9096_v10 }
 0x5a2   : > { %9109 = vrcp.f32 %v6131_v19  ;;  %v5828_v43 = vadd.f32 %v7936_v26, %v5747_v40 }
 0x5a3   : > { %v9098_v18 = vpop.eup %9097  ;;  %6611 = vst.msk [vmem:[%s11709_s13 + $0x50] sm:$0xf] %vm6602_vm4, %v7691_v61  ;;  %9111 = vpow2.f32 %v7607_v15 }
 0x5a4   : > { %v9100_v23 = vpop.eup %9099  ;;  %v7695_v38 = vpack.c.bf16 %v9098_v18, %v9098_v18  ;;  %v7614_v55 = vmul.f32 -1.442695, %v5828_v43 }
 0x5a5   : > { %v6138_v54 = vadd.f32 1.0, %v9100_v23 }
 0x5a6   : > { %6615 = vst.msk [vmem:[%s11709_s13 + $0x6c] sm:$0xf] %vm6602_vm4, %v7695_v38  ;;  %9113 = vpow2.f32 %v7614_v55 }
 0x5a7   : > { %v9102_v7 = vpop.eup %9101  ;;  %9115 = vrcp.f32 %v6138_v54 }
 0x5a8   : > { %v9104_v9 = vpop.eup %9103  ;;  %v7699_v6 = vpack.c.bf16 %v9102_v7, %v9102_v7 }
 0x5a9   : > { %v6145_v57 = vadd.f32 1.0, %v9104_v9 }
 0x5aa   : > { %6619 = vst.msk [vmem:[%s11709_s13 + $0x88] sm:$0xf] %vm6602_vm4, %v7699_v6 }
 0x5ab   : > { %v9106_v37 = vpop.eup %9105  ;;  %9117 = vrcp.f32 %v6145_v57 }
 0x5ac   : > { %v9108_v32 = vpop.eup %9107  ;;  %v7703_v30 = vpack.c.bf16 %v9106_v37, %v9106_v37 }
 0x5ad   : > { %v6152_v45 = vadd.f32 1.0, %v9108_v32 }
 0x5ae   : > { %6623 = vst.msk [vmem:[%s11709_s13 + $0xa4] sm:$0xf] %vm6602_vm4, %v7703_v30 }
 0x5af   : > { %v9110_v14 = vpop.eup %9109  ;;  %9119 = vrcp.f32 %v6152_v45 }
 0x5b0   : > { %v9112_v63 = vpop.eup %9111  ;;  %v7707_v31 = vpack.c.bf16 %v9110_v14, %v9110_v14 }
 0x5b1   : > { %v6159_v50 = vadd.f32 1.0, %v9112_v63 }
 0x5b2   : > { %6627 = vst.msk [vmem:[%s11709_s13 + $0xc0] sm:$0xf] %vm6602_vm4, %v7707_v31 }
 0x5b3   : > { %v9114_v35 = vpop.eup %9113  ;;  %9121 = vrcp.f32 %v6159_v50 }
 0x5b4   : > { %v9116_v62 = vpop.eup %9115  ;;  %v6166_v8 = vadd.f32 1.0, %v9114_v35 }
 0x5b5   : > { %v7711_v52 = vpack.c.bf16 %v9116_v62, %v9116_v62 }
 0x5b6   : > { %9123 = vrcp.f32 %v6166_v8 }
 0x5b7   : > { %6631 = vst.msk [vmem:[%s11709_s13 + $0xdc] sm:$0xf] %vm6602_vm4, %v7711_v52 }
 0x5b8   : > { %v9118_v59 = vpop.eup %9117 }
 0x5b9   : > { %v7715_v36 = vpack.c.bf16 %v9118_v59, %v9118_v59 }
 0x5bb   : > { %6635 = vst.msk [vmem:[%s11709_s13 + $0xf8] sm:$0xf] %vm6602_vm4, %v7715_v36 }
 0x5bc   : > { %v9120_v20 = vpop.eup %9119 }
 0x5bd   : > { %v7719_v29 = vpack.c.bf16 %v9120_v20, %v9120_v20 }
 0x5bf   : > { %6639 = vst.msk [vmem:[%s11709_s13 + $0x114] sm:$0xf] %vm6602_vm4, %v7719_v29 }
 0x5c0   : > { %v9122_v1 = vpop.eup %9121 }
 0x5c1   : > { %v7723_v33 = vpack.c.bf16 %v9122_v1, %v9122_v1 }
 0x5c2   : > { %6672 = sbr.rel (!%p9390_p5) target bundleno = 1508 (0x5e4), region = 64 }
 0x5c3   : > { %v9124_v42 = vpop.eup %9123  ;;  %6643 = vst.msk [vmem:[%s11709_s13 + $0x130] sm:$0xf] %vm6602_vm4, %v7723_v33 }
 0x5c4   : > { %v7727_v11 = vpack.c.bf16 %v9124_v42, %v9124_v42 }
 0x5c6   : > { %6647 = vst.msk [vmem:[%s11709_s13 + $0x14c] sm:$0xf] %vm6602_vm4, %v7727_v11 }
 0x5c7   : > { %s12064_s25 = smov (!%p6675_p11, %s6674_s25), 12 }
 0x5c8   : > { %s11864_s28 = smul.u32 448, %s12064_s25 }
 0x5ca   : > { %s6680_s15 = ssub.s32 5376, %s11864_s28 }
 0x5cb   : > { %6681 = vsyncadd %s12001_s23, %s6680_s15  ;;  %p7665_p12 = scmp.ne.s32.totalorder %s11864_s28, 0  ;;  %s7946_s26 = smul.u32 5376, %s9373_s21 }
 0x5cc   : > { %s6687_s29 = sshll.u32 %s11709_s13, 4  ;;  %s9289_s25 = smov [#allocation2]   ;;  %s11877_s29 = int_to_ptr.vmem [resolvable:$true] %s6687_s29 }
 0x5cd   : > { %s11875_s19 = scalar_lea.hbm %s11980_s10, %s7946_s26  ;;  %s9161_s16 = scalar_lea.vmem %s11877_s29, %s11864_s28 }
 0x5ce   : > { %p9162_p13 = scmp.ne.s32.totalorder %s11877_s29, %s9161_s16  ;;  %s9165_s15 = sshll.u32 %s9289_s25, 4  ;;  %s9166_s15 = int_to_ptr.vmem [resolvable:$false] %s9165_s15 }
 0x5cf   : > { %s9167_s23 = scalar_lea.vmem %s9166_s15, 10752  ;;  %p9168_p2 = scmp.lt.s32.totalorder %s11877_s29, %s9166_s15 }
 0x5d0   : > { %p9163_p0 = pnand %p9162_p13, %p7665_p12  ;;  %p9169_p3 = scmp.lt.s32.totalorder %s9167_s23, %s9161_s16 }
 0x5d2   : > { %p9164_p1 = pneg %p9163_p0  ;;  %p9170_p4 = por %p9169_p3, %p9168_p2 }
 0x5d4   : > { %p9171_p7 = pnand %p9170_p4, %p9164_p1 }
 0x5d6   : > { %9174 = shalt.err (!%p9171_p7)
}
 0x5d7   : > { %s9175_s13 = scalar_lea.hbm %s11875_s19, %s11864_s28  ;;  %s9179_s12 = scalar_lea.hbm %s11980_s10, 11200 }
 0x5d8   : > { %p9176_p8 = scmp.ne.s32.totalorder %s11875_s19, %s9175_s13  ;;  %p9180_p11 = scmp.lt.s32.totalorder %s11875_s19, %s11980_s10 }
 0x5d9   : > { %p9181_p13 = scmp.lt.s32.totalorder %s9179_s12, %s9175_s13 }
 0x5da   : > { %p9177_p9 = pnand %p9176_p8, %p7665_p12 }
 0x5db   : > { %p9182_p0 = por %p9181_p13, %p9180_p11 }
 0x5dc   : > { %p9178_p10 = pneg %p9177_p9 }
 0x5de   : > { %p9183_p1 = pnand %p9182_p0, %p9178_p10 }
 0x5e0   : > { %9186 = shalt.err (!%p9183_p1)
}
 0x5e1   : > { %s9290_s23 = smov 448   ;;  %s9291_s16 = smov 28  }
 0x5e2   : > { %s12053_s0 = scalar_lea.sflag [#allocation3], %s10615_s22 }
 0x5e3   : > { %6693 = dma.vmem_to_hbm [thread:$0]  (%p7665_p12), %s11877_s29, %s11864_s28, %s11875_s19, %s12053_s0, %s9290_s23, %s9290_s23, %s9291_s16  }
 0x5e4 PF: > { %6696 = sbr.rel (!%p9390_p5) target bundleno = 1566 (0x61e), region = 68  ;;  %s6698_s13 = ssub.s32 (%p9390_p5), 25, %s9488_s24 }
 0x5e5   : > { %s7728_s26 = smul.u32 (%p9390_p5), 96, %s9373_s21  ;;  %p6699_p2 = scmp.lt.s32.totalorder (%p9390_p5), %s6698_s13, 12 }
 0x5e7   : > { %s11911_s25 = scalar_lea.vmem (%p9390_p5), %s11981_s11, %s7728_s26  }
 0x5e9   : > { %s12066_s13 = smov (!%p6699_p2, %s6698_s13), 12 }
 0x5ea   : > { %s7668_s15 = sshll.u32 %s12066_s13, 7 }
 0x5eb   : > { %p7671_p3 = scmp.eq.s32.totalorder %s7668_s15, 0 }
 0x5ec   : > { %9157 = sdivrem.u32 (!%p7671_p3), %s12066_s13, 12 }
 0x5ed   : > { %6707 = sbr.rel (%p7671_p3) target bundleno = 1566 (0x61e), region = 72 }
 0x5f5   : > { %s11917_s0 = spop.drf %9157 }
 0x5f6   : > { %p7672_p5 = scmp.le.s32.totalorder %s11917_s0, 0 }
 0x5f7   : > { %s12054_s21 = smov (!%p7672_p5), %s11911_s25  ;;  %s12055_s27 = smov (!%p7672_p5), %s10648_s30 }
 0x5f8   : > { %6937 = sbr.rel (%p7672_p5) target bundleno = 1541 (0x605), region = 164  ;;  %s11926_s24 = smov (!%p7672_p5), 0  }
 0x5f9   : > { %s11928_s22 = smov (!%p7672_p5), 0  }
 0x5fd LB: >> { %v6794_v13 = vld [vmem:[%s9261_s27] sm:$0xff]  ;;  %v6796_v48 = vld [vmem:[%s9261_s27 + $0x8] sm:$0xff]  ;;  %v6798_v56 = vld [vmem:[%s9261_s27 + $0x10] sm:$0xff]  ;;  %s6818_s28 = sadd.s32 1, %s9265_s24  ;;  %s6788_s22 = sadd.s32 1, %s9269_s22   ;;  %s9269_s22 = sphi %s11928_s22, %s6788_s22   ;;  %s9265_s24 = sphi %s11926_s24, %s12056_s24   ;;  %s9261_s27 = sphi %s12055_s27, %s6823_s27   ;;  %s9257_s21 = sphi %s12054_s21, %s6824_s21  }
 0x5fe   : >> { %6795 = vst [vmem:[%s9257_s21] sm:$0xff] %v6794_v13  ;;  %6797 = vst [vmem:[%s9257_s21 + $0x8] sm:$0xff] %v6796_v48  ;;  %v6800_v46 = vld [vmem:[%s9261_s27 + $0x18] sm:$0xff]  ;;  %v6802_v27 = vld [vmem:[%s9261_s27 + $0x20] sm:$0xff]  ;;  %p6819_p12 = scmp.ge.s32.totalorder %s6818_s28, %s11917_s0  ;;  %p6787_p4 = scmp.ge.s32.totalorder %s6788_s22, %s11917_s0 }
 0x5ff   : >> { %6799 = vst [vmem:[%s9257_s21 + $0x10] sm:$0xff] %v6798_v56  ;;  %v6804_v51 = vld [vmem:[%s9261_s27 + $0x28] sm:$0xff]  ;;  %6801 = vst [vmem:[%s9257_s21 + $0x18] sm:$0xff] %v6800_v46  ;;  %v6806_v4 = vld [vmem:[%s9261_s27 + $0x30] sm:$0xff] }
 0x600   : >> { %6803 = vst [vmem:[%s9257_s21 + $0x20] sm:$0xff] %v6802_v27  ;;  %6805 = vst [vmem:[%s9257_s21 + $0x28] sm:$0xff] %v6804_v51  ;;  %v6808_v39 = vld [vmem:[%s9261_s27 + $0x38] sm:$0xff]  ;;  %v6810_v2 = vld [vmem:[%s9261_s27 + $0x40] sm:$0xff]  ;;  %s12068_s28 = smov (%p6819_p12, %s6818_s28), 0  ;;  %6790 = sbr.rel (!%p6787_p4) target bundleno = 1533 (0x5fd), region = 170 }
 0x601   : >> { %6807 = vst [vmem:[%s9257_s21 + $0x30] sm:$0xff] %v6806_v4  ;;  %6809 = vst [vmem:[%s9257_s21 + $0x38] sm:$0xff] %v6808_v39  ;;  %v6812_v16 = vld [vmem:[%s9261_s27 + $0x48] sm:$0xff]  ;;  %v6814_v49 = vld [vmem:[%s9261_s27 + $0x50] sm:$0xff]  ;;  %s6821_s29 = smul.u32 96, %s12068_s28  ;;  %s12056_s24 = smov %s12068_s28 }
 0x602   : >> { %6811 = vst [vmem:[%s9257_s21 + $0x40] sm:$0xff] %v6810_v2  ;;  %v6816_v34 = vld [vmem:[%s9261_s27 + $0x58] sm:$0xff]  ;;  %6813 = vst [vmem:[%s9257_s21 + $0x48] sm:$0xff] %v6812_v16 }
 0x603   : >> { %6815 = vst [vmem:[%s9257_s21 + $0x50] sm:$0xff] %v6814_v49  ;;  %6817 = vst [vmem:[%s9257_s21 + $0x58] sm:$0xff] %v6816_v34  ;;  %s6823_s27 = scalar_lea.vmem %s10648_s30, %s6821_s29 [#allocation4]   ;;  %s6824_s21 = scalar_lea.vmem %s11911_s25, %s6821_s29  }
 0x605 PF: > { %9159 = sdivrem.u32 %s12066_s13, 12 }
 0x606   : > { %s7673_s19 = smul.u32 96, %s11917_s0 }
 0x608   : > { %s6829_s23 = scalar_lea.vmem %s10648_s30, %s7673_s19 [#allocation4]   ;;  %s6831_s16 = scalar_lea.vmem %s11911_s25, %s7673_s19  }
 0x60e   : > { %s9160_s26 = spop.drf %9159 }
 0x60f   : > { %p7675_p7 = scmp.le.s32.totalorder %s9160_s26, 0 }
 0x610   : > { %s9271_s14 = smov (!%p7675_p7), %s6831_s16   ;;  %s9275_s12 = smov (!%p7675_p7), %s6829_s23  }
 0x611   : > { %6951 = sbr.rel (%p7675_p7) target bundleno = 1566 (0x61e), region = 175  ;;  %s9279_s15 = smov (!%p7675_p7), 0  }
 0x612   : > { %s9283_s29 = smov (!%p7675_p7), 0  }
 0x616 LB: >> { %v6841_v58 = vld [vmem:[%s9277_s12] sm:$0xff]  ;;  %s6843_s21 = sadd.s32 1, %s9281_s15  ;;  %s6835_s29 = sadd.s32 1, %s9285_s29   ;;  %s9285_s29 = sphi %s9283_s29, %s6835_s29   ;;  %s9281_s15 = sphi %s9279_s15, %s9280_s15   ;;  %s9277_s12 = sphi %s9275_s12, %s6848_s12   ;;  %s9273_s14 = sphi %s9271_s14, %s6849_s14  }
 0x617   : >> { %6842 = vst [vmem:[%s9273_s14] sm:$0xff] %v6841_v58  ;;  %p6844_p8 = scmp.ge.s32.totalorder %s6843_s21, %s9160_s26  ;;  %p6834_p9 = scmp.ge.s32.totalorder %s6835_s29, %s9160_s26 }
 0x619   : >> { %s12070_s21 = smov (%p6844_p8, %s6843_s21), 0  ;;  %6837 = sbr.rel (!%p6834_p9) target bundleno = 1558 (0x616), region = 181 }
 0x61a   : >> { %s7676_s30 = sshll.u32 %s12070_s21, 3  ;;  %s9280_s15 = smov %s12070_s21  }
 0x61b   : >> { %s6848_s12 = scalar_lea.vmem %s6829_s23, %s7676_s30 [#allocation4]   ;;  %s6849_s14 = scalar_lea.vmem %s6831_s16, %s7676_s30  }
 0x61e PF: > { %p7947_p10 = scmp.ge.s32.totalorder %s9253_s20, 2  ;;  %s6861_s25 = sand.u32 1, %s9241_s17  }
 0x61f   : > { %s6862_s0 = scalar_lea.sflag [#allocation3], %s6861_s25 }
 0x620   : > { %p7943_p11 = pnand %p7947_p10, %p9394_p6 }
 0x622   : > { %p7944_p13 = pneg %p7943_p11 }
 0x624   : > { %9236 = dma.done.wait (%p7944_p13), %s6862_s0, 5376  }
 0x625   : > { %9238 = vsyncadd (%p7944_p13), %s6862_s0, 4294961920  ;;  %s12058_s20 = sld [smem:[#allocation7_spill]]  ;;  %s12061_s17 = smov %s9245_s18 }
 0x626   : > { %s12059_s27 = sld [smem:[#allocation6_spill]] }
 0x627   : > { %s12060_s19 = sld [smem:[#allocation8_spill]] }
 0x62b   : > { %p22_p0 = scmp.ge.s32.totalorder %s12058_s20, 5  }
 0x62c   : > { %s12062_s18 = smov %s12059_s27 }
 0x62d   :  { %24 = sbr.rel (!%p22_p0) target bundleno = 5 (0x5), region = 192 }
 0x632   :  { %6874 = vsyncpa [#allocation3], 1 }
 0x633   :  { %6876 = vsyncpa [#allocation3 + $0x1], 1 }

</bundles_post_ra>
